<compile_context>
chip_gen: v7x
topology: tpu7x:2x2x1
jax: 0.10.0
libtpu: 0.0.40
codegen_flags: <defaults>
</compile_context>

<pallas_src>
import functools

import jax
import jax.numpy as jnp
from jax.experimental import pallas as pl
from jax.experimental.pallas import tpu as pltpu


# ---------------------------------------------------------------------------
# Tiling helper
# ---------------------------------------------------------------------------

def _fit_tile(dim, pref):
    """Pick a tile size: `pref` if it divides `dim`, else the full dimension.

    All demo shapes are small enough that full-dim blocks are used; for large
    even shapes this tiles at `pref` to enable double-buffered pipelining.
    """
    if dim <= pref or dim % pref != 0:
        return dim
    return pref


# ---------------------------------------------------------------------------
# Tiled linear:  y = act(x @ w + b)
# ---------------------------------------------------------------------------

def _matmul_kernel(x_ref, w_ref, b_ref, o_ref, acc_ref, *, activation):
    @pl.when(pl.program_id(2) == 0)
    def _():
        acc_ref[...] = jnp.zeros_like(acc_ref)

    acc_ref[...] += jnp.dot(x_ref[...], w_ref[...],
                            preferred_element_type=jnp.float32)

    @pl.when(pl.program_id(2) == pl.num_programs(2) - 1)
    def _():
        y = acc_ref[...] + b_ref[...]
        if activation == "relu":
            y = jnp.maximum(y, 0.0)
        o_ref[...] = y.astype(o_ref.dtype)


def linear(x, w, b, activation=None, *, tm=256, tn=256, tk=512):
    """y = act(x @ w + b).  x: (M, K), w: (K, N), b: (N,)."""
    M, K = x.shape
    N = w.shape[1]
    tm = _fit_tile(M, tm)
    tn = _fit_tile(N, tn)
    tk = _fit_tile(K, tk)
    grid = (M // tm, N // tn, K // tk)
    return pl.pallas_call(
        functools.partial(_matmul_kernel, activation=activation),
        out_shape=jax.ShapeDtypeStruct((M, N), jnp.float32),
        grid=grid,
        in_specs=[
            pl.BlockSpec((tm, tk), lambda i, j, k: (i, k)),
            pl.BlockSpec((tk, tn), lambda i, j, k: (k, j)),
            pl.BlockSpec((1, tn), lambda i, j, k: (0, j)),
        ],
        out_specs=pl.BlockSpec((tm, tn), lambda i, j, k: (i, j)),
        scratch_shapes=[pltpu.VMEM((tm, tn), jnp.float32)],
        compiler_params=pltpu.CompilerParams(
            dimension_semantics=("parallel", "parallel", "arbitrary")),
    )(x, w, b.reshape(1, N))


# ---------------------------------------------------------------------------
# Tiled linear with fused residual + LayerNorm epilogue:
#   y = LayerNorm(res + x @ w + b)
# (N is kept un-tiled so the LayerNorm reduces over the full feature dim.)
# ---------------------------------------------------------------------------

def _linear_res_ln_kernel(x_ref, w_ref, b_ref, res_ref, g_ref, beta_ref,
                          o_ref, acc_ref, *, eps):
    @pl.when(pl.program_id(1) == 0)
    def _():
        acc_ref[...] = jnp.zeros_like(acc_ref)

    acc_ref[...] += jnp.dot(x_ref[...], w_ref[...],
                            preferred_element_type=jnp.float32)

    @pl.when(pl.program_id(1) == pl.num_programs(1) - 1)
    def _():
        z = acc_ref[...] + b_ref[...] + res_ref[...]
        mean = jnp.mean(z, axis=-1, keepdims=True)
        cen = z - mean
        var = jnp.mean(cen * cen, axis=-1, keepdims=True)
        normed = cen * jax.lax.rsqrt(var + eps)
        o_ref[...] = (normed * g_ref[...] + beta_ref[...]).astype(o_ref.dtype)


def linear_res_ln(x, w, b, res, gamma, beta, *, eps=1e-5, tm=256, tk=512):
    """LayerNorm(res + x @ w + b).  x: (M, K), w: (K, N), res: (M, N)."""
    M, K = x.shape
    N = w.shape[1]
    tm = _fit_tile(M, tm)
    tk = _fit_tile(K, tk)
    grid = (M // tm, K // tk)
    return pl.pallas_call(
        functools.partial(_linear_res_ln_kernel, eps=eps),
        out_shape=jax.ShapeDtypeStruct((M, N), jnp.float32),
        grid=grid,
        in_specs=[
            pl.BlockSpec((tm, tk), lambda i, k: (i, k)),
            pl.BlockSpec((tk, N), lambda i, k: (k, 0)),
            pl.BlockSpec((1, N), lambda i, k: (0, 0)),
            pl.BlockSpec((tm, N), lambda i, k: (i, 0)),
            pl.BlockSpec((1, N), lambda i, k: (0, 0)),
            pl.BlockSpec((1, N), lambda i, k: (0, 0)),
        ],
        out_specs=pl.BlockSpec((tm, N), lambda i, k: (i, 0)),
        scratch_shapes=[pltpu.VMEM((tm, N), jnp.float32)],
        compiler_params=pltpu.CompilerParams(
            dimension_semantics=("parallel", "arbitrary")),
    )(x, w, b.reshape(1, N), res, gamma.reshape(1, N), beta.reshape(1, N))


# ---------------------------------------------------------------------------
# Bias MLP, fused over both layers and all heads:   (grid = heads)
#   bias[h] = relu(sf @ W1[h] + b1[h]) @ W2[h] + b2[h]       -> (H, B, L*L)
# ---------------------------------------------------------------------------

def _bias_mlp_kernel(sf_ref, w1_ref, b1_ref, w2_ref, b2_ref, o_ref):
    h = jnp.dot(sf_ref[...], w1_ref[0],
                preferred_element_type=jnp.float32) + b1_ref[0]
    h = jnp.maximum(h, 0.0)
    o_ref[0] = jnp.dot(h, w2_ref[0],
                       preferred_element_type=jnp.float32) + b2_ref[0]


def bias_mlp(sf, w1, b1, w2, b2):
    """sf: (B, dim_s); w1: (H, dim_s, DH); b1: (H, 1, DH);
       w2: (H, DH, L*L); b2: (H, 1, L*L)  ->  (H, B, L*L)."""
    H, dim_s, DH = w1.shape
    LL = w2.shape[2]
    B = sf.shape[0]
    return pl.pallas_call(
        _bias_mlp_kernel,
        out_shape=jax.ShapeDtypeStruct((H, B, LL), jnp.float32),
        grid=(H,),
        in_specs=[
            pl.BlockSpec((B, dim_s), lambda h: (0, 0)),
            pl.BlockSpec((1, dim_s, DH), lambda h: (h, 0, 0)),
            pl.BlockSpec((1, 1, DH), lambda h: (h, 0, 0)),
            pl.BlockSpec((1, DH, LL), lambda h: (h, 0, 0)),
            pl.BlockSpec((1, 1, LL), lambda h: (h, 0, 0)),
        ],
        out_specs=pl.BlockSpec((1, B, LL), lambda h: (h, 0, 0)),
        compiler_params=pltpu.CompilerParams(
            dimension_semantics=("parallel",)),
    )(sf, w1, b1, w2, b2)


# ---------------------------------------------------------------------------
# Attention + bias + norm3, all heads in one kernel, grid over batch (parallel)
# ---------------------------------------------------------------------------

def _attn_bias_kernel(q_ref, k_ref, v_ref, bias_ref, o_ref, norm_ref, *,
                      inv_scale, num_heads, dk):
    q = q_ref[0]                     # (H, L, DQ)
    k = k_ref[0]                     # (H, L, DQ)
    v = v_ref[0]                     # (H, L, DK)
    bias = bias_ref[...][:, 0]       # (H, L, L)

    # Scores + softmax, batched over the head axis.
    s = jnp.einsum("hqd,hkd->hqk", q, k,
                   preferred_element_type=jnp.float32) * inv_scale
    m = jnp.max(s, axis=-1, keepdims=True)
    e = jnp.exp(s - m)
    denom = jnp.sum(e, axis=-1, keepdims=True)
    sm = e * pl.reciprocal(denom, approx=True)

    att = sm + bias                  # add_mode == 0: softmax + bias
    out = jnp.einsum("hqk,hkd->hqd", att, v,
                     preferred_element_type=jnp.float32)     # (H, L, DK)

    # Write the concatenated hidden (L, H*DK) directly (no host-side concat).
    for h in range(num_heads):
        o_ref[0, :, h * dk:(h + 1) * dk] = out[h].astype(o_ref.dtype)

    # norm3 (use_cls=False): L1 of row-diffs + L1 of col-diffs, summed over
    # heads; per-batch partial so the batch grid axis stays "parallel".
    row_l1 = jnp.sum(jnp.abs(bias[:, 1:, :] - bias[:, :-1, :]))
    col_l1 = jnp.sum(jnp.abs(bias[:, :, 1:] - bias[:, :, :-1]))
    norm_ref[...] = jnp.broadcast_to(row_l1 + col_l1, (1, 1, 1))


def attn_bias(q, k, v, bias, scale):
    """q,k: (B,H,L,DQ); v: (B,H,L,DK); bias: (H,B,L,L) ->
       hidden (B, L, H*DK), per-batch norm partials (B,1,1)."""
    B, H, L, DQ = q.shape
    DK = v.shape[-1]
    out, norm = pl.pallas_call(
        functools.partial(_attn_bias_kernel, inv_scale=1.0 / scale,
                          num_heads=H, dk=DK),
        out_shape=(jax.ShapeDtypeStruct((B, L, H * DK), jnp.float32),
                   jax.ShapeDtypeStruct((B, 1, 1), jnp.float32)),
        grid=(B,),
        in_specs=[
            pl.BlockSpec((1, H, L, DQ), lambda b: (b, 0, 0, 0)),
            pl.BlockSpec((1, H, L, DQ), lambda b: (b, 0, 0, 0)),
            pl.BlockSpec((1, H, L, DK), lambda b: (b, 0, 0, 0)),
            pl.BlockSpec((H, 1, L, L), lambda b: (0, b, 0, 0)),
        ],
        out_specs=(
            pl.BlockSpec((1, L, H * DK), lambda b: (b, 0, 0)),
            pl.BlockSpec((1, 1, 1), lambda b: (b, 0, 0)),
        ),
        compiler_params=pltpu.CompilerParams(
            dimension_semantics=("parallel",)),
    )(q, k, v, bias)
    return out, norm


# ---------------------------------------------------------------------------
# Deterministic parameter initialization (synthetic weights, fused layouts)
# ---------------------------------------------------------------------------

def _normal(key, shape, scale=0.05):
    return jax.random.normal(key, shape, jnp.float32) * scale


def init_mha(key, nheads, din, dmodel, dq, dim_s, seq_len):
    ks = jax.random.split(key, 8)
    LL = seq_len * seq_len
    return {
        # Fused QKV: columns ordered [q_h0..q_hH | k_h0..k_hH | v_h0..v_hH]
        "wqkv": _normal(ks[0], (din, 3 * nheads * dq)),
        "bqkv": _normal(ks[1], (3 * nheads * dq,)),
        # Bias MLP stacked per head:  nn.Linear(dim_s,1024) -> nn.Linear(1024, L*L)
        "b1_w": _normal(ks[2], (nheads, dim_s, 1024)),
        "b1_b": _normal(ks[3], (nheads, 1, 1024)),
        "b2_w": _normal(ks[4], (nheads, 1024, LL)),
        "b2_b": _normal(ks[5], (nheads, 1, LL)),
        # Output projection  nn.Linear(nheads*dk, dmodel)
        "out_w": _normal(ks[6], (nheads * dq, dmodel)),
        "out_b": _normal(ks[7], (dmodel,)),
    }


def init_ff(key, dmodel, dff):
    ks = jax.random.split(key, 4)
    return {"l1_w": _normal(ks[0], (dmodel, dff)), "l1_b": _normal(ks[1], (dff,)),
            "l2_w": _normal(ks[2], (dff, dmodel)), "l2_b": _normal(ks[3], (dmodel,))}


def init_encoder_layer(key, dmodel, nheads, dff, dim_s, seq_len):
    k1, k2 = jax.random.split(key)
    dq = max(dmodel // nheads, 1)
    return {"mha": init_mha(k1, nheads, dmodel, dmodel, dq, dim_s, seq_len),
            "ln1_g": jnp.ones((dmodel,), jnp.float32),
            "ln1_b": jnp.zeros((dmodel,), jnp.float32),
            "ff": init_ff(k2, dmodel, dff),
            "ln2_g": jnp.ones((dmodel,), jnp.float32),
            "ln2_b": jnp.zeros((dmodel,), jnp.float32)}


def init_encoder(key, num_layers, dim_in, dmodel, nheads, dff, dim_s, seq_len):
    ks = jax.random.split(key, num_layers + 2)
    dq = dmodel // nheads
    return {"first1": init_mha(ks[0], nheads, dim_in, dmodel, dq, dim_s, seq_len),
            "first2": init_ff(ks[1], dmodel, dff),
            "layers": [init_encoder_layer(ks[2 + i], dmodel, nheads, dff,
                                          dim_s, seq_len)
                       for i in range(num_layers)]}


# ---------------------------------------------------------------------------
# Forward pass (glue in JAX, hot paths in the Pallas kernels above)
# ---------------------------------------------------------------------------

def mha_bias_forward(p, x, sf):
    """MultiHeadAttentionBias with pos=None, add_mode=0, use_cls=False.
    Returns the pre-projection concatenated hidden (B, L, H*dk) and norm3."""
    B, L, DIN = x.shape
    H = p["b1_w"].shape[0]
    dq = p["wqkv"].shape[1] // (3 * H)

    x2 = x.reshape(B * L, DIN)
    qkv = linear(x2, p["wqkv"], p["bqkv"]).reshape(B, L, 3, H, dq)
    q = jnp.transpose(qkv[:, :, 0], (0, 2, 1, 3))   # (B, H, L, dq)
    k = jnp.transpose(qkv[:, :, 1], (0, 2, 1, 3))
    v = jnp.transpose(qkv[:, :, 2], (0, 2, 1, 3))

    bias = bias_mlp(sf, p["b1_w"], p["b1_b"],
                    p["b2_w"], p["b2_b"]).reshape(H, B, L, L)

    hidden, norm_b = attn_bias(q, k, v, bias, scale=float(dq) ** 0.5)
    return hidden, jnp.sum(norm_b)


def encoder_layer_forward(p, src, sf):
    B, L, D = src.shape
    src2 = src.reshape(B * L, D)
    mha = p["mha"]

    # Residual_MH: LayerNorm(src + MHA(src));  out-proj + residual + LN fused.
    hidden, nrm = mha_bias_forward(mha, src, sf)
    src1 = linear_res_ln(hidden.reshape(B * L, -1), mha["out_w"], mha["out_b"],
                         src2, p["ln1_g"], p["ln1_b"])

    # Residual_FF: LayerNorm(src1 + FF(src1));  second linear + residual + LN fused.
    hff = linear(src1, p["ff"]["l1_w"], p["ff"]["l1_b"], activation="relu")
    out2 = linear_res_ln(hff, p["ff"]["l2_w"], p["ff"]["l2_b"],
                         src1, p["ln2_g"], p["ln2_b"])
    return out2.reshape(B, L, D), nrm


def encoder_forward(params, src, sf):
    B, L, _ = src.shape
    # first_layer_mode == 1, diff_dim == True: MHA (with out-proj) then plain FF.
    first1 = params["first1"]
    hidden, total_norm = mha_bias_forward(first1, src, sf)
    D = first1["out_w"].shape[1]
    y = linear(hidden.reshape(B * L, -1), first1["out_w"], first1["out_b"])
    h = linear(y, params["first2"]["l1_w"], params["first2"]["l1_b"],
               activation="relu")
    src = linear(h, params["first2"]["l2_w"],
                 params["first2"]["l2_b"]).reshape(B, L, D)

    for lp in params["layers"]:
        src, nrm = encoder_layer_forward(lp, src, sf)
        total_norm = total_norm + nrm
    # last_layer_mode == 0 -> pass
    return src, total_norm


# ---------------------------------------------------------------------------

if __name__ == "__main__":
    # Small shapes consistent with the module's construction
    B, SEQ_LEN = 2, 8
    DIM_IN, DIM_S = 8, 8
    DIM_MODEL, NUM_HEADS, DIM_FF = 32, 4, 64
    NUM_LAYERS = 2

    key = jax.random.PRNGKey(0)
    kp, kx, ks = jax.random.split(key, 3)
    params = init_encoder(kp, NUM_LAYERS, DIM_IN, DIM_MODEL, NUM_HEADS,
                          DIM_FF, DIM_S, SEQ_LEN)
    src = jax.random.normal(kx, (B, SEQ_LEN, DIM_IN), jnp.float32)
    sf = jax.random.normal(ks, (B, DIM_S), jnp.float32)

    fwd = jax.jit(encoder_forward)
    out, total_norm = fwd(params, src, sf)
    out = jax.block_until_ready(out)
    total_norm = jax.block_until_ready(total_norm)

    assert out.shape == (B, SEQ_LEN, DIM_MODEL)
    assert out.dtype == jnp.float32
    assert total_norm.shape == ()
    print("KERNEL_OK")
</pallas_src>

<mosaic_0001>
module attributes {stable_mosaic.version = 11 : i64} {
  func.func @_matmul_kernel(%arg0: i32, %arg1: i32, %arg2: i32, %arg3: memref<16x8xf32, #tpu.memory_space<vmem>>, %arg4: memref<8x96xf32, #tpu.memory_space<vmem>>, %arg5: memref<1x96xf32, #tpu.memory_space<vmem>>, %arg6: memref<16x96xf32, #tpu.memory_space<vmem>>, %arg7: memref<16x96xf32, #tpu.memory_space<vmem>>) attributes {dimension_semantics = [#tpu.dimension_semantics<parallel>, #tpu.dimension_semantics<parallel>, #tpu.dimension_semantics<arbitrary>], iteration_bounds = array<i64: 1, 1, 1>, scalar_prefetch = 0 : i64, scratch_operands = 1 : i64, tpu.core_type = #tpu.core_type<tc>, window_params = [{transform_indices = @transform_0, window_bounds = array<i64: 16, 8>}, {transform_indices = @transform_1, window_bounds = array<i64: 8, 96>}, {transform_indices = @transform_2, window_bounds = array<i64: 1, 96>}, {transform_indices = @transform_3, window_bounds = array<i64: 16, 96>}]} {
    %c0_i32 = arith.constant 0 : i32
    %0 = arith.cmpi eq, %arg2, %c0_i32 : i32
    %1 = arith.extui %0 : i1 to i32
    %c0_i32_0 = arith.constant 0 : i32
    %2 = arith.cmpi ne, %1, %c0_i32_0 : i32
    scf.if %2 {
      %cst_10 = arith.constant 0.000000e+00 : f32
      %12 = vector.broadcast %cst_10 : f32 to vector<16x96xf32>
      %c0_11 = arith.constant 0 : index
      %c0_12 = arith.constant 0 : index
      %13 = vector.load %arg7[%c0_11, %c0_12] : memref<16x96xf32, #tpu.memory_space<vmem>>, vector<16x96xf32>
      tpu.vector_store %arg7[%c0_11, %c0_12], %12 {strides = array<i32>} : memref<16x96xf32, #tpu.memory_space<vmem>>, vector<16x96xf32>,
    } else {
    }
    %c0 = arith.constant 0 : index
    %c0_1 = arith.constant 0 : index
    %3 = vector.load %arg7[%c0, %c0_1] : memref<16x96xf32, #tpu.memory_space<vmem>>, vector<16x96xf32>
    %c0_2 = arith.constant 0 : index
    %c0_3 = arith.constant 0 : index
    %4 = vector.load %arg3[%c0_2, %c0_3] : memref<16x8xf32, #tpu.memory_space<vmem>>, vector<16x8xf32>
    %c0_4 = arith.constant 0 : index
    %c0_5 = arith.constant 0 : index
    %5 = vector.load %arg4[%c0_4, %c0_5] : memref<8x96xf32, #tpu.memory_space<vmem>>, vector<8x96xf32>
    %cst = arith.constant dense<0.000000e+00> : vector<16x96xf32>
    %6 = tpu.matmul %4, %5, %cst {dimension_numbers = #tpu.dot_dimension_numbers<[1], [0], [0], [1], [0, 0, 1, 1], [], []>} : vector<16x8xf32>, vector<8x96xf32>, vector<16x96xf32> -> vector<16x96xf32>
    %7 = arith.addf %3, %6 : vector<16x96xf32>
    %c0_6 = arith.constant 0 : index
    %c0_7 = arith.constant 0 : index
    %8 = vector.load %arg7[%c0_6, %c0_7] : memref<16x96xf32, #tpu.memory_space<vmem>>, vector<16x96xf32>
    tpu.vector_store %arg7[%c0_6, %c0_7], %7 {strides = array<i32>} : memref<16x96xf32, #tpu.memory_space<vmem>>, vector<16x96xf32>,
    %c0_i32_8 = arith.constant 0 : i32
    %9 = arith.cmpi eq, %arg2, %c0_i32_8 : i32
    %10 = arith.extui %9 : i1 to i32
    %c0_i32_9 = arith.constant 0 : i32
    %11 = arith.cmpi ne, %10, %c0_i32_9 : i32
    scf.if %11 {
      %c0_10 = arith.constant 0 : index
      %c0_11 = arith.constant 0 : index
      %12 = vector.load %arg7[%c0_10, %c0_11] : memref<16x96xf32, #tpu.memory_space<vmem>>, vector<16x96xf32>
      %c0_12 = arith.constant 0 : index
      %c0_13 = arith.constant 0 : index
      %13 = vector.load %arg5[%c0_12, %c0_13] : memref<1x96xf32, #tpu.memory_space<vmem>>, vector<1x96xf32>
      %14 = vector.broadcast %13 : vector<1x96xf32> to vector<16x96xf32>
      %15 = arith.addf %12, %14 : vector<16x96xf32>
      %c0_14 = arith.constant 0 : index
      %c0_15 = arith.constant 0 : index
      %16 = vector.load %arg6[%c0_14, %c0_15] : memref<16x96xf32, #tpu.memory_space<vmem>>, vector<16x96xf32>
      tpu.vector_store %arg6[%c0_14, %c0_15], %15 {strides = array<i32>} : memref<16x96xf32, #tpu.memory_space<vmem>>, vector<16x96xf32>,
    } else {
    }
    return
  }
  func.func @transform_0(%arg0: i32, %arg1: i32, %arg2: i32) -> (i32, i32) {
    %c0_i32 = arith.constant 0 : i32
    return %arg0, %arg2 : i32, i32
  }
  func.func @transform_1(%arg0: i32, %arg1: i32, %arg2: i32) -> (i32, i32) {
    %c0_i32 = arith.constant 0 : i32
    return %arg2, %arg1 : i32, i32
  }
  func.func @transform_2(%arg0: i32, %arg1: i32, %arg2: i32) -> (i32, i32) {
    %c0_i32 = arith.constant 0 : i32
    %c0_i32_0 = arith.constant 0 : i32
    return %c0_i32, %arg1 : i32, i32
  }
  func.func @transform_3(%arg0: i32, %arg1: i32, %arg2: i32) -> (i32, i32) {
    %c0_i32 = arith.constant 0 : i32
    return %arg0, %arg1 : i32, i32
  }
}

module attributes {stable_mosaic.version = 11 : i64} {
  func.func @_bias_mlp_kernel(%arg0: i32, %arg1: memref<2x8xf32, #tpu.memory_space<vmem>>, %arg2: memref<1x8x1024xf32, #tpu.memory_space<vmem>>, %arg3: memref<1x1x1024xf32, #tpu.memory_space<vmem>>, %arg4: memref<1x1024x64xf32, #tpu.memory_space<vmem>>, %arg5: memref<1x1x64xf32, #tpu.memory_space<vmem>>, %arg6: memref<1x2x64xf32, #tpu.memory_space<vmem>>) attributes {dimension_semantics = [#tpu.dimension_semantics<parallel>], iteration_bounds = array<i64: 4>, scalar_prefetch = 0 : i64, scratch_operands = 0 : i64, tpu.core_type = #tpu.core_type<tc>, window_params = [{pipeline_mode = #tpu.pipeline_mode<synchronous>, transform_indices = @transform_0, window_bounds = array<i64: 2, 8>}, {transform_indices = @transform_1, window_bounds = array<i64: 1, 8, 1024>}, {transform_indices = @transform_2, window_bounds = array<i64: 1, 1, 1024>}, {transform_indices = @transform_3, window_bounds = array<i64: 1, 1024, 64>}, {transform_indices = @transform_4, window_bounds = array<i64: 1, 1, 64>}, {transform_indices = @transform_5, window_bounds = array<i64: 1, 2, 64>}]} {
    %c0 = arith.constant 0 : index
    %c0_0 = arith.constant 0 : index
    %0 = vector.load %arg1[%c0, %c0_0] : memref<2x8xf32, #tpu.memory_space<vmem>>, vector<2x8xf32>
    %c0_1 = arith.constant 0 : index
    %c0_2 = arith.constant 0 : index
    %c0_3 = arith.constant 0 : index
    %1 = vector.load %arg2[%c0_1, %c0_2, %c0_3] : memref<1x8x1024xf32, #tpu.memory_space<vmem>>, vector<1x8x1024xf32>
    %2 = vector.shape_cast %1 : vector<1x8x1024xf32> to vector<8x1024xf32>
    %cst = arith.constant dense<0.000000e+00> : vector<2x1024xf32>
    %3 = tpu.matmul %0, %2, %cst {dimension_numbers = #tpu.dot_dimension_numbers<[1], [0], [0], [1], [0, 0, 1, 1], [], []>} : vector<2x8xf32>, vector<8x1024xf32>, vector<2x1024xf32> -> vector<2x1024xf32>
    %c0_4 = arith.constant 0 : index
    %c0_5 = arith.constant 0 : index
    %c0_6 = arith.constant 0 : index
    %4 = vector.load %arg3[%c0_4, %c0_5, %c0_6] : memref<1x1x1024xf32, #tpu.memory_space<vmem>>, vector<1x1x1024xf32>
    %5 = vector.shape_cast %4 : vector<1x1x1024xf32> to vector<1x1024xf32>
    %6 = vector.broadcast %5 : vector<1x1024xf32> to vector<2x1024xf32>
    %7 = arith.addf %3, %6 : vector<2x1024xf32>
    %cst_7 = arith.constant 0.000000e+00 : f32
    %8 = vector.broadcast %cst_7 : f32 to vector<2x1024xf32>
    %9 = arith.maximumf %7, %8 : vector<2x1024xf32>
    %c0_8 = arith.constant 0 : index
    %c0_9 = arith.constant 0 : index
    %c0_10 = arith.constant 0 : index
    %10 = vector.load %arg4[%c0_8, %c0_9, %c0_10] : memref<1x1024x64xf32, #tpu.memory_space<vmem>>, vector<1x1024x64xf32>
    %11 = vector.shape_cast %10 : vector<1x1024x64xf32> to vector<1024x64xf32>
    %cst_11 = arith.constant dense<0.000000e+00> : vector<2x64xf32>
    %12 = tpu.matmul %9, %11, %cst_11 {dimension_numbers = #tpu.dot_dimension_numbers<[1], [0], [0], [1], [0, 0, 1, 1], [], []>} : vector<2x1024xf32>, vector<1024x64xf32>, vector<2x64xf32> -> vector<2x64xf32>
    %c0_12 = arith.constant 0 : index
    %c0_13 = arith.constant 0 : index
    %c0_14 = arith.constant 0 : index
    %13 = vector.load %arg5[%c0_12, %c0_13, %c0_14] : memref<1x1x64xf32, #tpu.memory_space<vmem>>, vector<1x1x64xf32>
    %14 = vector.shape_cast %13 : vector<1x1x64xf32> to vector<1x64xf32>
    %15 = vector.broadcast %14 : vector<1x64xf32> to vector<2x64xf32>
    %16 = arith.addf %12, %15 : vector<2x64xf32>
    %c0_15 = arith.constant 0 : index
    %c0_16 = arith.constant 0 : index
    %c0_17 = arith.constant 0 : index
    %17 = vector.load %arg6[%c0_15, %c0_16, %c0_17] : memref<1x2x64xf32, #tpu.memory_space<vmem>>, vector<1x2x64xf32>
    %18 = vector.shape_cast %17 : vector<1x2x64xf32> to vector<2x64xf32>
    %19 = vector.shape_cast %16 : vector<2x64xf32> to vector<1x2x64xf32>
    tpu.vector_store %arg6[%c0_15, %c0_16, %c0_17], %19 {strides = array<i32>} : memref<1x2x64xf32, #tpu.memory_space<vmem>>, vector<1x2x64xf32>,
    return
  }
  func.func @transform_0(%arg0: i32) -> (i32, i32) {
    %c0_i32 = arith.constant 0 : i32
    %c0_i32_0 = arith.constant 0 : i32
    %c0_i32_1 = arith.constant 0 : i32
    return %c0_i32, %c0_i32_0 : i32, i32
  }
  func.func @transform_1(%arg0: i32) -> (i32, i32, i32) {
    %c0_i32 = arith.constant 0 : i32
    %c0_i32_0 = arith.constant 0 : i32
    %c0_i32_1 = arith.constant 0 : i32
    return %arg0, %c0_i32, %c0_i32_0 : i32, i32, i32
  }
  func.func @transform_2(%arg0: i32) -> (i32, i32, i32) {
    %c0_i32 = arith.constant 0 : i32
    %c0_i32_0 = arith.constant 0 : i32
    %c0_i32_1 = arith.constant 0 : i32
    return %arg0, %c0_i32, %c0_i32_0 : i32, i32, i32
  }
  func.func @transform_3(%arg0: i32) -> (i32, i32, i32) {
    %c0_i32 = arith.constant 0 : i32
    %c0_i32_0 = arith.constant 0 : i32
    %c0_i32_1 = arith.constant 0 : i32
    return %arg0, %c0_i32, %c0_i32_0 : i32, i32, i32
  }
  func.func @transform_4(%arg0: i32) -> (i32, i32, i32) {
    %c0_i32 = arith.constant 0 : i32
    %c0_i32_0 = arith.constant 0 : i32
    %c0_i32_1 = arith.constant 0 : i32
    return %arg0, %c0_i32, %c0_i32_0 : i32, i32, i32
  }
  func.func @transform_5(%arg0: i32) -> (i32, i32, i32) {
    %c0_i32 = arith.constant 0 : i32
    %c0_i32_0 = arith.constant 0 : i32
    %c0_i32_1 = arith.constant 0 : i32
    return %arg0, %c0_i32, %c0_i32_0 : i32, i32, i32
  }
}

module attributes {stable_mosaic.version = 11 : i64} {
  func.func @_attn_bias_kernel(%arg0: i32, %arg1: memref<1x4x8x8xf32, #tpu.memory_space<vmem>>, %arg2: memref<1x4x8x8xf32, #tpu.memory_space<vmem>>, %arg3: memref<1x4x8x8xf32, #tpu.memory_space<vmem>>, %arg4: memref<4x1x8x8xf32, #tpu.memory_space<vmem>>, %arg5: memref<1x8x32xf32, #tpu.memory_space<vmem>>, %arg6: memref<1x1x1xf32, #tpu.memory_space<vmem>>) attributes {dimension_semantics = [#tpu.dimension_semantics<parallel>], iteration_bounds = array<i64: 2>, scalar_prefetch = 0 : i64, scratch_operands = 0 : i64, tpu.core_type = #tpu.core_type<tc>, window_params = [{transform_indices = @transform_0, window_bounds = array<i64: 1, 4, 8, 8>}, {transform_indices = @transform_1, window_bounds = array<i64: 1, 4, 8, 8>}, {transform_indices = @transform_2, window_bounds = array<i64: 1, 4, 8, 8>}, {transform_indices = @transform_3, window_bounds = array<i64: 4, 1, 8, 8>}, {transform_indices = @transform_4, window_bounds = array<i64: 1, 8, 32>}, {transform_indices = @transform_5, window_bounds = array<i64: 1, 1, 1>}]} {
    %c0 = arith.constant 0 : index
    %c0_0 = arith.constant 0 : index
    %c0_1 = arith.constant 0 : index
    %c0_2 = arith.constant 0 : index
    %0 = vector.load %arg1[%c0, %c0_0, %c0_1, %c0_2] : memref<1x4x8x8xf32, #tpu.memory_space<vmem>>, vector<1x4x8x8xf32>
    %1 = vector.shape_cast %0 : vector<1x4x8x8xf32> to vector<4x8x8xf32>
    %c0_3 = arith.constant 0 : index
    %c0_4 = arith.constant 0 : index
    %c0_5 = arith.constant 0 : index
    %c0_6 = arith.constant 0 : index
    %2 = vector.load %arg2[%c0_3, %c0_4, %c0_5, %c0_6] : memref<1x4x8x8xf32, #tpu.memory_space<vmem>>, vector<1x4x8x8xf32>
    %3 = vector.shape_cast %2 : vector<1x4x8x8xf32> to vector<4x8x8xf32>
    %c0_7 = arith.constant 0 : index
    %c0_8 = arith.constant 0 : index
    %c0_9 = arith.constant 0 : index
    %c0_10 = arith.constant 0 : index
    %4 = vector.load %arg3[%c0_7, %c0_8, %c0_9, %c0_10] : memref<1x4x8x8xf32, #tpu.memory_space<vmem>>, vector<1x4x8x8xf32>
    %5 = vector.shape_cast %4 : vector<1x4x8x8xf32> to vector<4x8x8xf32>
    %c0_11 = arith.constant 0 : index
    %c0_12 = arith.constant 0 : index
    %c0_13 = arith.constant 0 : index
    %c0_14 = arith.constant 0 : index
    %6 = vector.load %arg4[%c0_11, %c0_12, %c0_13, %c0_14] : memref<4x1x8x8xf32, #tpu.memory_space<vmem>>, vector<4x1x8x8xf32>
    %7 = vector.shape_cast %6 : vector<4x1x8x8xf32> to vector<4x8x8xf32>
    "tpu.trace_start"() <{level = 10 : i32, message = "hqd,hkd->hqk"}> : () -> ()
    %cst = arith.constant dense<0.000000e+00> : vector<4x8x8xf32>
    %8 = tpu.matmul %1, %3, %cst {dimension_numbers = #tpu.dot_dimension_numbers<[2], [2], [1], [1], [0, 0, 0, 1, 1, 1], [0], [0]>} : vector<4x8x8xf32>, vector<4x8x8xf32>, vector<4x8x8xf32> -> vector<4x8x8xf32>
    "tpu.trace_stop"() : () -> ()
    %cst_15 = arith.constant 0.353553385 : f32
    %9 = vector.broadcast %cst_15 : f32 to vector<4x8x8xf32>
    %10 = arith.mulf %8, %9 : vector<4x8x8xf32>
    %cst_16 = arith.constant dense<0xFF800000> : vector<4x8xf32>
    %11 = vector.multi_reduction <maximumf>, %10, %cst_16 [2] : vector<4x8x8xf32> to vector<4x8xf32>
    %12 = vector.shape_cast %11 : vector<4x8xf32> to vector<4x8x1xf32>
    %13 = vector.broadcast %12 : vector<4x8x1xf32> to vector<4x8x8xf32>
    %14 = arith.subf %10, %13 : vector<4x8x8xf32>
    %15 = math.exp %14 : vector<4x8x8xf32>
    %cst_17 = arith.constant dense<0.000000e+00> : vector<4x8xf32>
    %16 = vector.multi_reduction <add>, %15, %cst_17 [2] : vector<4x8x8xf32> to vector<4x8xf32>
    %17 = vector.shape_cast %16 : vector<4x8xf32> to vector<4x8x1xf32>
    %18 = tpu.reciprocal %17 {approx = true} : vector<4x8x1xf32> -> vector<4x8x1xf32>
    %19 = vector.broadcast %18 : vector<4x8x1xf32> to vector<4x8x8xf32>
    %20 = arith.mulf %15, %19 : vector<4x8x8xf32>
    %21 = arith.addf %20, %7 : vector<4x8x8xf32>
    "tpu.trace_start"() <{level = 10 : i32, message = "hqk,hkd->hqd"}> : () -> ()
    %cst_18 = arith.constant dense<0.000000e+00> : vector<4x8x8xf32>
    %22 = tpu.matmul %21, %5, %cst_18 {dimension_numbers = #tpu.dot_dimension_numbers<[2], [1], [1], [2], [0, 0, 0, 1, 1, 2], [0], [0]>} : vector<4x8x8xf32>, vector<4x8x8xf32>, vector<4x8x8xf32> -> vector<4x8x8xf32>
    "tpu.trace_stop"() : () -> ()
    %23 = vector.extract_strided_slice %22 {offsets = [0, 0, 0], sizes = [1, 8, 8], strides = [1, 1, 1]} : vector<4x8x8xf32> to vector<1x8x8xf32>
    %24 = vector.shape_cast %23 : vector<1x8x8xf32> to vector<8x8xf32>
    %c0_19 = arith.constant 0 : index
    %c0_20 = arith.constant 0 : index
    %c0_21 = arith.constant 0 : index
    %25 = vector.load %arg5[%c0_19, %c0_20, %c0_21] : memref<1x8x32xf32, #tpu.memory_space<vmem>>, vector<1x8x8xf32>
    %26 = vector.shape_cast %25 : vector<1x8x8xf32> to vector<8x8xf32>
    %27 = vector.shape_cast %24 : vector<8x8xf32> to vector<1x8x8xf32>
    tpu.vector_store %arg5[%c0_19, %c0_20, %c0_21], %27 {strides = array<i32>} : memref<1x8x32xf32, #tpu.memory_space<vmem>>, vector<1x8x8xf32>,
    %28 = vector.extract_strided_slice %22 {offsets = [1, 0, 0], sizes = [1, 8, 8], strides = [1, 1, 1]} : vector<4x8x8xf32> to vector<1x8x8xf32>
    %29 = vector.shape_cast %28 : vector<1x8x8xf32> to vector<8x8xf32>
    %c0_22 = arith.constant 0 : index
    %c0_23 = arith.constant 0 : index
    %c8 = arith.constant 8 : index
    %30 = vector.load %arg5[%c0_22, %c0_23, %c8] : memref<1x8x32xf32, #tpu.memory_space<vmem>>, vector<1x8x8xf32>
    %31 = vector.shape_cast %30 : vector<1x8x8xf32> to vector<8x8xf32>
    %32 = vector.shape_cast %29 : vector<8x8xf32> to vector<1x8x8xf32>
    tpu.vector_store %arg5[%c0_22, %c0_23, %c8], %32 {strides = array<i32>} : memref<1x8x32xf32, #tpu.memory_space<vmem>>, vector<1x8x8xf32>,
    %33 = vector.extract_strided_slice %22 {offsets = [2, 0, 0], sizes = [1, 8, 8], strides = [1, 1, 1]} : vector<4x8x8xf32> to vector<1x8x8xf32>
    %34 = vector.shape_cast %33 : vector<1x8x8xf32> to vector<8x8xf32>
    %c0_24 = arith.constant 0 : index
    %c0_25 = arith.constant 0 : index
    %c16 = arith.constant 16 : index
    %35 = vector.load %arg5[%c0_24, %c0_25, %c16] : memref<1x8x32xf32, #tpu.memory_space<vmem>>, vector<1x8x8xf32>
    %36 = vector.shape_cast %35 : vector<1x8x8xf32> to vector<8x8xf32>
    %37 = vector.shape_cast %34 : vector<8x8xf32> to vector<1x8x8xf32>
    tpu.vector_store %arg5[%c0_24, %c0_25, %c16], %37 {strides = array<i32>} : memref<1x8x32xf32, #tpu.memory_space<vmem>>, vector<1x8x8xf32>,
    %38 = vector.extract_strided_slice %22 {offsets = [3, 0, 0], sizes = [1, 8, 8], strides = [1, 1, 1]} : vector<4x8x8xf32> to vector<1x8x8xf32>
    %39 = vector.shape_cast %38 : vector<1x8x8xf32> to vector<8x8xf32>
    %c0_26 = arith.constant 0 : index
    %c0_27 = arith.constant 0 : index
    %c24 = arith.constant 24 : index
    %40 = vector.load %arg5[%c0_26, %c0_27, %c24] : memref<1x8x32xf32, #tpu.memory_space<vmem>>, vector<1x8x8xf32>
    %41 = vector.shape_cast %40 : vector<1x8x8xf32> to vector<8x8xf32>
    %42 = vector.shape_cast %39 : vector<8x8xf32> to vector<1x8x8xf32>
    tpu.vector_store %arg5[%c0_26, %c0_27, %c24], %42 {strides = array<i32>} : memref<1x8x32xf32, #tpu.memory_space<vmem>>, vector<1x8x8xf32>,
    %43 = vector.extract_strided_slice %7 {offsets = [0, 1, 0], sizes = [4, 7, 8], strides = [1, 1, 1]} : vector<4x8x8xf32> to vector<4x7x8xf32>
    %44 = vector.extract_strided_slice %7 {offsets = [0, 0, 0], sizes = [4, 7, 8], strides = [1, 1, 1]} : vector<4x8x8xf32> to vector<4x7x8xf32>
    %45 = arith.subf %43, %44 : vector<4x7x8xf32>
    %46 = math.absf %45 : vector<4x7x8xf32>
    %47 = vector.shape_cast %46 : vector<4x7x8xf32> to vector<1x4x7x8xf32>
    %cst_28 = arith.constant dense<0.000000e+00> : vector<1xf32>
    %48 = vector.multi_reduction <add>, %47, %cst_28 [1, 2, 3] : vector<1x4x7x8xf32> to vector<1xf32>
    %49 = vector.shape_cast %48 : vector<1xf32> to vector<1x1x1x1xf32>
    %50 = vector.extract %49[0, 0, 0, 0] : f32 from vector<1x1x1x1xf32>
    %51 = vector.extract_strided_slice %7 {offsets = [0, 0, 1], sizes = [4, 8, 7], strides = [1, 1, 1]} : vector<4x8x8xf32> to vector<4x8x7xf32>
    %52 = vector.extract_strided_slice %7 {offsets = [0, 0, 0], sizes = [4, 8, 7], strides = [1, 1, 1]} : vector<4x8x8xf32> to vector<4x8x7xf32>
    %53 = arith.subf %51, %52 : vector<4x8x7xf32>
    %54 = math.absf %53 : vector<4x8x7xf32>
    %55 = vector.shape_cast %54 : vector<4x8x7xf32> to vector<1x4x8x7xf32>
    %cst_29 = arith.constant dense<0.000000e+00> : vector<1xf32>
    %56 = vector.multi_reduction <add>, %55, %cst_29 [1, 2, 3] : vector<1x4x8x7xf32> to vector<1xf32>
    %57 = vector.shape_cast %56 : vector<1xf32> to vector<1x1x1x1xf32>
    %58 = vector.extract %57[0, 0, 0, 0] : f32 from vector<1x1x1x1xf32>
    %59 = arith.addf %50, %58 : f32
    %60 = vector.broadcast %59 : f32 to vector<1x1x1xf32>
    %c0_30 = arith.constant 0 : index
    %c0_31 = arith.constant 0 : index
    %c0_32 = arith.constant 0 : index
    %61 = vector.load %arg6[%c0_30, %c0_31, %c0_32] : memref<1x1x1xf32, #tpu.memory_space<vmem>>, vector<1x1x1xf32>
    tpu.vector_store %arg6[%c0_30, %c0_31, %c0_32], %60 {strides = array<i32>} : memref<1x1x1xf32, #tpu.memory_space<vmem>>, vector<1x1x1xf32>,
    return
  }
  func.func @transform_0(%arg0: i32) -> (i32, i32, i32, i32) {
    %c0_i32 = arith.constant 0 : i32
    %c0_i32_0 = arith.constant 0 : i32
    %c0_i32_1 = arith.constant 0 : i32
    %c0_i32_2 = arith.constant 0 : i32
    return %arg0, %c0_i32, %c0_i32_0, %c0_i32_1 : i32, i32, i32, i32
  }
  func.func @transform_1(%arg0: i32) -> (i32, i32, i32, i32) {
    %c0_i32 = arith.constant 0 : i32
    %c0_i32_0 = arith.constant 0 : i32
    %c0_i32_1 = arith.constant 0 : i32
    %c0_i32_2 = arith.constant 0 : i32
    return %arg0, %c0_i32, %c0_i32_0, %c0_i32_1 : i32, i32, i32, i32
  }
  func.func @transform_2(%arg0: i32) -> (i32, i32, i32, i32) {
    %c0_i32 = arith.constant 0 : i32
    %c0_i32_0 = arith.constant 0 : i32
    %c0_i32_1 = arith.constant 0 : i32
    %c0_i32_2 = arith.constant 0 : i32
    return %arg0, %c0_i32, %c0_i32_0, %c0_i32_1 : i32, i32, i32, i32
  }
  func.func @transform_3(%arg0: i32) -> (i32, i32, i32, i32) {
    %c0_i32 = arith.constant 0 : i32
    %c0_i32_0 = arith.constant 0 : i32
    %c0_i32_1 = arith.constant 0 : i32
    %c0_i32_2 = arith.constant 0 : i32
    return %c0_i32, %arg0, %c0_i32_0, %c0_i32_1 : i32, i32, i32, i32
  }
  func.func @transform_4(%arg0: i32) -> (i32, i32, i32) {
    %c0_i32 = arith.constant 0 : i32
    %c0_i32_0 = arith.constant 0 : i32
    %c0_i32_1 = arith.constant 0 : i32
    return %arg0, %c0_i32, %c0_i32_0 : i32, i32, i32
  }
  func.func @transform_5(%arg0: i32) -> (i32, i32, i32) {
    %c0_i32 = arith.constant 0 : i32
    %c0_i32_0 = arith.constant 0 : i32
    %c0_i32_1 = arith.constant 0 : i32
    return %arg0, %c0_i32, %c0_i32_0 : i32, i32, i32
  }
}

module attributes {stable_mosaic.version = 11 : i64} {
  func.func @_matmul_kernel(%arg0: i32, %arg1: i32, %arg2: i32, %arg3: memref<16x32xf32, #tpu.memory_space<vmem>>, %arg4: memref<32x32xf32, #tpu.memory_space<vmem>>, %arg5: memref<1x32xf32, #tpu.memory_space<vmem>>, %arg6: memref<16x32xf32, #tpu.memory_space<vmem>>, %arg7: memref<16x32xf32, #tpu.memory_space<vmem>>) attributes {dimension_semantics = [#tpu.dimension_semantics<parallel>, #tpu.dimension_semantics<parallel>, #tpu.dimension_semantics<arbitrary>], iteration_bounds = array<i64: 1, 1, 1>, scalar_prefetch = 0 : i64, scratch_operands = 1 : i64, tpu.core_type = #tpu.core_type<tc>, window_params = [{transform_indices = @transform_0, window_bounds = array<i64: 16, 32>}, {transform_indices = @transform_1, window_bounds = array<i64: 32, 32>}, {transform_indices = @transform_2, window_bounds = array<i64: 1, 32>}, {transform_indices = @transform_3, window_bounds = array<i64: 16, 32>}]} {
    %c0_i32 = arith.constant 0 : i32
    %0 = arith.cmpi eq, %arg2, %c0_i32 : i32
    %1 = arith.extui %0 : i1 to i32
    %c0_i32_0 = arith.constant 0 : i32
    %2 = arith.cmpi ne, %1, %c0_i32_0 : i32
    scf.if %2 {
      %cst_10 = arith.constant 0.000000e+00 : f32
      %12 = vector.broadcast %cst_10 : f32 to vector<16x32xf32>
      %c0_11 = arith.constant 0 : index
      %c0_12 = arith.constant 0 : index
      %13 = vector.load %arg7[%c0_11, %c0_12] : memref<16x32xf32, #tpu.memory_space<vmem>>, vector<16x32xf32>
      tpu.vector_store %arg7[%c0_11, %c0_12], %12 {strides = array<i32>} : memref<16x32xf32, #tpu.memory_space<vmem>>, vector<16x32xf32>,
    } else {
    }
    %c0 = arith.constant 0 : index
    %c0_1 = arith.constant 0 : index
    %3 = vector.load %arg7[%c0, %c0_1] : memref<16x32xf32, #tpu.memory_space<vmem>>, vector<16x32xf32>
    %c0_2 = arith.constant 0 : index
    %c0_3 = arith.constant 0 : index
    %4 = vector.load %arg3[%c0_2, %c0_3] : memref<16x32xf32, #tpu.memory_space<vmem>>, vector<16x32xf32>
    %c0_4 = arith.constant 0 : index
    %c0_5 = arith.constant 0 : index
    %5 = vector.load %arg4[%c0_4, %c0_5] : memref<32x32xf32, #tpu.memory_space<vmem>>, vector<32x32xf32>
    %cst = arith.constant dense<0.000000e+00> : vector<16x32xf32>
    %6 = tpu.matmul %4, %5, %cst {dimension_numbers = #tpu.dot_dimension_numbers<[1], [0], [0], [1], [0, 0, 1, 1], [], []>} : vector<16x32xf32>, vector<32x32xf32>, vector<16x32xf32> -> vector<16x32xf32>
    %7 = arith.addf %3, %6 : vector<16x32xf32>
    %c0_6 = arith.constant 0 : index
    %c0_7 = arith.constant 0 : index
    %8 = vector.load %arg7[%c0_6, %c0_7] : memref<16x32xf32, #tpu.memory_space<vmem>>, vector<16x32xf32>
    tpu.vector_store %arg7[%c0_6, %c0_7], %7 {strides = array<i32>} : memref<16x32xf32, #tpu.memory_space<vmem>>, vector<16x32xf32>,
    %c0_i32_8 = arith.constant 0 : i32
    %9 = arith.cmpi eq, %arg2, %c0_i32_8 : i32
    %10 = arith.extui %9 : i1 to i32
    %c0_i32_9 = arith.constant 0 : i32
    %11 = arith.cmpi ne, %10, %c0_i32_9 : i32
    scf.if %11 {
      %c0_10 = arith.constant 0 : index
      %c0_11 = arith.constant 0 : index
      %12 = vector.load %arg7[%c0_10, %c0_11] : memref<16x32xf32, #tpu.memory_space<vmem>>, vector<16x32xf32>
      %c0_12 = arith.constant 0 : index
      %c0_13 = arith.constant 0 : index
      %13 = vector.load %arg5[%c0_12, %c0_13] : memref<1x32xf32, #tpu.memory_space<vmem>>, vector<1x32xf32>
      %14 = vector.broadcast %13 : vector<1x32xf32> to vector<16x32xf32>
      %15 = arith.addf %12, %14 : vector<16x32xf32>
      %c0_14 = arith.constant 0 : index
      %c0_15 = arith.constant 0 : index
      %16 = vector.load %arg6[%c0_14, %c0_15] : memref<16x32xf32, #tpu.memory_space<vmem>>, vector<16x32xf32>
      tpu.vector_store %arg6[%c0_14, %c0_15], %15 {strides = array<i32>} : memref<16x32xf32, #tpu.memory_space<vmem>>, vector<16x32xf32>,
    } else {
    }
    return
  }
  func.func @transform_0(%arg0: i32, %arg1: i32, %arg2: i32) -> (i32, i32) {
    %c0_i32 = arith.constant 0 : i32
    return %arg0, %arg2 : i32, i32
  }
  func.func @transform_1(%arg0: i32, %arg1: i32, %arg2: i32) -> (i32, i32) {
    %c0_i32 = arith.constant 0 : i32
    return %arg2, %arg1 : i32, i32
  }
  func.func @transform_2(%arg0: i32, %arg1: i32, %arg2: i32) -> (i32, i32) {
    %c0_i32 = arith.constant 0 : i32
    %c0_i32_0 = arith.constant 0 : i32
    return %c0_i32, %arg1 : i32, i32
  }
  func.func @transform_3(%arg0: i32, %arg1: i32, %arg2: i32) -> (i32, i32) {
    %c0_i32 = arith.constant 0 : i32
    return %arg0, %arg1 : i32, i32
  }
}

module attributes {stable_mosaic.version = 11 : i64} {
  func.func @_matmul_kernel(%arg0: i32, %arg1: i32, %arg2: i32, %arg3: memref<16x32xf32, #tpu.memory_space<vmem>>, %arg4: memref<32x64xf32, #tpu.memory_space<vmem>>, %arg5: memref<1x64xf32, #tpu.memory_space<vmem>>, %arg6: memref<16x64xf32, #tpu.memory_space<vmem>>, %arg7: memref<16x64xf32, #tpu.memory_space<vmem>>) attributes {dimension_semantics = [#tpu.dimension_semantics<parallel>, #tpu.dimension_semantics<parallel>, #tpu.dimension_semantics<arbitrary>], iteration_bounds = array<i64: 1, 1, 1>, scalar_prefetch = 0 : i64, scratch_operands = 1 : i64, tpu.core_type = #tpu.core_type<tc>, window_params = [{transform_indices = @transform_0, window_bounds = array<i64: 16, 32>}, {transform_indices = @transform_1, window_bounds = array<i64: 32, 64>}, {transform_indices = @transform_2, window_bounds = array<i64: 1, 64>}, {transform_indices = @transform_3, window_bounds = array<i64: 16, 64>}]} {
    %c0_i32 = arith.constant 0 : i32
    %0 = arith.cmpi eq, %arg2, %c0_i32 : i32
    %1 = arith.extui %0 : i1 to i32
    %c0_i32_0 = arith.constant 0 : i32
    %2 = arith.cmpi ne, %1, %c0_i32_0 : i32
    scf.if %2 {
      %cst_10 = arith.constant 0.000000e+00 : f32
      %12 = vector.broadcast %cst_10 : f32 to vector<16x64xf32>
      %c0_11 = arith.constant 0 : index
      %c0_12 = arith.constant 0 : index
      %13 = vector.load %arg7[%c0_11, %c0_12] : memref<16x64xf32, #tpu.memory_space<vmem>>, vector<16x64xf32>
      tpu.vector_store %arg7[%c0_11, %c0_12], %12 {strides = array<i32>} : memref<16x64xf32, #tpu.memory_space<vmem>>, vector<16x64xf32>,
    } else {
    }
    %c0 = arith.constant 0 : index
    %c0_1 = arith.constant 0 : index
    %3 = vector.load %arg7[%c0, %c0_1] : memref<16x64xf32, #tpu.memory_space<vmem>>, vector<16x64xf32>
    %c0_2 = arith.constant 0 : index
    %c0_3 = arith.constant 0 : index
    %4 = vector.load %arg3[%c0_2, %c0_3] : memref<16x32xf32, #tpu.memory_space<vmem>>, vector<16x32xf32>
    %c0_4 = arith.constant 0 : index
    %c0_5 = arith.constant 0 : index
    %5 = vector.load %arg4[%c0_4, %c0_5] : memref<32x64xf32, #tpu.memory_space<vmem>>, vector<32x64xf32>
    %cst = arith.constant dense<0.000000e+00> : vector<16x64xf32>
    %6 = tpu.matmul %4, %5, %cst {dimension_numbers = #tpu.dot_dimension_numbers<[1], [0], [0], [1], [0, 0, 1, 1], [], []>} : vector<16x32xf32>, vector<32x64xf32>, vector<16x64xf32> -> vector<16x64xf32>
    %7 = arith.addf %3, %6 : vector<16x64xf32>
    %c0_6 = arith.constant 0 : index
    %c0_7 = arith.constant 0 : index
    %8 = vector.load %arg7[%c0_6, %c0_7] : memref<16x64xf32, #tpu.memory_space<vmem>>, vector<16x64xf32>
    tpu.vector_store %arg7[%c0_6, %c0_7], %7 {strides = array<i32>} : memref<16x64xf32, #tpu.memory_space<vmem>>, vector<16x64xf32>,
    %c0_i32_8 = arith.constant 0 : i32
    %9 = arith.cmpi eq, %arg2, %c0_i32_8 : i32
    %10 = arith.extui %9 : i1 to i32
    %c0_i32_9 = arith.constant 0 : i32
    %11 = arith.cmpi ne, %10, %c0_i32_9 : i32
    scf.if %11 {
      %c0_10 = arith.constant 0 : index
      %c0_11 = arith.constant 0 : index
      %12 = vector.load %arg7[%c0_10, %c0_11] : memref<16x64xf32, #tpu.memory_space<vmem>>, vector<16x64xf32>
      %c0_12 = arith.constant 0 : index
      %c0_13 = arith.constant 0 : index
      %13 = vector.load %arg5[%c0_12, %c0_13] : memref<1x64xf32, #tpu.memory_space<vmem>>, vector<1x64xf32>
      %14 = vector.broadcast %13 : vector<1x64xf32> to vector<16x64xf32>
      %15 = arith.addf %12, %14 : vector<16x64xf32>
      %cst_14 = arith.constant 0.000000e+00 : f32
      %16 = vector.broadcast %cst_14 : f32 to vector<16x64xf32>
      %17 = arith.maximumf %15, %16 : vector<16x64xf32>
      %c0_15 = arith.constant 0 : index
      %c0_16 = arith.constant 0 : index
      %18 = vector.load %arg6[%c0_15, %c0_16] : memref<16x64xf32, #tpu.memory_space<vmem>>, vector<16x64xf32>
      tpu.vector_store %arg6[%c0_15, %c0_16], %17 {strides = array<i32>} : memref<16x64xf32, #tpu.memory_space<vmem>>, vector<16x64xf32>,
    } else {
    }
    return
  }
  func.func @transform_0(%arg0: i32, %arg1: i32, %arg2: i32) -> (i32, i32) {
    %c0_i32 = arith.constant 0 : i32
    return %arg0, %arg2 : i32, i32
  }
  func.func @transform_1(%arg0: i32, %arg1: i32, %arg2: i32) -> (i32, i32) {
    %c0_i32 = arith.constant 0 : i32
    return %arg2, %arg1 : i32, i32
  }
  func.func @transform_2(%arg0: i32, %arg1: i32, %arg2: i32) -> (i32, i32) {
    %c0_i32 = arith.constant 0 : i32
    %c0_i32_0 = arith.constant 0 : i32
    return %c0_i32, %arg1 : i32, i32
  }
  func.func @transform_3(%arg0: i32, %arg1: i32, %arg2: i32) -> (i32, i32) {
    %c0_i32 = arith.constant 0 : i32
    return %arg0, %arg1 : i32, i32
  }
}

module attributes {stable_mosaic.version = 11 : i64} {
  func.func @_matmul_kernel(%arg0: i32, %arg1: i32, %arg2: i32, %arg3: memref<16x64xf32, #tpu.memory_space<vmem>>, %arg4: memref<64x32xf32, #tpu.memory_space<vmem>>, %arg5: memref<1x32xf32, #tpu.memory_space<vmem>>, %arg6: memref<16x32xf32, #tpu.memory_space<vmem>>, %arg7: memref<16x32xf32, #tpu.memory_space<vmem>>) attributes {dimension_semantics = [#tpu.dimension_semantics<parallel>, #tpu.dimension_semantics<parallel>, #tpu.dimension_semantics<arbitrary>], iteration_bounds = array<i64: 1, 1, 1>, scalar_prefetch = 0 : i64, scratch_operands = 1 : i64, tpu.core_type = #tpu.core_type<tc>, window_params = [{transform_indices = @transform_0, window_bounds = array<i64: 16, 64>}, {transform_indices = @transform_1, window_bounds = array<i64: 64, 32>}, {transform_indices = @transform_2, window_bounds = array<i64: 1, 32>}, {transform_indices = @transform_3, window_bounds = array<i64: 16, 32>}]} {
    %c0_i32 = arith.constant 0 : i32
    %0 = arith.cmpi eq, %arg2, %c0_i32 : i32
    %1 = arith.extui %0 : i1 to i32
    %c0_i32_0 = arith.constant 0 : i32
    %2 = arith.cmpi ne, %1, %c0_i32_0 : i32
    scf.if %2 {
      %cst_10 = arith.constant 0.000000e+00 : f32
      %12 = vector.broadcast %cst_10 : f32 to vector<16x32xf32>
      %c0_11 = arith.constant 0 : index
      %c0_12 = arith.constant 0 : index
      %13 = vector.load %arg7[%c0_11, %c0_12] : memref<16x32xf32, #tpu.memory_space<vmem>>, vector<16x32xf32>
      tpu.vector_store %arg7[%c0_11, %c0_12], %12 {strides = array<i32>} : memref<16x32xf32, #tpu.memory_space<vmem>>, vector<16x32xf32>,
    } else {
    }
    %c0 = arith.constant 0 : index
    %c0_1 = arith.constant 0 : index
    %3 = vector.load %arg7[%c0, %c0_1] : memref<16x32xf32, #tpu.memory_space<vmem>>, vector<16x32xf32>
    %c0_2 = arith.constant 0 : index
    %c0_3 = arith.constant 0 : index
    %4 = vector.load %arg3[%c0_2, %c0_3] : memref<16x64xf32, #tpu.memory_space<vmem>>, vector<16x64xf32>
    %c0_4 = arith.constant 0 : index
    %c0_5 = arith.constant 0 : index
    %5 = vector.load %arg4[%c0_4, %c0_5] : memref<64x32xf32, #tpu.memory_space<vmem>>, vector<64x32xf32>
    %cst = arith.constant dense<0.000000e+00> : vector<16x32xf32>
    %6 = tpu.matmul %4, %5, %cst {dimension_numbers = #tpu.dot_dimension_numbers<[1], [0], [0], [1], [0, 0, 1, 1], [], []>} : vector<16x64xf32>, vector<64x32xf32>, vector<16x32xf32> -> vector<16x32xf32>
    %7 = arith.addf %3, %6 : vector<16x32xf32>
    %c0_6 = arith.constant 0 : index
    %c0_7 = arith.constant 0 : index
    %8 = vector.load %arg7[%c0_6, %c0_7] : memref<16x32xf32, #tpu.memory_space<vmem>>, vector<16x32xf32>
    tpu.vector_store %arg7[%c0_6, %c0_7], %7 {strides = array<i32>} : memref<16x32xf32, #tpu.memory_space<vmem>>, vector<16x32xf32>,
    %c0_i32_8 = arith.constant 0 : i32
    %9 = arith.cmpi eq, %arg2, %c0_i32_8 : i32
    %10 = arith.extui %9 : i1 to i32
    %c0_i32_9 = arith.constant 0 : i32
    %11 = arith.cmpi ne, %10, %c0_i32_9 : i32
    scf.if %11 {
      %c0_10 = arith.constant 0 : index
      %c0_11 = arith.constant 0 : index
      %12 = vector.load %arg7[%c0_10, %c0_11] : memref<16x32xf32, #tpu.memory_space<vmem>>, vector<16x32xf32>
      %c0_12 = arith.constant 0 : index
      %c0_13 = arith.constant 0 : index
      %13 = vector.load %arg5[%c0_12, %c0_13] : memref<1x32xf32, #tpu.memory_space<vmem>>, vector<1x32xf32>
      %14 = vector.broadcast %13 : vector<1x32xf32> to vector<16x32xf32>
      %15 = arith.addf %12, %14 : vector<16x32xf32>
      %c0_14 = arith.constant 0 : index
      %c0_15 = arith.constant 0 : index
      %16 = vector.load %arg6[%c0_14, %c0_15] : memref<16x32xf32, #tpu.memory_space<vmem>>, vector<16x32xf32>
      tpu.vector_store %arg6[%c0_14, %c0_15], %15 {strides = array<i32>} : memref<16x32xf32, #tpu.memory_space<vmem>>, vector<16x32xf32>,
    } else {
    }
    return
  }
  func.func @transform_0(%arg0: i32, %arg1: i32, %arg2: i32) -> (i32, i32) {
    %c0_i32 = arith.constant 0 : i32
    return %arg0, %arg2 : i32, i32
  }
  func.func @transform_1(%arg0: i32, %arg1: i32, %arg2: i32) -> (i32, i32) {
    %c0_i32 = arith.constant 0 : i32
    return %arg2, %arg1 : i32, i32
  }
  func.func @transform_2(%arg0: i32, %arg1: i32, %arg2: i32) -> (i32, i32) {
    %c0_i32 = arith.constant 0 : i32
    %c0_i32_0 = arith.constant 0 : i32
    return %c0_i32, %arg1 : i32, i32
  }
  func.func @transform_3(%arg0: i32, %arg1: i32, %arg2: i32) -> (i32, i32) {
    %c0_i32 = arith.constant 0 : i32
    return %arg0, %arg1 : i32, i32
  }
}

module attributes {stable_mosaic.version = 11 : i64} {
  func.func @_matmul_kernel(%arg0: i32, %arg1: i32, %arg2: i32, %arg3: memref<16x32xf32, #tpu.memory_space<vmem>>, %arg4: memref<32x96xf32, #tpu.memory_space<vmem>>, %arg5: memref<1x96xf32, #tpu.memory_space<vmem>>, %arg6: memref<16x96xf32, #tpu.memory_space<vmem>>, %arg7: memref<16x96xf32, #tpu.memory_space<vmem>>) attributes {dimension_semantics = [#tpu.dimension_semantics<parallel>, #tpu.dimension_semantics<parallel>, #tpu.dimension_semantics<arbitrary>], iteration_bounds = array<i64: 1, 1, 1>, scalar_prefetch = 0 : i64, scratch_operands = 1 : i64, tpu.core_type = #tpu.core_type<tc>, window_params = [{transform_indices = @transform_0, window_bounds = array<i64: 16, 32>}, {transform_indices = @transform_1, window_bounds = array<i64: 32, 96>}, {transform_indices = @transform_2, window_bounds = array<i64: 1, 96>}, {transform_indices = @transform_3, window_bounds = array<i64: 16, 96>}]} {
    %c0_i32 = arith.constant 0 : i32
    %0 = arith.cmpi eq, %arg2, %c0_i32 : i32
    %1 = arith.extui %0 : i1 to i32
    %c0_i32_0 = arith.constant 0 : i32
    %2 = arith.cmpi ne, %1, %c0_i32_0 : i32
    scf.if %2 {
      %cst_10 = arith.constant 0.000000e+00 : f32
      %12 = vector.broadcast %cst_10 : f32 to vector<16x96xf32>
      %c0_11 = arith.constant 0 : index
      %c0_12 = arith.constant 0 : index
      %13 = vector.load %arg7[%c0_11, %c0_12] : memref<16x96xf32, #tpu.memory_space<vmem>>, vector<16x96xf32>
      tpu.vector_store %arg7[%c0_11, %c0_12], %12 {strides = array<i32>} : memref<16x96xf32, #tpu.memory_space<vmem>>, vector<16x96xf32>,
    } else {
    }
    %c0 = arith.constant 0 : index
    %c0_1 = arith.constant 0 : index
    %3 = vector.load %arg7[%c0, %c0_1] : memref<16x96xf32, #tpu.memory_space<vmem>>, vector<16x96xf32>
    %c0_2 = arith.constant 0 : index
    %c0_3 = arith.constant 0 : index
    %4 = vector.load %arg3[%c0_2, %c0_3] : memref<16x32xf32, #tpu.memory_space<vmem>>, vector<16x32xf32>
    %c0_4 = arith.constant 0 : index
    %c0_5 = arith.constant 0 : index
    %5 = vector.load %arg4[%c0_4, %c0_5] : memref<32x96xf32, #tpu.memory_space<vmem>>, vector<32x96xf32>
    %cst = arith.constant dense<0.000000e+00> : vector<16x96xf32>
    %6 = tpu.matmul %4, %5, %cst {dimension_numbers = #tpu.dot_dimension_numbers<[1], [0], [0], [1], [0, 0, 1, 1], [], []>} : vector<16x32xf32>, vector<32x96xf32>, vector<16x96xf32> -> vector<16x96xf32>
    %7 = arith.addf %3, %6 : vector<16x96xf32>
    %c0_6 = arith.constant 0 : index
    %c0_7 = arith.constant 0 : index
    %8 = vector.load %arg7[%c0_6, %c0_7] : memref<16x96xf32, #tpu.memory_space<vmem>>, vector<16x96xf32>
    tpu.vector_store %arg7[%c0_6, %c0_7], %7 {strides = array<i32>} : memref<16x96xf32, #tpu.memory_space<vmem>>, vector<16x96xf32>,
    %c0_i32_8 = arith.constant 0 : i32
    %9 = arith.cmpi eq, %arg2, %c0_i32_8 : i32
    %10 = arith.extui %9 : i1 to i32
    %c0_i32_9 = arith.constant 0 : i32
    %11 = arith.cmpi ne, %10, %c0_i32_9 : i32
    scf.if %11 {
      %c0_10 = arith.constant 0 : index
      %c0_11 = arith.constant 0 : index
      %12 = vector.load %arg7[%c0_10, %c0_11] : memref<16x96xf32, #tpu.memory_space<vmem>>, vector<16x96xf32>
      %c0_12 = arith.constant 0 : index
      %c0_13 = arith.constant 0 : index
      %13 = vector.load %arg5[%c0_12, %c0_13] : memref<1x96xf32, #tpu.memory_space<vmem>>, vector<1x96xf32>
      %14 = vector.broadcast %13 : vector<1x96xf32> to vector<16x96xf32>
      %15 = arith.addf %12, %14 : vector<16x96xf32>
      %c0_14 = arith.constant 0 : index
      %c0_15 = arith.constant 0 : index
      %16 = vector.load %arg6[%c0_14, %c0_15] : memref<16x96xf32, #tpu.memory_space<vmem>>, vector<16x96xf32>
      tpu.vector_store %arg6[%c0_14, %c0_15], %15 {strides = array<i32>} : memref<16x96xf32, #tpu.memory_space<vmem>>, vector<16x96xf32>,
    } else {
    }
    return
  }
  func.func @transform_0(%arg0: i32, %arg1: i32, %arg2: i32) -> (i32, i32) {
    %c0_i32 = arith.constant 0 : i32
    return %arg0, %arg2 : i32, i32
  }
  func.func @transform_1(%arg0: i32, %arg1: i32, %arg2: i32) -> (i32, i32) {
    %c0_i32 = arith.constant 0 : i32
    return %arg2, %arg1 : i32, i32
  }
  func.func @transform_2(%arg0: i32, %arg1: i32, %arg2: i32) -> (i32, i32) {
    %c0_i32 = arith.constant 0 : i32
    %c0_i32_0 = arith.constant 0 : i32
    return %c0_i32, %arg1 : i32, i32
  }
  func.func @transform_3(%arg0: i32, %arg1: i32, %arg2: i32) -> (i32, i32) {
    %c0_i32 = arith.constant 0 : i32
    return %arg0, %arg1 : i32, i32
  }
}

module attributes {stable_mosaic.version = 11 : i64} {
  func.func @_linear_res_ln_kernel(%arg0: i32, %arg1: i32, %arg2: memref<16x32xf32, #tpu.memory_space<vmem>>, %arg3: memref<32x32xf32, #tpu.memory_space<vmem>>, %arg4: memref<1x32xf32, #tpu.memory_space<vmem>>, %arg5: memref<16x32xf32, #tpu.memory_space<vmem>>, %arg6: memref<1x32xf32, #tpu.memory_space<vmem>>, %arg7: memref<1x32xf32, #tpu.memory_space<vmem>>, %arg8: memref<16x32xf32, #tpu.memory_space<vmem>>, %arg9: memref<16x32xf32, #tpu.memory_space<vmem>>) attributes {dimension_semantics = [#tpu.dimension_semantics<parallel>, #tpu.dimension_semantics<arbitrary>], iteration_bounds = array<i64: 1, 1>, scalar_prefetch = 0 : i64, scratch_operands = 1 : i64, tpu.core_type = #tpu.core_type<tc>, window_params = [{transform_indices = @transform_0, window_bounds = array<i64: 16, 32>}, {transform_indices = @transform_1, window_bounds = array<i64: 32, 32>}, {pipeline_mode = #tpu.pipeline_mode<synchronous>, transform_indices = @transform_2, window_bounds = array<i64: 1, 32>}, {transform_indices = @transform_3, window_bounds = array<i64: 16, 32>}, {pipeline_mode = #tpu.pipeline_mode<synchronous>, transform_indices = @transform_4, window_bounds = array<i64: 1, 32>}, {pipeline_mode = #tpu.pipeline_mode<synchronous>, transform_indices = @transform_5, window_bounds = array<i64: 1, 32>}, {transform_indices = @transform_6, window_bounds = array<i64: 16, 32>}]} {
    %c0_i32 = arith.constant 0 : i32
    %0 = arith.cmpi eq, %arg1, %c0_i32 : i32
    %1 = arith.extui %0 : i1 to i32
    %c0_i32_0 = arith.constant 0 : i32
    %2 = arith.cmpi ne, %1, %c0_i32_0 : i32
    scf.if %2 {
      %cst_10 = arith.constant 0.000000e+00 : f32
      %12 = vector.broadcast %cst_10 : f32 to vector<16x32xf32>
      %c0_11 = arith.constant 0 : index
      %c0_12 = arith.constant 0 : index
      %13 = vector.load %arg9[%c0_11, %c0_12] : memref<16x32xf32, #tpu.memory_space<vmem>>, vector<16x32xf32>
      tpu.vector_store %arg9[%c0_11, %c0_12], %12 {strides = array<i32>} : memref<16x32xf32, #tpu.memory_space<vmem>>, vector<16x32xf32>,
    } else {
    }
    %c0 = arith.constant 0 : index
    %c0_1 = arith.constant 0 : index
    %3 = vector.load %arg9[%c0, %c0_1] : memref<16x32xf32, #tpu.memory_space<vmem>>, vector<16x32xf32>
    %c0_2 = arith.constant 0 : index
    %c0_3 = arith.constant 0 : index
    %4 = vector.load %arg2[%c0_2, %c0_3] : memref<16x32xf32, #tpu.memory_space<vmem>>, vector<16x32xf32>
    %c0_4 = arith.constant 0 : index
    %c0_5 = arith.constant 0 : index
    %5 = vector.load %arg3[%c0_4, %c0_5] : memref<32x32xf32, #tpu.memory_space<vmem>>, vector<32x32xf32>
    %cst = arith.constant dense<0.000000e+00> : vector<16x32xf32>
    %6 = tpu.matmul %4, %5, %cst {dimension_numbers = #tpu.dot_dimension_numbers<[1], [0], [0], [1], [0, 0, 1, 1], [], []>} : vector<16x32xf32>, vector<32x32xf32>, vector<16x32xf32> -> vector<16x32xf32>
    %7 = arith.addf %3, %6 : vector<16x32xf32>
    %c0_6 = arith.constant 0 : index
    %c0_7 = arith.constant 0 : index
    %8 = vector.load %arg9[%c0_6, %c0_7] : memref<16x32xf32, #tpu.memory_space<vmem>>, vector<16x32xf32>
    tpu.vector_store %arg9[%c0_6, %c0_7], %7 {strides = array<i32>} : memref<16x32xf32, #tpu.memory_space<vmem>>, vector<16x32xf32>,
    %c0_i32_8 = arith.constant 0 : i32
    %9 = arith.cmpi eq, %arg1, %c0_i32_8 : i32
    %10 = arith.extui %9 : i1 to i32
    %c0_i32_9 = arith.constant 0 : i32
    %11 = arith.cmpi ne, %10, %c0_i32_9 : i32
    scf.if %11 {
      %c0_10 = arith.constant 0 : index
      %c0_11 = arith.constant 0 : index
      %12 = vector.load %arg9[%c0_10, %c0_11] : memref<16x32xf32, #tpu.memory_space<vmem>>, vector<16x32xf32>
      %c0_12 = arith.constant 0 : index
      %c0_13 = arith.constant 0 : index
      %13 = vector.load %arg4[%c0_12, %c0_13] : memref<1x32xf32, #tpu.memory_space<vmem>>, vector<1x32xf32>
      %14 = vector.broadcast %13 : vector<1x32xf32> to vector<16x32xf32>
      %15 = arith.addf %12, %14 : vector<16x32xf32>
      %c0_14 = arith.constant 0 : index
      %c0_15 = arith.constant 0 : index
      %16 = vector.load %arg5[%c0_14, %c0_15] : memref<16x32xf32, #tpu.memory_space<vmem>>, vector<16x32xf32>
      %17 = arith.addf %15, %16 : vector<16x32xf32>
      %cst_16 = arith.constant dense<0.000000e+00> : vector<16xf32>
      %18 = vector.multi_reduction <add>, %17, %cst_16 [1] : vector<16x32xf32> to vector<16xf32>
      %19 = vector.shape_cast %18 : vector<16xf32> to vector<16x1xf32>
      %cst_17 = arith.constant 3.200000e+01 : f32
      %20 = vector.broadcast %cst_17 : f32 to vector<16x1xf32>
      %21 = arith.divf %19, %20 : vector<16x1xf32>
      %22 = vector.broadcast %21 : vector<16x1xf32> to vector<16x32xf32>
      %23 = arith.subf %17, %22 : vector<16x32xf32>
      %24 = arith.mulf %23, %23 : vector<16x32xf32>
      %cst_18 = arith.constant dense<0.000000e+00> : vector<16xf32>
      %25 = vector.multi_reduction <add>, %24, %cst_18 [1] : vector<16x32xf32> to vector<16xf32>
      %26 = vector.shape_cast %25 : vector<16xf32> to vector<16x1xf32>
      %cst_19 = arith.constant 3.200000e+01 : f32
      %27 = vector.broadcast %cst_19 : f32 to vector<16x1xf32>
      %28 = arith.divf %26, %27 : vector<16x1xf32>
      %cst_20 = arith.constant 9.99999974E-6 : f32
      %29 = vector.broadcast %cst_20 : f32 to vector<16x1xf32>
      %30 = arith.addf %28, %29 : vector<16x1xf32>
      %31 = math.rsqrt %30 : vector<16x1xf32>
      %32 = vector.broadcast %31 : vector<16x1xf32> to vector<16x32xf32>
      %33 = arith.mulf %23, %32 : vector<16x32xf32>
      %c0_21 = arith.constant 0 : index
      %c0_22 = arith.constant 0 : index
      %34 = vector.load %arg6[%c0_21, %c0_22] : memref<1x32xf32, #tpu.memory_space<vmem>>, vector<1x32xf32>
      %35 = vector.broadcast %34 : vector<1x32xf32> to vector<16x32xf32>
      %36 = arith.mulf %33, %35 : vector<16x32xf32>
      %c0_23 = arith.constant 0 : index
      %c0_24 = arith.constant 0 : index
      %37 = vector.load %arg7[%c0_23, %c0_24] : memref<1x32xf32, #tpu.memory_space<vmem>>, vector<1x32xf32>
      %38 = vector.broadcast %37 : vector<1x32xf32> to vector<16x32xf32>
      %39 = arith.addf %36, %38 : vector<16x32xf32>
      %c0_25 = arith.constant 0 : index
      %c0_26 = arith.constant 0 : index
      %40 = vector.load %arg8[%c0_25, %c0_26] : memref<16x32xf32, #tpu.memory_space<vmem>>, vector<16x32xf32>
      tpu.vector_store %arg8[%c0_25, %c0_26], %39 {strides = array<i32>} : memref<16x32xf32, #tpu.memory_space<vmem>>, vector<16x32xf32>,
    } else {
    }
    return
  }
  func.func @transform_0(%arg0: i32, %arg1: i32) -> (i32, i32) {
    %c0_i32 = arith.constant 0 : i32
    return %arg0, %arg1 : i32, i32
  }
  func.func @transform_1(%arg0: i32, %arg1: i32) -> (i32, i32) {
    %c0_i32 = arith.constant 0 : i32
    %c0_i32_0 = arith.constant 0 : i32
    return %arg1, %c0_i32 : i32, i32
  }
  func.func @transform_2(%arg0: i32, %arg1: i32) -> (i32, i32) {
    %c0_i32 = arith.constant 0 : i32
    %c0_i32_0 = arith.constant 0 : i32
    %c0_i32_1 = arith.constant 0 : i32
    return %c0_i32, %c0_i32_0 : i32, i32
  }
  func.func @transform_3(%arg0: i32, %arg1: i32) -> (i32, i32) {
    %c0_i32 = arith.constant 0 : i32
    %c0_i32_0 = arith.constant 0 : i32
    return %arg0, %c0_i32 : i32, i32
  }
  func.func @transform_4(%arg0: i32, %arg1: i32) -> (i32, i32) {
    %c0_i32 = arith.constant 0 : i32
    %c0_i32_0 = arith.constant 0 : i32
    %c0_i32_1 = arith.constant 0 : i32
    return %c0_i32, %c0_i32_0 : i32, i32
  }
  func.func @transform_5(%arg0: i32, %arg1: i32) -> (i32, i32) {
    %c0_i32 = arith.constant 0 : i32
    %c0_i32_0 = arith.constant 0 : i32
    %c0_i32_1 = arith.constant 0 : i32
    return %c0_i32, %c0_i32_0 : i32, i32
  }
  func.func @transform_6(%arg0: i32, %arg1: i32) -> (i32, i32) {
    %c0_i32 = arith.constant 0 : i32
    %c0_i32_0 = arith.constant 0 : i32
    return %arg0, %c0_i32 : i32, i32
  }
}

module attributes {stable_mosaic.version = 11 : i64} {
  func.func @_linear_res_ln_kernel(%arg0: i32, %arg1: i32, %arg2: memref<16x64xf32, #tpu.memory_space<vmem>>, %arg3: memref<64x32xf32, #tpu.memory_space<vmem>>, %arg4: memref<1x32xf32, #tpu.memory_space<vmem>>, %arg5: memref<16x32xf32, #tpu.memory_space<vmem>>, %arg6: memref<1x32xf32, #tpu.memory_space<vmem>>, %arg7: memref<1x32xf32, #tpu.memory_space<vmem>>, %arg8: memref<16x32xf32, #tpu.memory_space<vmem>>, %arg9: memref<16x32xf32, #tpu.memory_space<vmem>>) attributes {dimension_semantics = [#tpu.dimension_semantics<parallel>, #tpu.dimension_semantics<arbitrary>], iteration_bounds = array<i64: 1, 1>, scalar_prefetch = 0 : i64, scratch_operands = 1 : i64, tpu.core_type = #tpu.core_type<tc>, window_params = [{transform_indices = @transform_0, window_bounds = array<i64: 16, 64>}, {transform_indices = @transform_1, window_bounds = array<i64: 64, 32>}, {pipeline_mode = #tpu.pipeline_mode<synchronous>, transform_indices = @transform_2, window_bounds = array<i64: 1, 32>}, {transform_indices = @transform_3, window_bounds = array<i64: 16, 32>}, {pipeline_mode = #tpu.pipeline_mode<synchronous>, transform_indices = @transform_4, window_bounds = array<i64: 1, 32>}, {pipeline_mode = #tpu.pipeline_mode<synchronous>, transform_indices = @transform_5, window_bounds = array<i64: 1, 32>}, {transform_indices = @transform_6, window_bounds = array<i64: 16, 32>}]} {
    %c0_i32 = arith.constant 0 : i32
    %0 = arith.cmpi eq, %arg1, %c0_i32 : i32
    %1 = arith.extui %0 : i1 to i32
    %c0_i32_0 = arith.constant 0 : i32
    %2 = arith.cmpi ne, %1, %c0_i32_0 : i32
    scf.if %2 {
      %cst_10 = arith.constant 0.000000e+00 : f32
      %12 = vector.broadcast %cst_10 : f32 to vector<16x32xf32>
      %c0_11 = arith.constant 0 : index
      %c0_12 = arith.constant 0 : index
      %13 = vector.load %arg9[%c0_11, %c0_12] : memref<16x32xf32, #tpu.memory_space<vmem>>, vector<16x32xf32>
      tpu.vector_store %arg9[%c0_11, %c0_12], %12 {strides = array<i32>} : memref<16x32xf32, #tpu.memory_space<vmem>>, vector<16x32xf32>,
    } else {
    }
    %c0 = arith.constant 0 : index
    %c0_1 = arith.constant 0 : index
    %3 = vector.load %arg9[%c0, %c0_1] : memref<16x32xf32, #tpu.memory_space<vmem>>, vector<16x32xf32>
    %c0_2 = arith.constant 0 : index
    %c0_3 = arith.constant 0 : index
    %4 = vector.load %arg2[%c0_2, %c0_3] : memref<16x64xf32, #tpu.memory_space<vmem>>, vector<16x64xf32>
    %c0_4 = arith.constant 0 : index
    %c0_5 = arith.constant 0 : index
    %5 = vector.load %arg3[%c0_4, %c0_5] : memref<64x32xf32, #tpu.memory_space<vmem>>, vector<64x32xf32>
    %cst = arith.constant dense<0.000000e+00> : vector<16x32xf32>
    %6 = tpu.matmul %4, %5, %cst {dimension_numbers = #tpu.dot_dimension_numbers<[1], [0], [0], [1], [0, 0, 1, 1], [], []>} : vector<16x64xf32>, vector<64x32xf32>, vector<16x32xf32> -> vector<16x32xf32>
    %7 = arith.addf %3, %6 : vector<16x32xf32>
    %c0_6 = arith.constant 0 : index
    %c0_7 = arith.constant 0 : index
    %8 = vector.load %arg9[%c0_6, %c0_7] : memref<16x32xf32, #tpu.memory_space<vmem>>, vector<16x32xf32>
    tpu.vector_store %arg9[%c0_6, %c0_7], %7 {strides = array<i32>} : memref<16x32xf32, #tpu.memory_space<vmem>>, vector<16x32xf32>,
    %c0_i32_8 = arith.constant 0 : i32
    %9 = arith.cmpi eq, %arg1, %c0_i32_8 : i32
    %10 = arith.extui %9 : i1 to i32
    %c0_i32_9 = arith.constant 0 : i32
    %11 = arith.cmpi ne, %10, %c0_i32_9 : i32
    scf.if %11 {
      %c0_10 = arith.constant 0 : index
      %c0_11 = arith.constant 0 : index
      %12 = vector.load %arg9[%c0_10, %c0_11] : memref<16x32xf32, #tpu.memory_space<vmem>>, vector<16x32xf32>
      %c0_12 = arith.constant 0 : index
      %c0_13 = arith.constant 0 : index
      %13 = vector.load %arg4[%c0_12, %c0_13] : memref<1x32xf32, #tpu.memory_space<vmem>>, vector<1x32xf32>
      %14 = vector.broadcast %13 : vector<1x32xf32> to vector<16x32xf32>
      %15 = arith.addf %12, %14 : vector<16x32xf32>
      %c0_14 = arith.constant 0 : index
      %c0_15 = arith.constant 0 : index
      %16 = vector.load %arg5[%c0_14, %c0_15] : memref<16x32xf32, #tpu.memory_space<vmem>>, vector<16x32xf32>
      %17 = arith.addf %15, %16 : vector<16x32xf32>
      %cst_16 = arith.constant dense<0.000000e+00> : vector<16xf32>
      %18 = vector.multi_reduction <add>, %17, %cst_16 [1] : vector<16x32xf32> to vector<16xf32>
      %19 = vector.shape_cast %18 : vector<16xf32> to vector<16x1xf32>
      %cst_17 = arith.constant 3.200000e+01 : f32
      %20 = vector.broadcast %cst_17 : f32 to vector<16x1xf32>
      %21 = arith.divf %19, %20 : vector<16x1xf32>
      %22 = vector.broadcast %21 : vector<16x1xf32> to vector<16x32xf32>
      %23 = arith.subf %17, %22 : vector<16x32xf32>
      %24 = arith.mulf %23, %23 : vector<16x32xf32>
      %cst_18 = arith.constant dense<0.000000e+00> : vector<16xf32>
      %25 = vector.multi_reduction <add>, %24, %cst_18 [1] : vector<16x32xf32> to vector<16xf32>
      %26 = vector.shape_cast %25 : vector<16xf32> to vector<16x1xf32>
      %cst_19 = arith.constant 3.200000e+01 : f32
      %27 = vector.broadcast %cst_19 : f32 to vector<16x1xf32>
      %28 = arith.divf %26, %27 : vector<16x1xf32>
      %cst_20 = arith.constant 9.99999974E-6 : f32
      %29 = vector.broadcast %cst_20 : f32 to vector<16x1xf32>
      %30 = arith.addf %28, %29 : vector<16x1xf32>
      %31 = math.rsqrt %30 : vector<16x1xf32>
      %32 = vector.broadcast %31 : vector<16x1xf32> to vector<16x32xf32>
      %33 = arith.mulf %23, %32 : vector<16x32xf32>
      %c0_21 = arith.constant 0 : index
      %c0_22 = arith.constant 0 : index
      %34 = vector.load %arg6[%c0_21, %c0_22] : memref<1x32xf32, #tpu.memory_space<vmem>>, vector<1x32xf32>
      %35 = vector.broadcast %34 : vector<1x32xf32> to vector<16x32xf32>
      %36 = arith.mulf %33, %35 : vector<16x32xf32>
      %c0_23 = arith.constant 0 : index
      %c0_24 = arith.constant 0 : index
      %37 = vector.load %arg7[%c0_23, %c0_24] : memref<1x32xf32, #tpu.memory_space<vmem>>, vector<1x32xf32>
      %38 = vector.broadcast %37 : vector<1x32xf32> to vector<16x32xf32>
      %39 = arith.addf %36, %38 : vector<16x32xf32>
      %c0_25 = arith.constant 0 : index
      %c0_26 = arith.constant 0 : index
      %40 = vector.load %arg8[%c0_25, %c0_26] : memref<16x32xf32, #tpu.memory_space<vmem>>, vector<16x32xf32>
      tpu.vector_store %arg8[%c0_25, %c0_26], %39 {strides = array<i32>} : memref<16x32xf32, #tpu.memory_space<vmem>>, vector<16x32xf32>,
    } else {
    }
    return
  }
  func.func @transform_0(%arg0: i32, %arg1: i32) -> (i32, i32) {
    %c0_i32 = arith.constant 0 : i32
    return %arg0, %arg1 : i32, i32
  }
  func.func @transform_1(%arg0: i32, %arg1: i32) -> (i32, i32) {
    %c0_i32 = arith.constant 0 : i32
    %c0_i32_0 = arith.constant 0 : i32
    return %arg1, %c0_i32 : i32, i32
  }
  func.func @transform_2(%arg0: i32, %arg1: i32) -> (i32, i32) {
    %c0_i32 = arith.constant 0 : i32
    %c0_i32_0 = arith.constant 0 : i32
    %c0_i32_1 = arith.constant 0 : i32
    return %c0_i32, %c0_i32_0 : i32, i32
  }
  func.func @transform_3(%arg0: i32, %arg1: i32) -> (i32, i32) {
    %c0_i32 = arith.constant 0 : i32
    %c0_i32_0 = arith.constant 0 : i32
    return %arg0, %c0_i32 : i32, i32
  }
  func.func @transform_4(%arg0: i32, %arg1: i32) -> (i32, i32) {
    %c0_i32 = arith.constant 0 : i32
    %c0_i32_0 = arith.constant 0 : i32
    %c0_i32_1 = arith.constant 0 : i32
    return %c0_i32, %c0_i32_0 : i32, i32
  }
  func.func @transform_5(%arg0: i32, %arg1: i32) -> (i32, i32) {
    %c0_i32 = arith.constant 0 : i32
    %c0_i32_0 = arith.constant 0 : i32
    %c0_i32_1 = arith.constant 0 : i32
    return %c0_i32, %c0_i32_0 : i32, i32
  }
  func.func @transform_6(%arg0: i32, %arg1: i32) -> (i32, i32) {
    %c0_i32 = arith.constant 0 : i32
    %c0_i32_0 = arith.constant 0 : i32
    return %arg0, %c0_i32 : i32, i32
  }
}

module attributes {stable_mosaic.version = 11 : i64} {
  func.func @_linear_res_ln_kernel(%arg0: i32, %arg1: i32, %arg2: memref<16x64xf32, #tpu.memory_space<vmem>>, %arg3: memref<64x32xf32, #tpu.memory_space<vmem>>, %arg4: memref<1x32xf32, #tpu.memory_space<vmem>>, %arg5: memref<16x32xf32, #tpu.memory_space<vmem>>, %arg6: memref<1x32xf32, #tpu.memory_space<vmem>>, %arg7: memref<1x32xf32, #tpu.memory_space<vmem>>, %arg8: memref<16x32xf32, #tpu.memory_space<vmem>>, %arg9: memref<16x32xf32, #tpu.memory_space<vmem>>) attributes {dimension_semantics = [#tpu.dimension_semantics<parallel>, #tpu.dimension_semantics<arbitrary>], iteration_bounds = array<i64: 1, 1>, scalar_prefetch = 0 : i64, scratch_operands = 1 : i64, tpu.core_type = #tpu.core_type<tc>, window_params = [{transform_indices = @transform_0, window_bounds = array<i64: 16, 64>}, {transform_indices = @transform_1, window_bounds = array<i64: 64, 32>}, {pipeline_mode = #tpu.pipeline_mode<synchronous>, transform_indices = @transform_2, window_bounds = array<i64: 1, 32>}, {transform_indices = @transform_3, window_bounds = array<i64: 16, 32>}, {pipeline_mode = #tpu.pipeline_mode<synchronous>, transform_indices = @transform_4, window_bounds = array<i64: 1, 32>}, {pipeline_mode = #tpu.pipeline_mode<synchronous>, transform_indices = @transform_5, window_bounds = array<i64: 1, 32>}, {transform_indices = @transform_6, window_bounds = array<i64: 16, 32>}]} {
    %c0_i32 = arith.constant 0 : i32
    %0 = arith.cmpi eq, %arg1, %c0_i32 : i32
    %1 = arith.extui %0 : i1 to i32
    %c0_i32_0 = arith.constant 0 : i32
    %2 = arith.cmpi ne, %1, %c0_i32_0 : i32
    scf.if %2 {
      %cst_10 = arith.constant 0.000000e+00 : f32
      %12 = vector.broadcast %cst_10 : f32 to vector<16x32xf32>
      %c0_11 = arith.constant 0 : index
      %c0_12 = arith.constant 0 : index
      %13 = vector.load %arg9[%c0_11, %c0_12] : memref<16x32xf32, #tpu.memory_space<vmem>>, vector<16x32xf32>
      tpu.vector_store %arg9[%c0_11, %c0_12], %12 {strides = array<i32>} : memref<16x32xf32, #tpu.memory_space<vmem>>, vector<16x32xf32>,
    } else {
    }
    %c0 = arith.constant 0 : index
    %c0_1 = arith.constant 0 : index
    %3 = vector.load %arg9[%c0, %c0_1] : memref<16x32xf32, #tpu.memory_space<vmem>>, vector<16x32xf32>
    %c0_2 = arith.constant 0 : index
    %c0_3 = arith.constant 0 : index
    %4 = vector.load %arg2[%c0_2, %c0_3] : memref<16x64xf32, #tpu.memory_space<vmem>>, vector<16x64xf32>
    %c0_4 = arith.constant 0 : index
    %c0_5 = arith.constant 0 : index
    %5 = vector.load %arg3[%c0_4, %c0_5] : memref<64x32xf32, #tpu.memory_space<vmem>>, vector<64x32xf32>
    %cst = arith.constant dense<0.000000e+00> : vector<16x32xf32>
    %6 = tpu.matmul %4, %5, %cst {dimension_numbers = #tpu.dot_dimension_numbers<[1], [0], [0], [1], [0, 0, 1, 1], [], []>} : vector<16x64xf32>, vector<64x32xf32>, vector<16x32xf32> -> vector<16x32xf32>
    %7 = arith.addf %3, %6 : vector<16x32xf32>
    %c0_6 = arith.constant 0 : index
    %c0_7 = arith.constant 0 : index
    %8 = vector.load %arg9[%c0_6, %c0_7] : memref<16x32xf32, #tpu.memory_space<vmem>>, vector<16x32xf32>
    tpu.vector_store %arg9[%c0_6, %c0_7], %7 {strides = array<i32>} : memref<16x32xf32, #tpu.memory_space<vmem>>, vector<16x32xf32>,
    %c0_i32_8 = arith.constant 0 : i32
    %9 = arith.cmpi eq, %arg1, %c0_i32_8 : i32
    %10 = arith.extui %9 : i1 to i32
    %c0_i32_9 = arith.constant 0 : i32
    %11 = arith.cmpi ne, %10, %c0_i32_9 : i32
    scf.if %11 {
      %c0_10 = arith.constant 0 : index
      %c0_11 = arith.constant 0 : index
      %12 = vector.load %arg9[%c0_10, %c0_11] : memref<16x32xf32, #tpu.memory_space<vmem>>, vector<16x32xf32>
      %c0_12 = arith.constant 0 : index
      %c0_13 = arith.constant 0 : index
      %13 = vector.load %arg4[%c0_12, %c0_13] : memref<1x32xf32, #tpu.memory_space<vmem>>, vector<1x32xf32>
      %14 = vector.broadcast %13 : vector<1x32xf32> to vector<16x32xf32>
      %15 = arith.addf %12, %14 : vector<16x32xf32>
      %c0_14 = arith.constant 0 : index
      %c0_15 = arith.constant 0 : index
      %16 = vector.load %arg5[%c0_14, %c0_15] : memref<16x32xf32, #tpu.memory_space<vmem>>, vector<16x32xf32>
      %17 = arith.addf %15, %16 : vector<16x32xf32>
      %cst_16 = arith.constant dense<0.000000e+00> : vector<16xf32>
      %18 = vector.multi_reduction <add>, %17, %cst_16 [1] : vector<16x32xf32> to vector<16xf32>
      %19 = vector.shape_cast %18 : vector<16xf32> to vector<16x1xf32>
      %cst_17 = arith.constant 3.200000e+01 : f32
      %20 = vector.broadcast %cst_17 : f32 to vector<16x1xf32>
      %21 = arith.divf %19, %20 : vector<16x1xf32>
      %22 = vector.broadcast %21 : vector<16x1xf32> to vector<16x32xf32>
      %23 = arith.subf %17, %22 : vector<16x32xf32>
      %24 = arith.mulf %23, %23 : vector<16x32xf32>
      %cst_18 = arith.constant dense<0.000000e+00> : vector<16xf32>
      %25 = vector.multi_reduction <add>, %24, %cst_18 [1] : vector<16x32xf32> to vector<16xf32>
      %26 = vector.shape_cast %25 : vector<16xf32> to vector<16x1xf32>
      %cst_19 = arith.constant 3.200000e+01 : f32
      %27 = vector.broadcast %cst_19 : f32 to vector<16x1xf32>
      %28 = arith.divf %26, %27 : vector<16x1xf32>
      %cst_20 = arith.constant 9.99999974E-6 : f32
      %29 = vector.broadcast %cst_20 : f32 to vector<16x1xf32>
      %30 = arith.addf %28, %29 : vector<16x1xf32>
      %31 = math.rsqrt %30 : vector<16x1xf32>
      %32 = vector.broadcast %31 : vector<16x1xf32> to vector<16x32xf32>
      %33 = arith.mulf %23, %32 : vector<16x32xf32>
      %c0_21 = arith.constant 0 : index
      %c0_22 = arith.constant 0 : index
      %34 = vector.load %arg6[%c0_21, %c0_22] : memref<1x32xf32, #tpu.memory_space<vmem>>, vector<1x32xf32>
      %35 = vector.broadcast %34 : vector<1x32xf32> to vector<16x32xf32>
      %36 = arith.mulf %33, %35 : vector<16x32xf32>
      %c0_23 = arith.constant 0 : index
      %c0_24 = arith.constant 0 : index
      %37 = vector.load %arg7[%c0_23, %c0_24] : memref<1x32xf32, #tpu.memory_space<vmem>>, vector<1x32xf32>
      %38 = vector.broadcast %37 : vector<1x32xf32> to vector<16x32xf32>
      %39 = arith.addf %36, %38 : vector<16x32xf32>
      %c0_25 = arith.constant 0 : index
      %c0_26 = arith.constant 0 : index
      %40 = vector.load %arg8[%c0_25, %c0_26] : memref<16x32xf32, #tpu.memory_space<vmem>>, vector<16x32xf32>
      tpu.vector_store %arg8[%c0_25, %c0_26], %39 {strides = array<i32>} : memref<16x32xf32, #tpu.memory_space<vmem>>, vector<16x32xf32>,
    } else {
    }
    return
  }
  func.func @transform_0(%arg0: i32, %arg1: i32) -> (i32, i32) {
    %c0_i32 = arith.constant 0 : i32
    return %arg0, %arg1 : i32, i32
  }
  func.func @transform_1(%arg0: i32, %arg1: i32) -> (i32, i32) {
    %c0_i32 = arith.constant 0 : i32
    %c0_i32_0 = arith.constant 0 : i32
    return %arg1, %c0_i32 : i32, i32
  }
  func.func @transform_2(%arg0: i32, %arg1: i32) -> (i32, i32) {
    %c0_i32 = arith.constant 0 : i32
    %c0_i32_0 = arith.constant 0 : i32
    %c0_i32_1 = arith.constant 0 : i32
    return %c0_i32, %c0_i32_0 : i32, i32
  }
  func.func @transform_3(%arg0: i32, %arg1: i32) -> (i32, i32) {
    %c0_i32 = arith.constant 0 : i32
    %c0_i32_0 = arith.constant 0 : i32
    return %arg0, %c0_i32 : i32, i32
  }
  func.func @transform_4(%arg0: i32, %arg1: i32) -> (i32, i32) {
    %c0_i32 = arith.constant 0 : i32
    %c0_i32_0 = arith.constant 0 : i32
    %c0_i32_1 = arith.constant 0 : i32
    return %c0_i32, %c0_i32_0 : i32, i32
  }
  func.func @transform_5(%arg0: i32, %arg1: i32) -> (i32, i32) {
    %c0_i32 = arith.constant 0 : i32
    %c0_i32_0 = arith.constant 0 : i32
    %c0_i32_1 = arith.constant 0 : i32
    return %c0_i32, %c0_i32_0 : i32, i32
  }
  func.func @transform_6(%arg0: i32, %arg1: i32) -> (i32, i32) {
    %c0_i32 = arith.constant 0 : i32
    %c0_i32_0 = arith.constant 0 : i32
    return %arg0, %c0_i32 : i32, i32
  }
}

</mosaic_0001>

<bundles_post_ra>
// kernel: encoder_forward.18
= control target key start
LH: loop header
LB: loop body
LE: loop exit
PB: predicated region body
PF: predicated region fallthrough
CT: control target
= control target key end

     0   :  { %8 = vsyncpa [#allocation4], 0  ;;  %s340_s0 = inlined_call_operand.hbm [shape: f32[16,8], index: 0, kind: input, shape index: {}]   ;;  %s341_s1 = inlined_call_operand.hbm [shape: f32[8,96], index: 1, kind: input, shape index: {}]   ;;  %s342_s2 = inlined_call_operand.hbm [shape: f32[1,96], index: 2, kind: input, shape index: {}]   ;;  %s343_s3 = inlined_call_operand.vmem [shape: f32[16,96], index: 3, kind: output, shape index: {}]  }
   0x1   :  { %9 = vsyncpa [#allocation6], 0  ;;  %s259_s12 = smov [#allocation5]   ;;  %s260_s14 = smov [#allocation3]  }
   0x2   :  { %s28_s13 = sshll.u32 %s259_s12, 4  ;;  %s15_s15 = sshll.u32 %s260_s14, 4  ;;  %s29_s13 = int_to_ptr.vmem [resolvable:$true] %s28_s13  ;;  %s285_s15 = int_to_ptr.vmem [resolvable:$true] %s15_s15 }
   0x3   :  { %s189_s18 = scalar_lea.hbm %s341_s1, 128 }
   0x4   :  { %p190_p0 = scmp.ne.s32.totalorder %s341_s1, %s189_s18  ;;  %p193_p1 = scmp.lt.u32.totalorder %s189_s18, %s341_s1 }
   0x6   :  { %p195_p2 = pnand %p193_p1, %p190_p0 }
   0x8   :  { %198 = shalt.err (!%p195_p2)
}
   0x9   :  { %s199_s23 = scalar_lea.vmem %s29_s13, 128  ;;  %p204_p4 = scmp.lt.s32.totalorder %s29_s13, %s29_s13 }
   0xa   :  { %p200_p3 = scmp.ne.s32.totalorder %s29_s13, %s199_s23  ;;  %p205_p5 = scmp.lt.s32.totalorder %s199_s23, %s199_s23 }
   0xc   :  { %p206_p6 = por %p205_p5, %p204_p4 }
   0xe   :  { %p207_p7 = pnand %p206_p6, %p200_p3 }
  0x10   :  { %210 = shalt.err (!%p207_p7)
}
  0x11   :  { %31 = dma.hbm_to_vmem [thread:$0]  %s341_s1, 128, %s29_s13, [#allocation6]  }
  0x12   :  { %s211_s28 = scalar_lea.hbm %s340_s0, 256 }
  0x13   :  { %p212_p8 = scmp.ne.s32.totalorder %s340_s0, %s211_s28  ;;  %p215_p9 = scmp.lt.u32.totalorder %s211_s28, %s340_s0 }
  0x15   :  { %p217_p10 = pnand %p215_p9, %p212_p8 }
  0x17   :  { %220 = shalt.err (!%p217_p10)
}
  0x18   :  { %s221_s6 = scalar_lea.vmem %s285_s15, 256  ;;  %p226_p12 = scmp.lt.s32.totalorder %s285_s15, %s285_s15 }
  0x19   :  { %p222_p11 = scmp.ne.s32.totalorder %s285_s15, %s221_s6  ;;  %p227_p13 = scmp.lt.s32.totalorder %s221_s6, %s221_s6 }
  0x1b   :  { %p228_p0 = por %p227_p13, %p226_p12 }
  0x1d   :  { %p229_p1 = pnand %p228_p0, %p222_p11 }
  0x1f   :  { %232 = shalt.err (!%p229_p1)
}
  0x20   :  { %s261_s1 = smov 128   ;;  %s262_s7 = smov 8  }
  0x21   :  { %21 = dma.hbm_to_vmem [thread:$0]  %s340_s0, 256, %s285_s15, [#allocation4], %s261_s1, %s261_s1, %s262_s7  }
  0x22   :  { %s263_s10 = smov [#allocation7]   ;;  %s233_s14 = scalar_lea.hbm %s342_s2, 16 }
  0x23   :  { %s38_s11 = sshll.u32 %s263_s10, 4  ;;  %p234_p2 = scmp.ne.s32.totalorder %s342_s2, %s233_s14  ;;  %s39_s11 = int_to_ptr.vmem [resolvable:$true] %s38_s11 }
  0x24   :  { %p237_p3 = scmp.lt.u32.totalorder %s233_s14, %s342_s2 }
  0x26   :  { %p239_p4 = pnand %p237_p3, %p234_p2 }
  0x28   :  { %242 = shalt.err (!%p239_p4)
}
  0x29   :  { %s243_s20 = scalar_lea.vmem %s39_s11, 16  ;;  %s247_s0 = scalar_lea.vmem %s39_s11, 32 }
  0x2a   :  { %p244_p5 = scmp.ne.s32.totalorder %s39_s11, %s243_s20  ;;  %p248_p6 = scmp.lt.s32.totalorder %s39_s11, %s39_s11 }
  0x2b   :  { %p249_p7 = scmp.lt.s32.totalorder %s247_s0, %s243_s20 }
  0x2d   :  { %p250_p8 = por %p249_p7, %p248_p6 }
  0x2f   :  { %p251_p9 = pnand %p250_p8, %p244_p5 }
  0x31   :  { %254 = shalt.err (!%p251_p9)
}
  0x32   :  { %41 = dma.hbm_to_vmem [thread:$0]  %s342_s2, 16, %s39_s11, [#allocation6]  }
  0x33   :  { %255 = dma.done.wait [#allocation4], 256  }
  0x34   :  { %256 = vsyncadd [#allocation4], 4294967040 }
  0x35   :  { %257 = dma.done.wait [#allocation6], 144  }
  0x36   :  { %258 = vsyncadd [#allocation6], 4294967152  ;;  %vm55_vm0 = vcmask 785408   ;;  %v264_v0 = vmov 0.0   ;;  %vm63_vm1 = vcmask 64512   ;;  %v62_v1 = vld [vmem:[#allocation5] sm:$0xff] }
  0x37   :  { %57 = vst.msk [vmem:[#allocation2 + $0x8] sm:$0xff] %vm55_vm0, %v264_v0  ;;  %56 = vst.msk [vmem:[#allocation2] sm:$0xff] %vm55_vm0, %v264_v0  ;;  %v60_v2 = vld [vmem:[#allocation3] sm:$0xff]  ;;  %v61_v3 = vld [vmem:[#allocation3 + $0x8] sm:$0xff]  ;;  %178 = vmatprep.subr.mxu0 %v62_v1 }
  0x38   :  { %180 = vmatprep.mubr.msk.f32.mxu0 %vm63_vm1, %v60_v2  ;;  %179 = vmatpush3.msra.mxu0 %v62_v1  ;;  %v174_v10 = vld [vmem:[#allocation7] ss:$0 sm:$0xff] }
  0x39   :  { %181 = vmatmul.mubr.msk.f32.vlgmr.msra.gmra.mrb[0].mxu0 %vm63_vm1, %v61_v3 }
  0x3e   :  { %v59_v4 = vld [vmem:[#allocation2 + $0x8] sm:$0xff]  ;;  %v58_v5 = vld [vmem:[#allocation2] sm:$0xff] }
 0x10c   :  { %v182_v6 = vpop.f32.mrb[0].mxu0 }
 0x10d   :  { %v146_v7 = vadd.f32 %v182_v6, %v59_v4  ;;  %v136_v8 = vpop.f32.mrb[1].mxu0 }
 0x10e   :  { %v145_v9 = vadd.f32 %v136_v8, %v58_v5 }
 0x10f   :  { %149 = vst.msk [vmem:[#allocation2 + $0x8] sm:$0xff] %vm55_vm0, %v146_v7 }
 0x110   :  { %148 = vst.msk [vmem:[#allocation2] sm:$0xff] %vm55_vm0, %v145_v9 }
 0x116   :  { %v154_v11 = vld [vmem:[#allocation2 + $0x8] sm:$0xff] }
 0x117   :  { %v163_v12 = vadd.f32 %v174_v10, %v154_v11  ;;  %v153_v13 = vld [vmem:[#allocation2] sm:$0xff] }
 0x118   :  { %v162_v14 = vadd.f32 %v174_v10, %v153_v13 }
 0x119   :  { %165 = vst.msk [vmem:[%s343_s3 + $0x8] sm:$0xff] %vm55_vm0, %v163_v12 }
 0x11a   :  { %164 = vst.msk [vmem:[%s343_s3] sm:$0xff] %vm55_vm0, %v162_v14 }
 0x11b   :  { %170 = vsyncpa [#allocation4], 1 }
 0x11c   :  { %171 = vsyncpa [#allocation6], 1 }

// kernel: encoder_forward.19
= control target key start
LH: loop header
LB: loop body
LE: loop exit
PB: predicated region body
PF: predicated region fallthrough
CT: control target
= control target key end

     0   :  { %s1460_s18 = smov 0   ;;  %s1656_s0 = inlined_call_operand.vmem [shape: f32[2,8], index: 0, kind: input, shape index: {}]   ;;  %s1657_s1 = inlined_call_operand.vmem [shape: f32[4,8,1024], index: 1, kind: input, shape index: {}]   ;;  %s1658_s2 = inlined_call_operand.vmem [shape: f32[4,1,1024], index: 2, kind: input, shape index: {}]   ;;  %s1659_s3 = inlined_call_operand.vmem [shape: f32[4,1024,64], index: 3, kind: input, shape index: {}]   ;;  %s1660_s4 = inlined_call_operand.vmem [shape: f32[4,1,64], index: 4, kind: input, shape index: {}]   ;;  %s1661_s5 = inlined_call_operand.vmem [shape: f32[4,2,64], index: 5, kind: output, shape index: {}]  }
   0x1 LB: > { %s1124_s19 = sadd.s32 4294967295, %s1427_s18   ;;  %p1128_p0 = scmp.ge.s32.totalorder %s1427_s18, 1  ;;  %s1427_s18 = sphi %s1460_s18, %s15_s18  }
   0x2   : > { %p214_p1 = scmp.lt.s32.totalorder %s1427_s18, 5 }
   0x4   : > { %p215_p2 = pnand %p1128_p0, %p214_p1 }
   0x5   : > { %p253_p3 = scmp.lt.s32.totalorder (!%p215_p2), %s1124_s19, 3  ;;  %v1429_v0 = vmov (!%p215_p2), 0.0   ;;  %v274_v1 = vld [vmem:[%s1656_s0] sm:$0x3] (!%p215_p2)  ;;  %vm325_vm0 = vcmask (!%p215_p2), 64512   ;;  %vm1036_vm1 = vcmask (!%p215_p2), 517120  }
   0x6   : > { %218 = sbr.rel (%p215_p2) target bundleno = 489 (0x1e9), region = 40  ;;  %393 = vmatprep.mubr.f32.mxu0 (!%p215_p2), %v1429_v0  ;;  %464 = vmatprep.mubr.f32.mxu1 (!%p215_p2), %v1429_v0 }
   0xd   : > { %s1663_s19 = smov (!%p253_p3, %s1124_s19), 3 }
   0xe   : > { %s1142_s20 = sshll.u32 %s1663_s19, 6  ;;  %s1143_s21 = sshll.u32 %s1663_s19, 10 }
   0xf   : > { %s257_s24 = scalar_lea.vmem %s1657_s1, %s1142_s20  ;;  %s1478_s27 = scalar_lea.vmem %s1659_s3, %s1143_s21 }
  0x10   : > { %v276_v2 = vld [vmem:[%s257_s24 + $0x8] sm:$0xff]  ;;  %v278_v3 = vld [vmem:[%s257_s24 + $0x18] sm:$0xff]  ;;  %v275_v4 = vld [vmem:[%s257_s24] sm:$0xff]  ;;  %s1131_s30 = sshll.u32 %s1663_s19, 3  ;;  %s269_s11 = scalar_lea.vmem %s1660_s4, %s1663_s19 }
  0x11   : > { %329 = vmatprep.subr.mxu0 %v276_v2  ;;  %400 = vmatprep.subr.mxu1 %v278_v3  ;;  %v277_v5 = vld [vmem:[%s257_s24 + $0x10] sm:$0xff]  ;;  %v280_v6 = vld [vmem:[%s257_s24 + $0x28] sm:$0xff]  ;;  %v279_v7 = vld [vmem:[%s257_s24 + $0x20] sm:$0xff]  ;;  %s261_s8 = scalar_lea.vmem %s1658_s2, %s1131_s30  ;;  %s1134_s12 = sshll.u32 %s1663_s19, 1 }
  0x12   : > { %330 = vmatpush1.msra.mxu0 %v275_v4  ;;  %401 = vmatpush1.msra.mxu1 %v277_v5  ;;  %v282_v8 = vld [vmem:[%s257_s24 + $0x38] sm:$0xff]  ;;  %v281_v9 = vld [vmem:[%s257_s24 + $0x30] sm:$0xff]  ;;  %v637_v10 = vld [vmem:[%s1478_s27 + $0x80] sm:$0xff]  ;;  %s273_s15 = scalar_lea.vmem %s1661_s5, %s1134_s12 }
  0x13   : > { %1135 = vmatmul.mubr.msk.f32.vlgmr.msra.gmra.mrb[0].mxu0 %vm325_vm0, %v274_v1  ;;  %1136 = vmatmul.mubr.msk.f32.vlgmr.msra.gmra.mrb[0].mxu1 %vm325_vm0, %v274_v1  ;;  %v638_v11 = vld [vmem:[%s1478_s27 + $0x88] sm:$0xff]  ;;  %v669_v12 = vld [vmem:[%s1478_s27 + $0x180] sm:$0xff]  ;;  %v639_v21 = vld [vmem:[%s1478_s27 + $0x90] sm:$0xff] }
  0x14   : > { %v670_v13 = vld [vmem:[%s1478_s27 + $0x188] sm:$0xff]  ;;  %471 = vmatprep.subr.mxu0 %v280_v6  ;;  %542 = vmatprep.subr.mxu1 %v282_v8  ;;  %v1284_v14 = vpack.c.bf16 %v638_v11, %v637_v10  ;;  %v621_v16 = vld [vmem:[%s1478_s27] sm:$0xff]  ;;  %v640_v22 = vld [vmem:[%s1478_s27 + $0x98] sm:$0xff] }
  0x15   : > { %v1316_v15 = vpack.c.bf16 %v670_v13, %v669_v12  ;;  %v622_v17 = vld [vmem:[%s1478_s27 + $0x8] sm:$0xff]  ;;  %v653_v18 = vld [vmem:[%s1478_s27 + $0x100] sm:$0xff]  ;;  %472 = vmatpush1.msra.mxu0 %v279_v7  ;;  %535 = vmatprep.mubr.f32.mxu0 %v1429_v0  ;;  %v1288_v24 = vpack.c.bf16 %v640_v22, %v639_v21  ;;  %v671_v25 = vld [vmem:[%s1478_s27 + $0x190] sm:$0xff] }
  0x16   : > { %v1286_v19 = vpack.c.bf16 %v622_v17, %v621_v16  ;;  %v654_v20 = vld [vmem:[%s1478_s27 + $0x108] sm:$0xff]  ;;  %543 = vmatpush1.msra.mxu1 %v281_v9  ;;  %606 = vmatprep.mubr.f32.mxu1 %v1429_v0  ;;  %v672_v26 = vld [vmem:[%s1478_s27 + $0x198] sm:$0xff]  ;;  %v623_v27 = vld [vmem:[%s1478_s27 + $0x10] sm:$0xff] }
  0x17   : > { %v1318_v23 = vpack.c.bf16 %v654_v20, %v653_v18  ;;  %1137 = vmatmul.mubr.msk.f32.vlgmr.msra.gmra.mrb[2].mxu0 %vm325_vm0, %v274_v1  ;;  %1138 = vmatmul.mubr.msk.f32.vlgmr.msra.gmra.mrb[2].mxu1 %vm325_vm0, %v274_v1  ;;  %v1320_v28 = vpack.c.bf16 %v672_v26, %v671_v25  ;;  %v624_v29 = vld [vmem:[%s1478_s27 + $0x18] sm:$0xff]  ;;  %v655_v30 = vld [vmem:[%s1478_s27 + $0x110] sm:$0xff]  ;;  %v641_v32 = vld [vmem:[%s1478_s27 + $0xa0] sm:$0xff] }
  0x18   : > { %v656_v31 = vld [vmem:[%s1478_s27 + $0x118] sm:$0xff]  ;;  %1285 = vmatprep.subr.bf16.mxu0 %v1284_v14  ;;  %1317 = vmatprep.subr.bf16.mxu1 %v1316_v15  ;;  %v642_v33 = vld [vmem:[%s1478_s27 + $0xa8] sm:$0xff]  ;;  %v673_v34 = vld [vmem:[%s1478_s27 + $0x1a0] sm:$0xff]  ;;  %v1290_v35 = vpack.c.bf16 %v624_v29, %v623_v27 }
  0x19   : > { %1287 = vmatpush3.bf16.msra.mxu0 %v1286_v19  ;;  %1319 = vmatpush3.bf16.msra.mxu1 %v1318_v23  ;;  %v1322_v36 = vpack.c.bf16 %v656_v31, %v655_v30  ;;  %v674_v37 = vld [vmem:[%s1478_s27 + $0x1a8] sm:$0xff]  ;;  %v625_v38 = vld [vmem:[%s1478_s27 + $0x20] sm:$0xff]  ;;  %v1292_v40 = vpack.c.bf16 %v642_v33, %v641_v32  ;;  %v643_v44 = vld [vmem:[%s1478_s27 + $0xb0] sm:$0xff] }
  0x1a   : > { %v626_v39 = vld [vmem:[%s1478_s27 + $0x28] sm:$0xff]  ;;  %1289 = vmatprep.subr.bf16.mxu0 %v1288_v24  ;;  %1321 = vmatprep.subr.bf16.mxu1 %v1320_v28  ;;  %v1324_v41 = vpack.c.bf16 %v674_v37, %v673_v34  ;;  %v657_v42 = vld [vmem:[%s1478_s27 + $0x120] sm:$0xff]  ;;  %v644_v45 = vld [vmem:[%s1478_s27 + $0xb8] sm:$0xff] }
  0x1b   : > { %v658_v43 = vld [vmem:[%s1478_s27 + $0x128] sm:$0xff]  ;;  %v675_v46 = vld [vmem:[%s1478_s27 + $0x1b0] sm:$0xff]  ;;  %v676_v47 = vld [vmem:[%s1478_s27 + $0x1b8] sm:$0xff]  ;;  %v1294_v48 = vpack.c.bf16 %v626_v39, %v625_v38  ;;  %v1296_v52 = vpack.c.bf16 %v644_v45, %v643_v44 }
  0x1c   : > { %v1326_v49 = vpack.c.bf16 %v658_v43, %v657_v42  ;;  %v627_v50 = vld [vmem:[%s1478_s27 + $0x30] sm:$0xff]  ;;  %v628_v51 = vld [vmem:[%s1478_s27 + $0x38] sm:$0xff]  ;;  %v1328_v53 = vpack.c.bf16 %v676_v47, %v675_v46  ;;  %v645_v56 = vld [vmem:[%s1478_s27 + $0xc0] sm:$0xff] }
  0x1d   : > { %1291 = vmatpush3.bf16.msra.mxu0 %v1290_v35  ;;  %1323 = vmatpush3.bf16.msra.mxu1 %v1322_v36  ;;  %v659_v54 = vld [vmem:[%s1478_s27 + $0x130] sm:$0xff]  ;;  %v660_v55 = vld [vmem:[%s1478_s27 + $0x138] sm:$0xff]  ;;  %v646_v57 = vld [vmem:[%s1478_s27 + $0xc8] sm:$0xff]  ;;  %v1298_v60 = vpack.c.bf16 %v628_v51, %v627_v50 }
  0x1e   : > { %1293 = vmatprep.subr.bf16.mxu0 %v1292_v40  ;;  %1325 = vmatprep.subr.bf16.mxu1 %v1324_v41  ;;  %v677_v58 = vld [vmem:[%s1478_s27 + $0x1c0] sm:$0xff]  ;;  %v678_v59 = vld [vmem:[%s1478_s27 + $0x1c8] sm:$0xff]  ;;  %v1330_v61 = vpack.c.bf16 %v660_v55, %v659_v54  ;;  %v1300_v0 = vpack.c.bf16 %v646_v57, %v645_v56  ;;  %v647_v4 = vld [vmem:[%s1478_s27 + $0xd0] sm:$0xff] }
  0x1f   : > { %v629_v62 = vld [vmem:[%s1478_s27 + $0x40] sm:$0xff]  ;;  %v630_v63 = vld [vmem:[%s1478_s27 + $0x48] sm:$0xff]  ;;  %v1332_v1 = vpack.c.bf16 %v678_v59, %v677_v58  ;;  %v648_v5 = vld [vmem:[%s1478_s27 + $0xd8] sm:$0xff] }
  0x20   : > { %v661_v2 = vld [vmem:[%s1478_s27 + $0x140] sm:$0xff]  ;;  %v662_v3 = vld [vmem:[%s1478_s27 + $0x148] sm:$0xff]  ;;  %v679_v6 = vld [vmem:[%s1478_s27 + $0x1d0] sm:$0xff]  ;;  %v1302_v8 = vpack.c.bf16 %v630_v63, %v629_v62  ;;  %v1304_v12 = vpack.c.bf16 %v648_v5, %v647_v4 }
  0x21   : > { %1295 = vmatpush3.bf16.msra.mxu0 %v1294_v48  ;;  %1327 = vmatpush3.bf16.msra.mxu1 %v1326_v49  ;;  %v680_v7 = vld [vmem:[%s1478_s27 + $0x1d8] sm:$0xff]  ;;  %v1334_v9 = vpack.c.bf16 %v662_v3, %v661_v2  ;;  %v631_v10 = vld [vmem:[%s1478_s27 + $0x50] sm:$0xff]  ;;  %v649_v16 = vld [vmem:[%s1478_s27 + $0xe0] sm:$0xff]  ;;  %v285_v48 = vlaneseq }
  0x22   : > { %1297 = vmatprep.subr.bf16.mxu0 %v1296_v52  ;;  %1329 = vmatprep.subr.bf16.mxu1 %v1328_v53  ;;  %v632_v11 = vld [vmem:[%s1478_s27 + $0x58] sm:$0xff]  ;;  %v1336_v13 = vpack.c.bf16 %v680_v7, %v679_v6  ;;  %v663_v14 = vld [vmem:[%s1478_s27 + $0x150] sm:$0xff]  ;;  %v650_v17 = vld [vmem:[%s1478_s27 + $0xe8] sm:$0xff] }
  0x23   : > { %v664_v15 = vld [vmem:[%s1478_s27 + $0x158] sm:$0xff]  ;;  %v681_v18 = vld [vmem:[%s1478_s27 + $0x1e0] sm:$0xff]  ;;  %v682_v19 = vld [vmem:[%s1478_s27 + $0x1e8] sm:$0xff]  ;;  %v1306_v20 = vpack.c.bf16 %v632_v11, %v631_v10  ;;  %v1308_v23 = vpack.c.bf16 %v650_v17, %v649_v16  ;;  %v1556_v49 = vshrl.u32 %v285_v48, 7 }
  0x24   : > { %v1338_v21 = vpack.c.bf16 %v664_v15, %v663_v14  ;;  %v633_v22 = vld [vmem:[%s1478_s27 + $0x60] sm:$0xff]  ;;  %v1340_v24 = vpack.c.bf16 %v682_v19, %v681_v18  ;;  %v634_v25 = vld [vmem:[%s1478_s27 + $0x68] sm:$0xff]  ;;  %v651_v30 = vld [vmem:[%s1478_s27 + $0xf0] sm:$0xff] }
  0x25   : > { %1299 = vmatpush3.bf16.msra.mxu0 %v1298_v60  ;;  %1331 = vmatpush3.bf16.msra.mxu1 %v1330_v61  ;;  %v665_v26 = vld [vmem:[%s1478_s27 + $0x160] sm:$0xff]  ;;  %v666_v27 = vld [vmem:[%s1478_s27 + $0x168] sm:$0xff]  ;;  %v1310_v28 = vpack.c.bf16 %v634_v25, %v633_v22  ;;  %v652_v31 = vld [vmem:[%s1478_s27 + $0xf8] sm:$0xff]  ;;  %v287_v50 = vsub.s32 0, %v1556_v49  ;;  %v295_v51 = vsub.s32 2, %v1556_v49  ;;  %v291_v53 = vsub.s32 1, %v1556_v49 }
  0x26   : > { %1301 = vmatprep.subr.bf16.mxu0 %v1300_v0  ;;  %1333 = vmatprep.subr.bf16.mxu1 %v1332_v1  ;;  %v1342_v29 = vpack.c.bf16 %v666_v27, %v665_v26  ;;  %v683_v32 = vld [vmem:[%s1478_s27 + $0x1f0] sm:$0xff]  ;;  %v1312_v33 = vpack.c.bf16 %v652_v31, %v651_v30  ;;  %v684_v34 = vld [vmem:[%s1478_s27 + $0x1f8] sm:$0xff]  ;;  %v701_v42 = vld [vmem:[%s1478_s27 + $0x280] sm:$0xff]  ;;  %v299_v54 = vsub.s32 3, %v1556_v49  ;;  %v307_v59 = vsub.s32 5, %v1556_v49 }
  0x27   : > { %v635_v35 = vld [vmem:[%s1478_s27 + $0x70] sm:$0xff]  ;;  %v636_v36 = vld [vmem:[%s1478_s27 + $0x78] sm:$0xff]  ;;  %v1344_v37 = vpack.c.bf16 %v684_v34, %v683_v32  ;;  %v702_v43 = vld [vmem:[%s1478_s27 + $0x288] sm:$0xff]  ;;  %v315_v60 = vsub.s32 7, %v1556_v49 }
  0x28   : > { %v1314_v38 = vpack.c.bf16 %v636_v36, %v635_v35  ;;  %v667_v39 = vld [vmem:[%s1478_s27 + $0x170] sm:$0xff]  ;;  %v668_v40 = vld [vmem:[%s1478_s27 + $0x178] sm:$0xff]  ;;  %v733_v44 = vld [vmem:[%s1478_s27 + $0x380] sm:$0xff]  ;;  %v1348_v45 = vpack.c.bf16 %v702_v43, %v701_v42 }
  0x29   : > { %1303 = vmatpush3.bf16.msra.mxu0 %v1302_v8  ;;  %1335 = vmatpush3.bf16.msra.mxu1 %v1334_v9  ;;  %v1346_v41 = vpack.c.bf16 %v668_v40, %v667_v39  ;;  %v734_v46 = vld [vmem:[%s1478_s27 + $0x388] sm:$0xff]  ;;  %v1563_v52 = vld [vmem:[%s261_s8] sm:$0xff]  ;;  %v703_v7 = vld [vmem:[%s1478_s27 + $0x290] sm:$0xff] }
  0x2a   : > { %1305 = vmatprep.subr.bf16.mxu0 %v1304_v12  ;;  %1337 = vmatprep.subr.bf16.mxu1 %v1336_v13  ;;  %v1380_v47 = vpack.c.bf16 %v734_v46, %v733_v44  ;;  %v288_v55 = vrot.slane %v1563_v52, %v287_v50  ;;  %v296_v56 = vrot.slane %v1563_v52, %v295_v51  ;;  %v685_v63 = vld [vmem:[%s1478_s27 + $0x200] sm:$0xff]  ;;  %v686_v0 = vld [vmem:[%s1478_s27 + $0x208] sm:$0xff]  ;;  %v704_v10 = vld [vmem:[%s1478_s27 + $0x298] sm:$0xff] }
  0x2b   : > { %v292_v57 = vrot.slane %v1563_v52, %v291_v53  ;;  %v300_v58 = vrot.slane %v1563_v52, %v299_v54  ;;  %v717_v5 = vld [vmem:[%s1478_s27 + $0x300] sm:$0xff]  ;;  %v718_v6 = vld [vmem:[%s1478_s27 + $0x308] sm:$0xff]  ;;  %v735_v11 = vld [vmem:[%s1478_s27 + $0x390] sm:$0xff]  ;;  %v308_v13 = vrot.slane %v1563_v52, %v307_v59  ;;  %v316_v14 = vrot.slane %v1563_v52, %v315_v60 }
  0x2c   : > { %v736_v12 = vld [vmem:[%s1478_s27 + $0x398] sm:$0xff]  ;;  %v1350_v18 = vpack.c.bf16 %v686_v0, %v685_v63  ;;  %v1382_v19 = vpack.c.bf16 %v718_v6, %v717_v5  ;;  %v1352_v25 = vpack.c.bf16 %v704_v10, %v703_v7  ;;  %v719_v27 = vld [vmem:[%s1478_s27 + $0x310] sm:$0xff]  ;;  %v706_v32 = vld [vmem:[%s1478_s27 + $0x2a8] sm:$0xff] }
  0x2d   : > { %1307 = vmatpush3.bf16.msra.mxu0 %v1306_v20  ;;  %1339 = vmatpush3.bf16.msra.mxu1 %v1338_v21  ;;  %v687_v20 = vld [vmem:[%s1478_s27 + $0x210] sm:$0xff]  ;;  %v688_v21 = vld [vmem:[%s1478_s27 + $0x218] sm:$0xff]  ;;  %v1384_v26 = vpack.c.bf16 %v736_v12, %v735_v11  ;;  %v738_v34 = vld [vmem:[%s1478_s27 + $0x3a8] sm:$0xff] }
  0x2e   : > { %1309 = vmatprep.subr.bf16.mxu0 %v1308_v23  ;;  %1341 = vmatprep.subr.bf16.mxu1 %v1340_v24  ;;  %v689_v39 = vld [vmem:[%s1478_s27 + $0x220] sm:$0xff]  ;;  %v690_v40 = vld [vmem:[%s1478_s27 + $0x228] sm:$0xff]  ;;  %v708_v48 = vld [vmem:[%s1478_s27 + $0x2b8] sm:$0xff] }
  0x2f   : > { %v722_v46 = vld [vmem:[%s1478_s27 + $0x328] sm:$0xff]  ;;  %v739_v50 = vld [vmem:[%s1478_s27 + $0x3b0] sm:$0xff]  ;;  %v740_v51 = vld [vmem:[%s1478_s27 + $0x3b8] sm:$0xff]  ;;  %v1358_v53 = vpack.c.bf16 %v690_v40, %v689_v39 }
  0x30   : > { %v723_v59 = vld [vmem:[%s1478_s27 + $0x330] sm:$0xff]  ;;  %v724_v60 = vld [vmem:[%s1478_s27 + $0x338] sm:$0xff]  ;;  %v741_v63 = vld [vmem:[%s1478_s27 + $0x3c0] sm:$0xff] }
  0x31   : > { %1311 = vmatpush3.bf16.msra.mxu0 %v1310_v28  ;;  %1343 = vmatpush3.bf16.msra.mxu1 %v1342_v29  ;;  %v720_v28 = vld [vmem:[%s1478_s27 + $0x318] sm:$0xff]  ;;  %v705_v29 = vld [vmem:[%s1478_s27 + $0x2a0] sm:$0xff]  ;;  %v742_v0 = vld [vmem:[%s1478_s27 + $0x3c8] sm:$0xff] }
  0x32   : > { %1313 = vmatprep.subr.bf16.mxu0 %v1312_v33  ;;  %1345 = vmatprep.subr.bf16.mxu1 %v1344_v37  ;;  %v737_v33 = vld [vmem:[%s1478_s27 + $0x3a0] sm:$0xff]  ;;  %v1354_v37 = vpack.c.bf16 %v688_v21, %v687_v20  ;;  %v1356_v43 = vpack.c.bf16 %v706_v32, %v705_v29  ;;  %v1396_v6 = vpack.c.bf16 %v742_v0, %v741_v63  ;;  %v712_v10 = vld [vmem:[%s1478_s27 + $0x2d8] sm:$0xff]  ;;  %v743_v11 = vld [vmem:[%s1478_s27 + $0x3d0] sm:$0xff]  ;;  %v303_v32 = vsub.s32 4, %v1556_v49 }
  0x33   : > { %v1388_v44 = vpack.c.bf16 %v738_v34, %v737_v33  ;;  %v725_v7 = vld [vmem:[%s1478_s27 + $0x340] sm:$0xff]  ;;  %v744_v12 = vld [vmem:[%s1478_s27 + $0x3d8] sm:$0xff]  ;;  %v747_v39 = vld [vmem:[%s1478_s27 + $0x3f0] sm:$0xff] }
  0x34   : > { %v728_v20 = vld [vmem:[%s1478_s27 + $0x358] sm:$0xff]  ;;  %v713_v21 = vld [vmem:[%s1478_s27 + $0x2e0] sm:$0xff] }
  0x35   : > { %1315 = vmatpush3.bf16.msra.mxu0 %v1314_v38  ;;  %1347 = vmatpush3.bf16.msra.mxu1 %v1346_v41  ;;  %v1386_v38 = vpack.c.bf16 %v720_v28, %v719_v27  ;;  %v311_v27 = vsub.s32 6, %v1556_v49  ;;  %v748_v40 = vld [vmem:[%s1478_s27 + $0x3f8] sm:$0xff]  ;;  %v304_v49 = vrot.slane %v1563_v52, %v303_v32 }
  0x36   : > { %1349 = vmatprep.subr.bf16.mxu0 %v1348_v45  ;;  %1381 = vmatprep.subr.bf16.mxu1 %v1380_v47  ;;  %v721_v45 = vld [vmem:[%s1478_s27 + $0x320] sm:$0xff]  ;;  %v707_v47 = vld [vmem:[%s1478_s27 + $0x2b0] sm:$0xff] }
  0x37   : > { %v1390_v54 = vpack.c.bf16 %v722_v46, %v721_v45  ;;  %v1408_v46 = vpack.c.bf16 %v748_v40, %v747_v39 }
  0xe6   : > { %v395_v61 = vpop.f32.mrb[0].mxu0  ;;  %v466_v62 = vpop.f32.mrb[0].mxu1 }
  0xe7   : > { %v396_v1 = vadd.f32 %v395_v61, %v288_v55  ;;  %v467_v2 = vadd.f32 %v466_v62, %v296_v56  ;;  %v397_v3 = vpop.f32.mrb[1].mxu0  ;;  %v468_v4 = vpop.f32.mrb[1].mxu1  ;;  %v691_v55 = vld [vmem:[%s1478_s27 + $0x230] sm:$0xff]  ;;  %v692_v56 = vld [vmem:[%s1478_s27 + $0x238] sm:$0xff]  ;;  %v709_v61 = vld [vmem:[%s1478_s27 + $0x2c0] sm:$0xff] }
  0xe8   : > { %v398_v8 = vadd.f32 %v397_v3, %v292_v57  ;;  %v469_v9 = vadd.f32 %v468_v4, %v300_v58  ;;  %v1360_v57 = vpack.c.bf16 %v708_v48, %v707_v47  ;;  %v1392_v58 = vpack.c.bf16 %v740_v51, %v739_v50  ;;  %v710_v62 = vld [vmem:[%s1478_s27 + $0x2c8] sm:$0xff]  ;;  %v693_v3 = vld [vmem:[%s1478_s27 + $0x240] sm:$0xff]  ;;  %v700_v47 = vld [vmem:[%s1478_s27 + $0x278] sm:$0xff] }
  0xe9   : > { %v615_v15 = vmax.f32 %v467_v2, 0.0  ;;  %v613_v24 = vmax.f32 %v396_v1, 0.0  ;;  %v1362_v1 = vpack.c.bf16 %v692_v56, %v691_v55  ;;  %v1394_v2 = vpack.c.bf16 %v724_v60, %v723_v59  ;;  %v694_v4 = vld [vmem:[%s1478_s27 + $0x248] sm:$0xff]  ;;  %v731_v48 = vld [vmem:[%s1478_s27 + $0x370] sm:$0xff]  ;;  %v732_v50 = vld [vmem:[%s1478_s27 + $0x378] sm:$0xff] }
  0xea   : > { %v614_v16 = vmax.f32 %v398_v8, 0.0  ;;  %v616_v17 = vmax.f32 %v469_v9, 0.0  ;;  %v1585_v22 = vpop.f32.mrb[2].mxu0  ;;  %v1587_v23 = vpop.f32.mrb[2].mxu1  ;;  %v1364_v5 = vpack.c.bf16 %v710_v62, %v709_v61  ;;  %v726_v8 = vld [vmem:[%s1478_s27 + $0x348] sm:$0xff]  ;;  %v711_v9 = vld [vmem:[%s1478_s27 + $0x2d0] sm:$0xff] }
  0xeb   : > { %v539_v30 = vpop.f32.mrb[3].mxu0  ;;  %v610_v31 = vpop.f32.mrb[3].mxu1  ;;  %v538_v55 = vadd.f32 %v1585_v22, %v304_v49 }
  0xec   : > { %820 = vmatprep.mubr.f32.mxu0 %v614_v16  ;;  %890 = vmatprep.mubr.f32.mxu1 %v616_v17  ;;  %v540_v35 = vadd.f32 %v539_v30, %v308_v13  ;;  %v611_v36 = vadd.f32 %v610_v31, %v316_v14  ;;  %v1366_v13 = vpack.c.bf16 %v694_v4, %v693_v3  ;;  %v696_v16 = vld [vmem:[%s1478_s27 + $0x258] sm:$0xff]  ;;  %v697_v30 = vld [vmem:[%s1478_s27 + $0x260] sm:$0xff]  ;;  %v698_v31 = vld [vmem:[%s1478_s27 + $0x268] sm:$0xff] }
  0xed   : > { %821 = vmatmul.mubr.f32.vlgmr.msra.gmra.mrb[4].mxu0 %v613_v24  ;;  %891 = vmatmul.mubr.f32.vlgmr.msra.gmra.mrb[4].mxu1 %v615_v15  ;;  %v1398_v14 = vpack.c.bf16 %v726_v8, %v725_v7  ;;  %v695_v15 = vld [vmem:[%s1478_s27 + $0x250] sm:$0xff]  ;;  %v1368_v17 = vpack.c.bf16 %v712_v10, %v711_v9  ;;  %v714_v24 = vld [vmem:[%s1478_s27 + $0x2e8] sm:$0xff] }
  0xee   : > { %1351 = vmatpush3.bf16.msra.mxu0 %v1350_v18  ;;  %1383 = vmatpush3.bf16.msra.mxu1 %v1382_v19  ;;  %v618_v41 = vmax.f32 %v540_v35, 0.0  ;;  %v620_v42 = vmax.f32 %v611_v36, 0.0  ;;  %v1400_v18 = vpack.c.bf16 %v744_v12, %v743_v11  ;;  %v727_v19 = vld [vmem:[%s1478_s27 + $0x350] sm:$0xff]  ;;  %v1370_v28 = vpack.c.bf16 %v696_v16, %v695_v15  ;;  %v729_v35 = vld [vmem:[%s1478_s27 + $0x360] sm:$0xff]  ;;  %v730_v36 = vld [vmem:[%s1478_s27 + $0x368] sm:$0xff] }
  0xef   : > { %1353 = vmatprep.subr.bf16.mxu0 %v1352_v25  ;;  %1385 = vmatprep.subr.bf16.mxu1 %v1384_v26  ;;  %v745_v25 = vld [vmem:[%s1478_s27 + $0x3e0] sm:$0xff]  ;;  %v746_v26 = vld [vmem:[%s1478_s27 + $0x3e8] sm:$0xff]  ;;  %v1402_v29 = vpack.c.bf16 %v728_v20, %v727_v19  ;;  %v1372_v33 = vpack.c.bf16 %v714_v24, %v713_v21 }
  0xf0   : > { %960 = vmatprep.mubr.f32.mxu0 %v618_v41  ;;  %1030 = vmatprep.mubr.f32.mxu1 %v620_v42  ;;  %v1404_v34 = vpack.c.bf16 %v746_v26, %v745_v25  ;;  %v312_v41 = vrot.slane %v1563_v52, %v311_v27  ;;  %v1374_v42 = vpack.c.bf16 %v698_v31, %v697_v30  ;;  %v617_v52 = vmax.f32 %v538_v55, 0.0 }
  0xf2   : > { %1355 = vmatpush3.bf16.msra.mxu0 %v1354_v37  ;;  %1387 = vmatpush3.bf16.msra.mxu1 %v1386_v38  ;;  %v715_v37 = vld [vmem:[%s1478_s27 + $0x2f0] sm:$0xff]  ;;  %v716_v38 = vld [vmem:[%s1478_s27 + $0x2f8] sm:$0xff]  ;;  %v609_v51 = vadd.f32 %v1587_v23, %v312_v41 }
  0xf3   : > { %1357 = vmatprep.subr.bf16.mxu0 %v1356_v43  ;;  %1389 = vmatprep.subr.bf16.mxu1 %v1388_v44  ;;  %v1406_v43 = vpack.c.bf16 %v730_v36, %v729_v35  ;;  %v699_v44 = vld [vmem:[%s1478_s27 + $0x270] sm:$0xff]  ;;  %v1376_v45 = vpack.c.bf16 %v716_v38, %v715_v37 }
  0xf4   : > { %v619_v56 = vmax.f32 %v609_v51, 0.0 }
  0xf6   : > { %1359 = vmatpush3.bf16.msra.mxu0 %v1358_v53  ;;  %1391 = vmatpush3.bf16.msra.mxu1 %v1390_v54  ;;  %v1378_v53 = vpack.c.bf16 %v700_v47, %v699_v44  ;;  %v1410_v54 = vpack.c.bf16 %v732_v50, %v731_v48 }
  0xf7   : > { %1361 = vmatprep.subr.bf16.mxu0 %v1360_v57  ;;  %1393 = vmatprep.subr.bf16.mxu1 %v1392_v58  ;;  %v1139_v58 = vld [vmem:[%s269_s11] ss:$0 sm:$0xff] }
  0xfa   : > { %1363 = vmatpush3.bf16.msra.mxu0 %v1362_v1  ;;  %1395 = vmatpush3.bf16.msra.mxu1 %v1394_v2 }
  0xfb   : > { %1365 = vmatprep.subr.bf16.mxu0 %v1364_v5  ;;  %1397 = vmatprep.subr.bf16.mxu1 %v1396_v6 }
  0xfe   : > { %1367 = vmatpush3.bf16.msra.mxu0 %v1366_v13  ;;  %1399 = vmatpush3.bf16.msra.mxu1 %v1398_v14 }
  0xff   : > { %1369 = vmatprep.subr.bf16.mxu0 %v1368_v17  ;;  %1401 = vmatprep.subr.bf16.mxu1 %v1400_v18 }
 0x102   : > { %1371 = vmatpush3.bf16.msra.mxu0 %v1370_v28  ;;  %1403 = vmatpush3.bf16.msra.mxu1 %v1402_v29 }
 0x103   : > { %1373 = vmatprep.subr.bf16.mxu0 %v1372_v33  ;;  %1405 = vmatprep.subr.bf16.mxu1 %v1404_v34 }
 0x106   : > { %1375 = vmatpush3.bf16.msra.mxu0 %v1374_v42  ;;  %1407 = vmatpush3.bf16.msra.mxu1 %v1406_v43 }
 0x107   : > { %1377 = vmatprep.subr.bf16.mxu0 %v1376_v45  ;;  %1409 = vmatprep.subr.bf16.mxu1 %v1408_v46 }
 0x10a   : > { %1379 = vmatpush3.bf16.msra.mxu0 %v1378_v53  ;;  %1411 = vmatpush3.bf16.msra.mxu1 %v1410_v54 }
 0x10d   : > { %961 = vmatmul.mubr.f32.vlgmr.msra.gmra.mrb[6].mxu0 %v617_v52  ;;  %1031 = vmatmul.mubr.f32.vlgmr.msra.gmra.mrb[6].mxu1 %v619_v56 }
 0x1c0   : > { %v1176_v23 = vpop.f32.mrb[4].mxu0  ;;  %v1211_v57 = vpop.f32.mrb[4].mxu1 }
 0x1c1   : > { %v1177_v59 = vpop.f32.mrb[5].mxu0  ;;  %v1212_v60 = vpop.f32.mrb[5].mxu1 }
 0x1c2   : > { %v1178_v61 = vadd.f32 %v1177_v59, %v1176_v23  ;;  %v1213_v22 = vadd.f32 %v1212_v60, %v1211_v57 }
 0x1c4   : > { %v823_v62 = vadd.f32 %v1178_v61, %v1139_v58 }
 0x1c6   : > { %v893_v63 = vadd.f32 %v1213_v22, %v823_v62 }
 0x1e0   : > { %v1246_v0 = vpop.f32.mrb[6].mxu0  ;;  %v1281_v1 = vpop.f32.mrb[6].mxu1 }
 0x1e1   : > { %v1247_v2 = vpop.f32.mrb[7].mxu0  ;;  %v1282_v3 = vpop.f32.mrb[7].mxu1 }
 0x1e2   : > { %v1248_v4 = vadd.f32 %v1247_v2, %v1246_v0  ;;  %v1283_v5 = vadd.f32 %v1282_v3, %v1281_v1 }
 0x1e4   : > { %v963_v6 = vadd.f32 %v1248_v4, %v893_v63 }
 0x1e6   : > { %v1033_v7 = vadd.f32 %v1283_v5, %v963_v6 }
 0x1e8   : > { %1037 = vst.msk [vmem:[%s273_s15] sm:$0x3] %vm1036_vm1, %v1033_v7 }
 0x1e9 PF: > { %s15_s18 = sadd.s32 1, %s1427_s18  }
 0x1ea   : > { %p12_p4 = scmp.ge.s32.totalorder %s15_s18, 6  }
 0x1ec   :  { %14 = sbr.rel (!%p12_p4) target bundleno = 1 (0x1), region = 79 }

// kernel: encoder_forward.21
= control target key start
LH: loop header
LB: loop body
LE: loop exit
PB: predicated region body
PF: predicated region fallthrough
CT: control target
= control target key end

     0   :  { %vm18_vm0 = vcmask 261120   ;;  %v164_v3 = vmov 0.0   ;;  %s220_s1 = inlined_call_operand.vmem [shape: f32[32,32], index: 1, kind: input, shape index: {}]   ;;  %s221_s0 = inlined_call_operand.vmem [shape: f32[16,32], index: 0, kind: input, shape index: {}]   ;;  %s222_s2 = inlined_call_operand.vmem [shape: f32[1,32], index: 2, kind: input, shape index: {}]   ;;  %s223_s3 = inlined_call_operand.vmem [shape: f32[16,32], index: 3, kind: output, shape index: {}]  }
   0x1   :  { %v25_v0 = vld [vmem:[%s220_s1] sm:$0xff]  ;;  %v26_v1 = vld [vmem:[%s220_s1 + $0x8] sm:$0xff]  ;;  %v27_v2 = vld [vmem:[%s220_s1 + $0x10] sm:$0xff]  ;;  %20 = vst.msk [vmem:[#allocation2 + $0x8] sm:$0xff] %vm18_vm0, %v164_v3 }
   0x2   :  { %19 = vst.msk [vmem:[#allocation2] sm:$0xff] %vm18_vm0, %v164_v3  ;;  %v155_v4 = vpack.c.bf16 %v26_v1, %v25_v0  ;;  %v28_v5 = vld [vmem:[%s220_s1 + $0x18] sm:$0xff]  ;;  %v23_v6 = vld [vmem:[%s221_s0] sm:$0xff]  ;;  %v24_v8 = vld [vmem:[%s221_s0 + $0x8] sm:$0xff] }
   0x3   :  { %v159_v7 = vpack.c.bf16 %v28_v5, %v27_v2  ;;  %152 = vmatprep.mubr.msk.f32.mxu0 %vm18_vm0, %v23_v6  ;;  %v137_v15 = vld [vmem:[%s222_s2] ss:$0 sm:$0xff] }
   0x4   :  { %156 = vmatprep.subr.bf16.mxu0 %v155_v4 }
   0x5   :  { %158 = vmatpush3.bf16.msra.mxu0 %v155_v4 }
   0x6   :  { %160 = vmatprep.subr.bf16.mxu0 %v159_v7 }
   0x8   :  { %v22_v9 = vld [vmem:[#allocation2 + $0x8] sm:$0xff] }
   0x9   :  { %162 = vmatpush3.bf16.msra.mxu0 %v159_v7  ;;  %v21_v10 = vld [vmem:[#allocation2] sm:$0xff] }
   0xc   :  { %153 = vmatmul.mubr.msk.f32.vlgmr.msra.gmra.mrb[0].mxu0 %vm18_vm0, %v24_v8 }
  0xdf   :  { %v154_v11 = vpop.f32.mrb[0].mxu0 }
  0xe0   :  { %v112_v12 = vadd.f32 %v154_v11, %v22_v9  ;;  %v102_v13 = vpop.f32.mrb[1].mxu0 }
  0xe1   :  { %v111_v14 = vadd.f32 %v102_v13, %v21_v10 }
  0xe2   :  { %114 = vst.msk [vmem:[#allocation2 + $0x8] sm:$0xff] %vm18_vm0, %v112_v12 }
  0xe3   :  { %113 = vst.msk [vmem:[#allocation2] sm:$0xff] %vm18_vm0, %v111_v14 }
  0xe9   :  { %v119_v16 = vld [vmem:[#allocation2 + $0x8] sm:$0xff] }
  0xea   :  { %v128_v17 = vadd.f32 %v137_v15, %v119_v16  ;;  %v118_v18 = vld [vmem:[#allocation2] sm:$0xff] }
  0xeb   :  { %v127_v19 = vadd.f32 %v137_v15, %v118_v18 }
  0xec   :  { %130 = vst.msk [vmem:[%s223_s3 + $0x8] sm:$0xff] %vm18_vm0, %v128_v17 }
  0xed   :  { %129 = vst.msk [vmem:[%s223_s3] sm:$0xff] %vm18_vm0, %v127_v19 }

// kernel: encoder_forward.20
= control target key start
LH: loop header
LB: loop body
LE: loop exit
PB: predicated region body
PF: predicated region fallthrough
CT: control target
= control target key end

     0   :  { %s1448_s18 = smov 0   ;;  %s1450_s19 = smov 0   ;;  %s1606_s0 = inlined_call_operand.vmem [shape: f32[2,4,8,8], index: 0, kind: input, shape index: {}]   ;;  %s1607_s1 = inlined_call_operand.vmem [shape: f32[2,4,8,8], index: 1, kind: input, shape index: {}]   ;;  %s1608_s2 = inlined_call_operand.vmem [shape: f32[2,4,8,8], index: 2, kind: input, shape index: {}]   ;;  %s1609_s3 = inlined_call_operand.vmem [shape: f32[4,2,8,8], index: 3, kind: input, shape index: {}]   ;;  %s1610_s4 = inlined_call_operand.vmem [shape: f32[2,8,32], index: 4, kind: output, shape index: {0}]   ;;  %s1611_s5 = inlined_call_operand.vmem [shape: f32[2,1,1], index: 5, kind: output, shape index: {1}]  }
   0x1   :  { %s1452_s20 = smov 0  }
   0x2 LB: > { %s1248_s21 = sadd.s32 4294967295, %s1409_s20   ;;  %s1465_s22 = sadd.s32 1, %s1409_s20   ;;  %s1409_s20 = sphi %s1452_s20, %s1614_s20   ;;  %s1405_s19 = sphi %s1450_s19, %s1613_s19   ;;  %s1401_s18 = sphi %s1448_s18, %s1612_s18  }
   0x3   : > { %s98_s23 = ssub.s32 %s1409_s20, %s1465_s22  ;;  %s101_s24 = sadd.s32 1, %s1405_s19 }
   0x4   : > { %p99_p0 = scmp.eq.s32.totalorder %s98_s23, 0  ;;  %p108_p1 = scmp.ne.s32.totalorder %s1405_s19, %s1401_s18 }
   0x5   : > { %p109_p2 = scmp.eq.s32.totalorder %s1409_s20, 0  ;;  %p1251_p4 = scmp.ge.s32.totalorder %s1409_s20, 2 }
   0x6   : > { %s1474_s25 = scalar_select %p99_p0, %s1405_s19, %s101_s24  }
   0x7   : > { %p110_p3 = por %p109_p2, %p108_p1  ;;  %186 = sbr.rel (%p1251_p4) target bundleno = 21 (0x15), region = 16 }
   0xe   : > { %213 = sbr.rel (!%p110_p3) target bundleno = 21 (0x15), region = 32  ;;  %s215_s26 = sand.u32 (%p110_p3), 1, %s1405_s19  }
   0xf   : > { %s1253_s27 = sshll.u32 (%p110_p3), %s1409_s20, 3  ;;  %s1252_s28 = sshll.u32 (%p110_p3), %s215_s26, 5 }
  0x10   : > { %s219_s6 = scalar_lea.vmem (%p110_p3), %s1609_s3, %s1253_s27  ;;  %s217_s7 = scalar_lea.vmem (%p110_p3), [#allocation2], %s1252_s28 }
  0x11   : > { %v253_v0 = vld [vmem:[%s219_s6] sm:$0xff] (%p110_p3)  ;;  %v255_v1 = vld [vmem:[%s219_s6 + $0x10] sm:$0xff] (%p110_p3) }
  0x12   : > { %v257_v2 = vld [vmem:[%s219_s6 + $0x20] sm:$0xff] (%p110_p3)  ;;  %254 = vst [vmem:[%s217_s7] sm:$0xff] (%p110_p3), %v253_v0  ;;  %256 = vst [vmem:[%s217_s7 + $0x8] sm:$0xff] (%p110_p3), %v255_v1  ;;  %v259_v3 = vld [vmem:[%s219_s6 + $0x30] sm:$0xff] (%p110_p3) }
  0x13   : > { %258 = vst [vmem:[%s217_s7 + $0x10] sm:$0xff] (%p110_p3), %v257_v2  ;;  %260 = vst [vmem:[%s217_s7 + $0x18] sm:$0xff] (%p110_p3), %v259_v3 }
  0x15 PF: > { %p1254_p5 = scmp.ge.s32.totalorder %s1409_s20, 1  ;;  %p265_p6 = scmp.lt.s32.totalorder %s1409_s20, 3 }
  0x17   : > { %p266_p7 = pnand %p1254_p5, %p265_p6 }
  0x18   : > { %p316_p8 = scmp.lt.s32.totalorder (!%p266_p7), %s1248_s21, 1  ;;  %v1411_v4 = vmov (!%p266_p7), 0.0   ;;  %vm1412_vm0 = vmmov (!%p266_p7), 0   ;;  %vm354_vm1 = vcmask (!%p266_p7), 64512   ;;  %s272_s15 = sand.u32 (!%p266_p7), 1, %s1401_s18   ;;  %vm1054_vm2 = vcmask (!%p266_p7), 63488  }
  0x19   : > { %269 = sbr.rel (%p266_p7) target bundleno = 905 (0x389), region = 70  ;;  %1296 = vmatprep.subr.mxu0 (!%p266_p7), %v1411_v4  ;;  %1298 = vmatprep.mubr.msk.f32.mxu0 (!%p266_p7), %vm1412_vm0, %v1411_v4  ;;  %s1255_s16 = sshll.u32 (!%p266_p7), %s272_s15, 5  ;;  %vm1107_vm3 = vcmask (!%p266_p7), 56320   ;;  %vm1008_vm4 = vcmask (!%p266_p7), 130112   ;;  %vm1014_vm5 = vcmask (!%p266_p7), 195712   ;;  %vm1126_vm6 = vcmask (!%p266_p7), 0  }
  0x1a   : > { %1301 = vmatprep.subr.mxu1 (!%p266_p7), %v1411_v4  ;;  %1303 = vmatprep.mubr.msk.f32.mxu1 (!%p266_p7), %vm1412_vm0, %v1411_v4  ;;  %s274_s17 = scalar_lea.vmem (!%p266_p7), [#allocation2], %s1255_s16  ;;  %s1413_s20 = smov (!%p266_p7), 1   ;;  %vm1020_vm7 = vcmask (!%p266_p7), 261312  }
  0x1b   : > { %v1536_v49 = vld [vmem:[%s274_s17 + $0x8] sm:$0xff] (!%p266_p7)  ;;  %v1538_v50 = vld [vmem:[%s274_s17] sm:$0xff] (!%p266_p7)  ;;  %v1541_v51 = vld [vmem:[%s274_s17 + $0x10] sm:$0xff] (!%p266_p7)  ;;  %s1414_s18 = smov (!%p266_p7), 127   ;;  %s1415_s6 = smov (!%p266_p7), 8  }
  0x1c   : > { %v353_v53 = vld [vmem:[%s274_s17 + $0x18] sm:$0xff] (!%p266_p7)  ;;  %s1416_s7 = smov (!%p266_p7), 16  }
  0x20   : > { %s1616_s21 = smov (!%p316_p8, %s1248_s21), 1 }
  0x21   : > { %s1497_s8 = sshll.u32 %s1616_s21, 5  ;;  %s1262_s27 = sshll.u32 %s1616_s21, 3 }
  0x22   : > { %s325_s11 = scalar_lea.vmem %s1607_s1, %s1497_s8  ;;  %s320_s14 = scalar_lea.vmem %s1606_s0, %s1497_s8 }
  0x23   : > { %v342_v5 = vld [vmem:[%s325_s11] sm:$0xff]  ;;  %v343_v6 = vld [vmem:[%s325_s11 + $0x8] sm:$0xff]  ;;  %v344_v9 = vld [vmem:[%s325_s11 + $0x10] sm:$0xff]  ;;  %s1548_s26 = scalar_lea.vmem %s1608_s2, %s1497_s8  ;;  %s1585_s30 = scalar_lea.vmem %s1610_s4, %s1262_s27 }
  0x24   : > { %1297 = vmatpush3.xpose.msk.msra.mxu0 %vm354_vm1, %v342_v5  ;;  %v338_v7 = vld [vmem:[%s320_s14] sm:$0xff]  ;;  %1302 = vmatpush3.xpose.msk.msra.mxu1 %vm354_vm1, %v343_v6  ;;  %v339_v8 = vld [vmem:[%s320_s14 + $0x8] sm:$0xff]  ;;  %v345_v10 = vld [vmem:[%s325_s11 + $0x18] sm:$0xff]  ;;  %s1417_s8 = smov 24   ;;  %s337_s13 = scalar_lea.vmem %s1611_s5, %s1616_s21 }
  0x25   : > { %1306 = vmatprep.subr.mxu0 %v1411_v4  ;;  %1311 = vmatprep.subr.mxu1 %v1411_v4  ;;  %v340_v11 = vld [vmem:[%s320_s14 + $0x10] sm:$0xff]  ;;  %v341_v12 = vld [vmem:[%s320_s14 + $0x18] sm:$0xff]  ;;  %v346_v52 = vld [vmem:[%s1548_s26] sm:$0xff] }
  0x26   : > { %v347_v54 = vld [vmem:[%s1548_s26 + $0x8] sm:$0xff]  ;;  %v348_v3 = vld [vmem:[%s1548_s26 + $0x10] sm:$0xff] }
  0x27   : > { %1299 = vmatmul.mubr.msk.f32.vlgmr.msra.gmra.mrb[0].mxu0 %vm354_vm1, %v338_v7  ;;  %1304 = vmatmul.mubr.msk.f32.vlgmr.msra.gmra.mrb[0].mxu1 %vm354_vm1, %v339_v8 }
  0x28   : > { %1307 = vmatpush3.xpose.msk.msra.mxu0 %vm354_vm1, %v344_v9  ;;  %1308 = vmatprep.mubr.msk.f32.mxu0 %vm1412_vm0, %v1411_v4 }
  0x29   : > { %1312 = vmatpush3.xpose.msk.msra.mxu1 %vm354_vm1, %v345_v10  ;;  %1313 = vmatprep.mubr.msk.f32.mxu1 %vm1412_vm0, %v1411_v4 }
  0x2a   : > { %1316 = vmatprep.subr.mxu0 %v1411_v4  ;;  %1321 = vmatprep.subr.mxu1 %v1411_v4 }
  0x2b   : > { %1309 = vmatmul.mubr.msk.f32.vlgmr.msra.gmra.mrb[2].mxu0 %vm354_vm1, %v340_v11 }
  0x2c   : > { %1314 = vmatmul.mubr.msk.f32.vlgmr.msra.gmra.mrb[2].mxu1 %vm354_vm1, %v341_v12  ;;  %1318 = vmatprep.mubr.msk.f32.mxu0 %vm1412_vm0, %v1411_v4 }
  0x2d   : > { %1323 = vmatprep.mubr.msk.f32.mxu1 %vm1412_vm0, %v1411_v4  ;;  %1317 = vmatpush3.msra.mxu0 %v346_v52 }
  0x2e   : > { %1326 = vmatprep.subr.mxu0 %v1411_v4  ;;  %1322 = vmatpush3.msra.mxu1 %v347_v54 }
  0x2f   : > { %1331 = vmatprep.subr.mxu1 %v1411_v4 }
  0xfa   : > { %v427_v13 = vpop.f32.mrb[0].mxu0  ;;  %v503_v14 = vpop.f32.mrb[0].mxu1 }
  0xfb   : > { %v659_v15 = vmul.f32 0.35355338, %v427_v13  ;;  %v1300_v16 = vpop.f32.mrb[1].mxu0  ;;  %v660_v17 = vmul.f32 0.35355338, %v503_v14  ;;  %v1305_v18 = vpop.f32.mrb[1].mxu1 }
  0xfc   : > { %v349_v13 = vld [vmem:[%s1548_s26 + $0x18] sm:$0xff] }
  0xfd   : > { %v663_v19 = vsel %vm354_vm1, %v659_v15, -inf  ;;  %v666_v24 = vsel %vm354_vm1, %v660_v17, -inf }
  0xfe   : > { %664 = vmax.xlane.f32.xlu0 %v663_v19  ;;  %v579_v20 = vpop.f32.mrb[2].mxu0 }
  0xff   : > { %v661_v21 = vmul.f32 0.35355338, %v579_v20  ;;  %v1310_v22 = vpop.f32.mrb[3].mxu0  ;;  %v655_v23 = vpop.f32.mrb[2].mxu1 }
 0x100   : > { %v662_v25 = vmul.f32 0.35355338, %v655_v23  ;;  %v1315_v26 = vpop.f32.mrb[3].mxu1  ;;  %v1027_v22 = vrot.slane %v1536_v49, 7 }
 0x101   : > { %v669_v27 = vsel %vm354_vm1, %v661_v21, -inf }
 0x102   : > { %667 = vmax.xlane.f32.xlu0 %v666_v24  ;;  %670 = vmax.xlane.f32.xlu1 %v669_v27  ;;  %v672_v28 = vsel %vm354_vm1, %v662_v25, -inf  ;;  %v1028_v24 = vrot.slane %v1541_v51, 7  ;;  %v1035_v26 = vsub.f32 %v1536_v49, %v1027_v22  ;;  %v1029_v27 = vrot.slane %v353_v53, 7 }
 0x106   : > { %673 = vmax.xlane.f32.xlu1 %v672_v28  ;;  %v1036_v28 = vsub.f32 %v1541_v51, %v1028_v24 }
 0x18b   : > { %v665_v29 = vpop.xlane.xlu0 %664 }
 0x18c   : > { %v675_v30 = vsub.f32 %v659_v15, %v665_v29  ;;  %v1039_v29 = vand.u32 2147483647, %v1035_v26 }
 0x18e   : > { %v679_v31 = vmul.f32 1.442695, %v675_v30  ;;  %v1037_v30 = vsub.f32 %v353_v53, %v1029_v27 }
 0x18f   : > { %v668_v32 = vpop.xlane.xlu0 %667  ;;  %v671_v33 = vpop.xlane.xlu1 %670 }
 0x190   : > { %1371 = vpow2.f32 %v679_v31  ;;  %v676_v34 = vsub.f32 %v660_v17, %v668_v32  ;;  %v677_v35 = vsub.f32 %v661_v21, %v671_v33  ;;  %v1026_v21 = vrot.slane %v1538_v50, 7 }
 0x191   : > { %v1040_v31 = vand.u32 2147483647, %v1036_v28  ;;  %v1047_v33 = vrot.slane %v1039_v29, 1 }
 0x192   : > { %v681_v36 = vmul.f32 1.442695, %v676_v34  ;;  %v683_v37 = vmul.f32 1.442695, %v677_v35  ;;  %v1041_v34 = vand.u32 2147483647, %v1037_v30 }
 0x193   : > { %v674_v38 = vpop.xlane.xlu1 %673  ;;  %v1048_v35 = vrot.slane %v1040_v31, 1 }
 0x194   : > { %1373 = vpow2.f32 %v681_v36  ;;  %v678_v39 = vsub.f32 %v662_v25, %v674_v38  ;;  %v1034_v25 = vsub.f32 %v1538_v50, %v1026_v21 }
 0x195   : > { %1375 = vpow2.f32 %v683_v37  ;;  %v1056_v37 = vsel %vm1054_vm2, %v1047_v33, 0.0 }
 0x196   : > { %v685_v40 = vmul.f32 1.442695, %v678_v39  ;;  %v1049_v39 = vrot.slane %v1041_v34, 1 }
 0x198   : > { %1377 = vpow2.f32 %v685_v40  ;;  %v1058_v40 = vsel %vm1054_vm2, %v1048_v35, 0.0 }
 0x19a   : > { %v1372_v41 = vpop.eup %1371 }
 0x19b   : > { %v687_v42 = vsel %vm354_vm1, %v1372_v41, 0.0 }
 0x19c   : > { %688 = vadd.xlane.f32.xlu0 %v687_v42  ;;  %v1060_v42 = vsel %vm1054_vm2, %v1049_v39, 0.0 }
 0x19e   : > { %v1374_v43 = vpop.eup %1373 }
 0x19f   : > { %v1376_v44 = vpop.eup %1375  ;;  %v690_v45 = vsel %vm354_vm1, %v1374_v43, 0.0 }
 0x1a0   : > { %691 = vadd.xlane.f32.xlu1 %v690_v45  ;;  %v693_v46 = vsel %vm354_vm1, %v1376_v44, 0.0 }
 0x1a1   : > { %694 = vadd.xlane.f32.xlu0 %v693_v46 }
 0x1a2   : > { %v1378_v47 = vpop.eup %1377 }
 0x1a3   : > { %v696_v48 = vsel %vm354_vm1, %v1378_v47, 0.0 }
 0x1a4   : > { %697 = vadd.xlane.f32.xlu1 %v696_v48 }
 0x1b5   : > { %1073 = vrot.lane.b32.xlu1 %v1536_v49, %s1413_s20 }
 0x1b7   : > { %1071 = vrot.lane.b32.xlu0 %v1538_v50, %s1413_s20 }
 0x1b9   : > { %1075 = vrot.lane.b32.xlu1 %v1541_v51, %s1413_s20 }
 0x1bd   : > { %1077 = vrot.lane.b32.xlu1 %v353_v53, %s1413_s20 }
 0x229   : > { %v689_v55 = vpop.xlane.xlu0 %688 }
 0x22a   : > { %1379 = vrcp.f32 %v689_v55 }
 0x22d   : > { %v692_v56 = vpop.xlane.xlu1 %691 }
 0x22e   : > { %v695_v57 = vpop.xlane.xlu0 %694  ;;  %1381 = vrcp.f32 %v692_v56 }
 0x22f   : > { %1383 = vrcp.f32 %v695_v57 }
 0x231   : > { %v698_v58 = vpop.xlane.xlu1 %697 }
 0x232   : > { %1385 = vrcp.f32 %v698_v58  ;;  %v1072_v59 = vpop.permute.xlu0 %1071 }
 0x233   : > { %v1083_v60 = vsub.f32 %v1538_v50, %v1072_v59 }
 0x234   : > { %v1380_v61 = vpop.eup %1379 }
 0x235   : > { %v703_v62 = vmul.f32 %v1380_v61, %v1372_v41  ;;  %v1074_v63 = vpop.permute.xlu1 %1073  ;;  %v1087_v0 = vand.u32 2147483647, %v1083_v60 }
 0x236   : > { %v1084_v1 = vsub.f32 %v1536_v49, %v1074_v63 }
 0x237   : > { %v707_v2 = vadd.f32 %v703_v62, %v1538_v50  ;;  %1095 = vrot.lane.b32.xlu0 %v1087_v0, %s1414_s18 }
 0x238   : > { %v1382_v5 = vpop.eup %1381  ;;  %v1088_v6 = vand.u32 2147483647, %v1084_v1 }
 0x239   : > { %v1384_v7 = vpop.eup %1383  ;;  %v704_v8 = vmul.f32 %v1382_v5, %v1374_v43  ;;  %v1076_v9 = vpop.permute.xlu1 %1075  ;;  %1319 = vmatmul.mubr.msk.f32.vlgmr.msra.gmra.mrb[4].mxu0 %vm354_vm1, %v707_v2 }
 0x23a   : > { %v705_v10 = vmul.f32 %v1384_v7, %v1376_v44  ;;  %v1085_v11 = vsub.f32 %v1541_v51, %v1076_v9  ;;  %1097 = vrot.lane.b32.xlu1 %v1088_v6, %s1414_s18  ;;  %1327 = vmatpush3.msra.mxu0 %v348_v3 }
 0x23b   : > { %1328 = vmatprep.mubr.msk.f32.mxu0 %vm1412_vm0, %v1411_v4  ;;  %v708_v12 = vadd.f32 %v704_v8, %v1536_v49 }
 0x23c   : > { %v1386_v14 = vpop.eup %1385  ;;  %v1089_v15 = vand.u32 2147483647, %v1085_v11  ;;  %v709_v16 = vadd.f32 %v705_v10, %v1541_v51 }
 0x23d   : > { %v706_v17 = vmul.f32 %v1386_v14, %v1378_v47  ;;  %v1078_v18 = vpop.permute.xlu1 %1077  ;;  %1324 = vmatmul.mubr.msk.f32.vlgmr.msra.gmra.mrb[4].mxu1 %vm354_vm1, %v708_v12 }
 0x23e   : > { %v1086_v19 = vsub.f32 %v353_v53, %v1078_v18  ;;  %1329 = vmatmul.mubr.msk.f32.vlgmr.msra.gmra.mrb[6].mxu0 %vm354_vm1, %v709_v16  ;;  %1332 = vmatpush3.msra.mxu1 %v349_v13 }
 0x23f   : > { %1099 = vrot.lane.b32.xlu0 %v1089_v15, %s1414_s18  ;;  %1333 = vmatprep.mubr.msk.f32.mxu1 %vm1412_vm0, %v1411_v4  ;;  %v710_v20 = vadd.f32 %v706_v17, %v353_v53  ;;  %v1038_v4 = vand.u32 2147483647, %v1034_v25 }
 0x240   : > { %v1090_v23 = vand.u32 2147483647, %v1086_v19 }
 0x241   : > { %1334 = vmatmul.mubr.msk.f32.vlgmr.msra.gmra.mrb[6].mxu1 %vm354_vm1, %v710_v20  ;;  %v1046_v32 = vrot.slane %v1038_v4, 1 }
 0x242   : > { %1101 = vrot.lane.b32.xlu1 %v1090_v23, %s1414_s18 }
 0x243   : > { %v1055_v36 = vsel %vm1054_vm2, %v1046_v32, 0.0 }
 0x244   : > { %v1057_v38 = vadd.f32 %v1056_v37, %v1055_v36 }
 0x246   : > { %v1059_v41 = vadd.f32 %v1058_v40, %v1057_v38 }
 0x248   : > { %v1061_v43 = vadd.f32 %v1060_v42, %v1059_v41 }
 0x25e   : > { %1062 = vadd.xlane.f32.xlu0 %v1061_v43 }
 0x2a9   : > { %v1096_v44 = vpop.permute.xlu0 %1095 }
 0x2aa   : > { %v1108_v46 = vsel %vm1107_vm3, %v1096_v44, 0.0 }
 0x2ac   : > { %v1098_v45 = vpop.permute.xlu1 %1097 }
 0x2ad   : > { %v1109_v47 = vsel %vm1107_vm3, %v1098_v45, 0.0 }
 0x2ae   : > { %v1110_v48 = vadd.f32 %v1109_v47, %v1108_v46 }
 0x2b1   : > { %v1100_v49 = vpop.permute.xlu0 %1099 }
 0x2b2   : > { %v1111_v50 = vsel %vm1107_vm3, %v1100_v49, 0.0 }
 0x2b3   : > { %v1112_v51 = vadd.f32 %v1111_v50, %v1110_v48 }
 0x2b4   : > { %v1102_v52 = vpop.permute.xlu1 %1101 }
 0x2b5   : > { %v1113_v53 = vsel %vm1107_vm3, %v1102_v52, 0.0 }
 0x2b6   : > { %v1114_v54 = vadd.f32 %v1113_v53, %v1112_v51 }
 0x2b8   : > { %1115 = vadd.xlane.f32.xlu1 %v1114_v54 }
 0x2eb   : > { %v1063_v55 = vpop.xlane.xlu0 %1062 }
 0x2ec   : > { %v1064_v56 = vrot.slane %v1063_v55, 4 }
 0x2ee   : > { %v1065_v57 = vadd.f32 %v1064_v56, %v1063_v55 }
 0x2f0   : > { %v1066_v58 = vrot.slane %v1065_v57, 2 }
 0x2f2   : > { %v1067_v59 = vadd.f32 %v1066_v58, %v1065_v57 }
 0x2f4   : > { %v1068_v60 = vrot.slane %v1067_v59, 1 }
 0x2f6   : > { %v1069_v61 = vadd.f32 %v1068_v60, %v1067_v59 }
 0x2f8   : > { %1336 = vpush %v1069_v61 }
 0x30c   : > { %v780_v62 = vpop.f32.mrb[4].mxu0 }
 0x30d   : > { %1003 = vst.msk [vmem:[%s1585_s30] sm:$0xff] %vm354_vm1, %v780_v62  ;;  %v1320_v63 = vpop.f32.mrb[5].mxu0 }
 0x310   : > { %v853_v0 = vpop.f32.mrb[4].mxu1 }
 0x311   : > { %v926_v1 = vpop.f32.mrb[6].mxu0  ;;  %v1325_v2 = vpop.f32.mrb[5].mxu1  ;;  %1005 = vrot.lane.b32.xlu0 %v853_v0, %s1415_s6 }
 0x312   : > { %1011 = vrot.lane.b32.xlu1 %v926_v1, %s1416_s7  ;;  %v1330_v3 = vpop.f32.mrb[7].mxu0 }
 0x314   : > { %v999_v5 = vpop.f32.mrb[6].mxu1 }
 0x315   : > { %v1335_v6 = vpop.f32.mrb[7].mxu1  ;;  %1017 = vrot.lane.b32.xlu0 %v999_v5, %s1417_s8 }
 0x329   : > { %s1337_s9 = spop %1336 }
 0x345   : > { %v1116_v7 = vpop.xlane.xlu1 %1115 }
 0x346   : > { %v1117_v8 = vrot.slane %v1116_v7, 4 }
 0x348   : > { %v1118_v9 = vadd.f32 %v1117_v8, %v1116_v7 }
 0x34a   : > { %v1119_v10 = vrot.slane %v1118_v9, 2 }
 0x34c   : > { %v1120_v11 = vadd.f32 %v1119_v10, %v1118_v9 }
 0x34e   : > { %v1121_v12 = vrot.slane %v1120_v11, 1 }
 0x350   : > { %v1122_v13 = vadd.f32 %v1121_v12, %v1120_v11 }
 0x352   : > { %1338 = vpush %v1122_v13 }
 0x383   : > { %s1339_s10 = spop %1338  ;;  %v1006_v14 = vpop.permute.xlu0 %1005 }
 0x384   : > { %s1124_s14 = sadd.f32 %s1339_s10, %s1337_s9  ;;  %1009 = vst.msk [vmem:[%s1585_s30] sm:$0xff] %vm1008_vm4, %v1006_v14  ;;  %v1012_v15 = vpop.permute.xlu1 %1011 }
 0x385   : > { %1015 = vst.msk [vmem:[%s1585_s30] sm:$0xff] %vm1014_vm5, %v1012_v15 }
 0x386   : > { %v1125_v16 = vstv %s1124_s14 }
 0x387   : > { %1127 = vst.msk [vmem:[%s337_s13] sm:$0x1] %vm1126_vm6, %v1125_v16  ;;  %v1018_v17 = vpop.permute.xlu0 %1017 }
 0x388   : > { %1021 = vst.msk [vmem:[%s1585_s30] sm:$0xff] %vm1020_vm7, %v1018_v17 }
 0x389 PF: > { %p13_p9 = scmp.ge.s32.totalorder %s1465_s22, 4   ;;  %s1612_s18 = smov %s1405_s19 }
 0x38a   : > { %s1613_s19 = smov %s1474_s25  ;;  %s1614_s20 = smov %s1465_s22 }
 0x38b   :  { %15 = sbr.rel (!%p13_p9) target bundleno = 2 (0x2), region = 130 }

// kernel: encoder_forward.22
= control target key start
LH: loop header
LB: loop body
LE: loop exit
PB: predicated region body
PF: predicated region fallthrough
CT: control target
= control target key end

     0   :  { %vm29_vm0 = vcmask 261120   ;;  %vm18_vm1 = vcmask 523264   ;;  %v167_v3 = vmov 0.0   ;;  %s223_s1 = inlined_call_operand.vmem [shape: f32[32,64], index: 1, kind: input, shape index: {}]   ;;  %s224_s0 = inlined_call_operand.vmem [shape: f32[16,32], index: 0, kind: input, shape index: {}]   ;;  %s225_s2 = inlined_call_operand.vmem [shape: f32[1,64], index: 2, kind: input, shape index: {}]   ;;  %s226_s3 = inlined_call_operand.vmem [shape: f32[16,64], index: 3, kind: output, shape index: {}]  }
   0x1   :  { %v25_v0 = vld [vmem:[%s223_s1] sm:$0xff]  ;;  %v26_v1 = vld [vmem:[%s223_s1 + $0x8] sm:$0xff]  ;;  %v27_v2 = vld [vmem:[%s223_s1 + $0x10] sm:$0xff]  ;;  %20 = vst.msk [vmem:[#allocation2 + $0x8] sm:$0xff] %vm18_vm1, %v167_v3 }
   0x2   :  { %19 = vst.msk [vmem:[#allocation2] sm:$0xff] %vm18_vm1, %v167_v3  ;;  %v158_v4 = vpack.c.bf16 %v26_v1, %v25_v0  ;;  %v28_v5 = vld [vmem:[%s223_s1 + $0x18] sm:$0xff]  ;;  %v23_v6 = vld [vmem:[%s224_s0] sm:$0xff]  ;;  %v24_v8 = vld [vmem:[%s224_s0 + $0x8] sm:$0xff] }
   0x3   :  { %v162_v7 = vpack.c.bf16 %v28_v5, %v27_v2  ;;  %155 = vmatprep.mubr.msk.f32.mxu0 %vm29_vm0, %v23_v6  ;;  %v140_v15 = vld [vmem:[%s225_s2] ss:$0 sm:$0xff] }
   0x4   :  { %159 = vmatprep.subr.bf16.mxu0 %v158_v4 }
   0x5   :  { %161 = vmatpush3.bf16.msra.mxu0 %v158_v4 }
   0x6   :  { %163 = vmatprep.subr.bf16.mxu0 %v162_v7 }
   0x8   :  { %v22_v9 = vld [vmem:[#allocation2 + $0x8] sm:$0xff] }
   0x9   :  { %165 = vmatpush3.bf16.msra.mxu0 %v162_v7  ;;  %v21_v10 = vld [vmem:[#allocation2] sm:$0xff] }
   0xc   :  { %156 = vmatmul.mubr.msk.f32.vlgmr.msra.gmra.mrb[0].mxu0 %vm29_vm0, %v24_v8 }
  0xdf   :  { %v157_v11 = vpop.f32.mrb[0].mxu0 }
  0xe0   :  { %v112_v12 = vadd.f32 %v157_v11, %v22_v9  ;;  %v102_v13 = vpop.f32.mrb[1].mxu0 }
  0xe1   :  { %v111_v14 = vadd.f32 %v102_v13, %v21_v10 }
  0xe2   :  { %115 = vst.msk [vmem:[#allocation2 + $0x8] sm:$0xff] %vm18_vm1, %v112_v12 }
  0xe3   :  { %114 = vst.msk [vmem:[#allocation2] sm:$0xff] %vm18_vm1, %v111_v14 }
  0xe9   :  { %v120_v16 = vld [vmem:[#allocation2 + $0x8] sm:$0xff] }
  0xea   :  { %v129_v17 = vadd.f32 %v140_v15, %v120_v16  ;;  %v119_v18 = vld [vmem:[#allocation2] sm:$0xff] }
  0xeb   :  { %v128_v19 = vadd.f32 %v140_v15, %v119_v18 }
  0xec   :  { %v131_v20 = vmax.f32 %v129_v17, 0.0 }
  0xed   :  { %v130_v21 = vmax.f32 %v128_v19, 0.0 }
  0xee   :  { %133 = vst.msk [vmem:[%s226_s3 + $0x8] sm:$0xff] %vm18_vm1, %v131_v20 }
  0xef   :  { %132 = vst.msk [vmem:[%s226_s3] sm:$0xff] %vm18_vm1, %v130_v21 }

// kernel: encoder_forward.23
= control target key start
LH: loop header
LB: loop body
LE: loop exit
PB: predicated region body
PF: predicated region fallthrough
CT: control target
= control target key end

     0   :  { %vm18_vm0 = vcmask 261120   ;;  %vm33_vm1 = vcmask 523264   ;;  %v189_v3 = vmov 0.0   ;;  %s257_s1 = inlined_call_operand.vmem [shape: f32[64,32], index: 1, kind: input, shape index: {}]   ;;  %s258_s0 = inlined_call_operand.vmem [shape: f32[16,64], index: 0, kind: input, shape index: {}]   ;;  %s259_s2 = inlined_call_operand.vmem [shape: f32[1,32], index: 2, kind: input, shape index: {}]   ;;  %s260_s3 = inlined_call_operand.vmem [shape: f32[16,32], index: 3, kind: output, shape index: {}]  }
   0x1   :  { %v25_v0 = vld [vmem:[%s257_s1] sm:$0xff]  ;;  %v26_v1 = vld [vmem:[%s257_s1 + $0x8] sm:$0xff]  ;;  %v27_v2 = vld [vmem:[%s257_s1 + $0x10] sm:$0xff]  ;;  %20 = vst.msk [vmem:[#allocation2 + $0x8] sm:$0xff] %vm18_vm0, %v189_v3 }
   0x2   :  { %19 = vst.msk [vmem:[#allocation2] sm:$0xff] %vm18_vm0, %v189_v3  ;;  %v172_v4 = vpack.c.bf16 %v26_v1, %v25_v0  ;;  %v28_v5 = vld [vmem:[%s257_s1 + $0x18] sm:$0xff]  ;;  %v29_v7 = vld [vmem:[%s257_s1 + $0x20] sm:$0xff]  ;;  %v30_v8 = vld [vmem:[%s257_s1 + $0x28] sm:$0xff] }
   0x3   :  { %v176_v6 = vpack.c.bf16 %v28_v5, %v27_v2  ;;  %v23_v9 = vld [vmem:[%s258_s0] sm:$0xff]  ;;  %v180_v10 = vpack.c.bf16 %v30_v8, %v29_v7  ;;  %v31_v11 = vld [vmem:[%s257_s1 + $0x30] sm:$0xff]  ;;  %v32_v12 = vld [vmem:[%s257_s1 + $0x38] sm:$0xff] }
   0x4   :  { %173 = vmatprep.subr.bf16.mxu0 %v172_v4  ;;  %169 = vmatprep.mubr.msk.f32.mxu0 %vm33_vm1, %v23_v9  ;;  %v184_v13 = vpack.c.bf16 %v32_v12, %v31_v11  ;;  %v24_v14 = vld [vmem:[%s258_s0 + $0x8] sm:$0xff]  ;;  %v142_v21 = vld [vmem:[%s259_s2] ss:$0 sm:$0xff] }
   0x5   :  { %175 = vmatpush3.bf16.msra.mxu0 %v172_v4 }
   0x6   :  { %177 = vmatprep.subr.bf16.mxu0 %v176_v6 }
   0x8   :  { %v22_v15 = vld [vmem:[#allocation2 + $0x8] sm:$0xff] }
   0x9   :  { %179 = vmatpush3.bf16.msra.mxu0 %v176_v6  ;;  %v21_v16 = vld [vmem:[#allocation2] sm:$0xff] }
   0xa   :  { %181 = vmatprep.subr.bf16.mxu0 %v180_v10 }
   0xd   :  { %183 = vmatpush3.bf16.msra.mxu0 %v180_v10 }
   0xe   :  { %185 = vmatprep.subr.bf16.mxu0 %v184_v13 }
  0x11   :  { %187 = vmatpush3.bf16.msra.mxu0 %v184_v13 }
  0x14   :  { %170 = vmatmul.mubr.msk.f32.vlgmr.msra.gmra.mrb[0].mxu0 %vm33_vm1, %v24_v14 }
  0xe7   :  { %v171_v17 = vpop.f32.mrb[0].mxu0 }
  0xe8   :  { %v116_v18 = vadd.f32 %v171_v17, %v22_v15  ;;  %v106_v19 = vpop.f32.mrb[1].mxu0 }
  0xe9   :  { %v115_v20 = vadd.f32 %v106_v19, %v21_v16 }
  0xea   :  { %119 = vst.msk [vmem:[#allocation2 + $0x8] sm:$0xff] %vm18_vm0, %v116_v18 }
  0xeb   :  { %118 = vst.msk [vmem:[#allocation2] sm:$0xff] %vm18_vm0, %v115_v20 }
  0xf1   :  { %v124_v22 = vld [vmem:[#allocation2 + $0x8] sm:$0xff] }
  0xf2   :  { %v133_v23 = vadd.f32 %v142_v21, %v124_v22  ;;  %v123_v24 = vld [vmem:[#allocation2] sm:$0xff] }
  0xf3   :  { %v132_v25 = vadd.f32 %v142_v21, %v123_v24 }
  0xf4   :  { %135 = vst.msk [vmem:[%s260_s3 + $0x8] sm:$0xff] %vm18_vm0, %v133_v23 }
  0xf5   :  { %134 = vst.msk [vmem:[%s260_s3] sm:$0xff] %vm18_vm0, %v132_v25 }

// kernel: encoder_forward.24
= control target key start
LH: loop header
LB: loop body
LE: loop exit
PB: predicated region body
PF: predicated region fallthrough
CT: control target
= control target key end

     0   :  { %vm29_vm0 = vcmask 261120   ;;  %vm18_vm1 = vcmask 785408   ;;  %v165_v3 = vmov 0.0   ;;  %s221_s1 = inlined_call_operand.vmem [shape: f32[32,96], index: 1, kind: input, shape index: {}]   ;;  %s222_s0 = inlined_call_operand.vmem [shape: f32[16,32], index: 0, kind: input, shape index: {}]   ;;  %s223_s2 = inlined_call_operand.vmem [shape: f32[1,96], index: 2, kind: input, shape index: {}]   ;;  %s224_s3 = inlined_call_operand.vmem [shape: f32[16,96], index: 3, kind: output, shape index: {}]  }
   0x1   :  { %v25_v0 = vld [vmem:[%s221_s1] sm:$0xff]  ;;  %v26_v1 = vld [vmem:[%s221_s1 + $0x8] sm:$0xff]  ;;  %v27_v2 = vld [vmem:[%s221_s1 + $0x10] sm:$0xff]  ;;  %20 = vst.msk [vmem:[#allocation2 + $0x8] sm:$0xff] %vm18_vm1, %v165_v3 }
   0x2   :  { %19 = vst.msk [vmem:[#allocation2] sm:$0xff] %vm18_vm1, %v165_v3  ;;  %v156_v4 = vpack.c.bf16 %v26_v1, %v25_v0  ;;  %v28_v5 = vld [vmem:[%s221_s1 + $0x18] sm:$0xff]  ;;  %v23_v6 = vld [vmem:[%s222_s0] sm:$0xff]  ;;  %v24_v8 = vld [vmem:[%s222_s0 + $0x8] sm:$0xff] }
   0x3   :  { %v160_v7 = vpack.c.bf16 %v28_v5, %v27_v2  ;;  %153 = vmatprep.mubr.msk.f32.mxu0 %vm29_vm0, %v23_v6  ;;  %v138_v15 = vld [vmem:[%s223_s2] ss:$0 sm:$0xff] }
   0x4   :  { %157 = vmatprep.subr.bf16.mxu0 %v156_v4 }
   0x5   :  { %159 = vmatpush3.bf16.msra.mxu0 %v156_v4 }
   0x6   :  { %161 = vmatprep.subr.bf16.mxu0 %v160_v7 }
   0x8   :  { %v22_v9 = vld [vmem:[#allocation2 + $0x8] sm:$0xff] }
   0x9   :  { %163 = vmatpush3.bf16.msra.mxu0 %v160_v7  ;;  %v21_v10 = vld [vmem:[#allocation2] sm:$0xff] }
   0xc   :  { %154 = vmatmul.mubr.msk.f32.vlgmr.msra.gmra.mrb[0].mxu0 %vm29_vm0, %v24_v8 }
  0xdf   :  { %v155_v11 = vpop.f32.mrb[0].mxu0 }
  0xe0   :  { %v112_v12 = vadd.f32 %v155_v11, %v22_v9  ;;  %v102_v13 = vpop.f32.mrb[1].mxu0 }
  0xe1   :  { %v111_v14 = vadd.f32 %v102_v13, %v21_v10 }
  0xe2   :  { %115 = vst.msk [vmem:[#allocation2 + $0x8] sm:$0xff] %vm18_vm1, %v112_v12 }
  0xe3   :  { %114 = vst.msk [vmem:[#allocation2] sm:$0xff] %vm18_vm1, %v111_v14 }
  0xe9   :  { %v120_v16 = vld [vmem:[#allocation2 + $0x8] sm:$0xff] }
  0xea   :  { %v129_v17 = vadd.f32 %v138_v15, %v120_v16  ;;  %v119_v18 = vld [vmem:[#allocation2] sm:$0xff] }
  0xeb   :  { %v128_v19 = vadd.f32 %v138_v15, %v119_v18 }
  0xec   :  { %131 = vst.msk [vmem:[%s224_s3 + $0x8] sm:$0xff] %vm18_vm1, %v129_v17 }
  0xed   :  { %130 = vst.msk [vmem:[%s224_s3] sm:$0xff] %vm18_vm1, %v128_v19 }

// kernel: encoder_forward.27
= control target key start
LH: loop header
LB: loop body
LE: loop exit
PB: predicated region body
PF: predicated region fallthrough
CT: control target
= control target key end

     0   :  { %vm27_vm0 = vcmask 261120   ;;  %v228_v3 = vmov 0.0   ;;  %s315_s1 = inlined_call_operand.vmem [shape: f32[32,32], index: 1, kind: input, shape index: {}]   ;;  %s316_s0 = inlined_call_operand.vmem [shape: f32[16,32], index: 0, kind: input, shape index: {}]   ;;  %s317_s2 = inlined_call_operand.vmem [shape: f32[1,32], index: 2, kind: input, shape index: {}]   ;;  %s318_s3 = inlined_call_operand.vmem [shape: f32[16,32], index: 3, kind: input, shape index: {}]   ;;  %s319_s4 = inlined_call_operand.vmem [shape: f32[1,32], index: 4, kind: input, shape index: {}]   ;;  %s320_s5 = inlined_call_operand.vmem [shape: f32[1,32], index: 5, kind: input, shape index: {}]   ;;  %s321_s6 = inlined_call_operand.vmem [shape: f32[16,32], index: 6, kind: output, shape index: {}]  }
   0x1   :  { %v34_v0 = vld [vmem:[%s315_s1] sm:$0xff]  ;;  %v35_v1 = vld [vmem:[%s315_s1 + $0x8] sm:$0xff]  ;;  %v36_v2 = vld [vmem:[%s315_s1 + $0x10] sm:$0xff]  ;;  %29 = vst.msk [vmem:[#allocation2 + $0x8] sm:$0xff] %vm27_vm0, %v228_v3 }
   0x2   :  { %28 = vst.msk [vmem:[#allocation2] sm:$0xff] %vm27_vm0, %v228_v3  ;;  %v215_v4 = vpack.c.bf16 %v35_v1, %v34_v0  ;;  %v37_v5 = vld [vmem:[%s315_s1 + $0x18] sm:$0xff]  ;;  %v32_v6 = vld [vmem:[%s316_s0] sm:$0xff]  ;;  %v33_v8 = vld [vmem:[%s316_s0 + $0x8] sm:$0xff] }
   0x3   :  { %v219_v7 = vpack.c.bf16 %v37_v5, %v36_v2  ;;  %212 = vmatprep.mubr.msk.f32.mxu0 %vm27_vm0, %v32_v6  ;;  %v195_v15 = vld [vmem:[%s317_s2] ss:$0 sm:$0xff]  ;;  %v139_v21 = vld [vmem:[%s318_s3 + $0x8] sm:$0xff] }
   0x4   :  { %216 = vmatprep.subr.bf16.mxu0 %v215_v4  ;;  %v138_v18 = vld [vmem:[%s318_s3] sm:$0xff] }
   0x5   :  { %218 = vmatpush3.bf16.msra.mxu0 %v215_v4  ;;  %v196_v43 = vld [vmem:[%s319_s4] ss:$0 sm:$0xff] }
   0x6   :  { %220 = vmatprep.subr.bf16.mxu0 %v219_v7  ;;  %v197_v45 = vld [vmem:[%s320_s5] ss:$0 sm:$0xff] }
   0x8   :  { %v31_v9 = vld [vmem:[#allocation2 + $0x8] sm:$0xff] }
   0x9   :  { %222 = vmatpush3.bf16.msra.mxu0 %v219_v7  ;;  %v30_v10 = vld [vmem:[#allocation2] sm:$0xff] }
   0xc   :  { %213 = vmatmul.mubr.msk.f32.vlgmr.msra.gmra.mrb[0].mxu0 %vm27_vm0, %v33_v8 }
  0xdf   :  { %v214_v11 = vpop.f32.mrb[0].mxu0 }
  0xe0   :  { %v121_v12 = vadd.f32 %v214_v11, %v31_v9  ;;  %v111_v13 = vpop.f32.mrb[1].mxu0 }
  0xe1   :  { %v120_v14 = vadd.f32 %v111_v13, %v30_v10 }
  0xe2   :  { %123 = vst.msk [vmem:[#allocation2 + $0x8] sm:$0xff] %vm27_vm0, %v121_v12 }
  0xe3   :  { %122 = vst.msk [vmem:[#allocation2] sm:$0xff] %vm27_vm0, %v120_v14 }
  0xe9   :  { %v128_v16 = vld [vmem:[#allocation2 + $0x8] sm:$0xff] }
  0xea   :  { %v127_v17 = vld [vmem:[#allocation2] sm:$0xff]  ;;  %v137_v20 = vadd.f32 %v195_v15, %v128_v16 }
  0xeb   :  { %v136_v19 = vadd.f32 %v195_v15, %v127_v17 }
  0xec   :  { %v141_v24 = vadd.f32 %v139_v21, %v137_v20 }
  0xed   :  { %v140_v22 = vadd.f32 %v138_v18, %v136_v19 }
  0xee   :  { %v145_v25 = vsel %vm27_vm0, %v141_v24, 0.0 }
  0xef   :  { %v142_v23 = vsel %vm27_vm0, %v140_v22, 0.0 }
  0xf0   :  { %143 = vadd.xlane.f32.xlu0 %v142_v23 }
  0xf4   :  { %146 = vadd.xlane.f32.xlu0 %v145_v25 }
 0x17d   :  { %v144_v26 = vpop.xlane.xlu0 %143 }
 0x17e   :  { %v149_v27 = vmul.f32 0.03125, %v144_v26 }
 0x180   :  { %v151_v28 = vsub.f32 %v140_v22, %v149_v27 }
 0x181   :  { %v147_v29 = vpop.xlane.xlu0 %146 }
 0x182   :  { %v150_v30 = vmul.f32 0.03125, %v147_v29  ;;  %v153_v31 = vmul.f32 %v151_v28, %v151_v28 }
 0x184   :  { %v152_v32 = vsub.f32 %v141_v24, %v150_v30  ;;  %v155_v33 = vsel %vm27_vm0, %v153_v31, 0.0 }
 0x185   :  { %156 = vadd.xlane.f32.xlu1 %v155_v33 }
 0x186   :  { %v154_v34 = vmul.f32 %v152_v32, %v152_v32 }
 0x188   :  { %v158_v35 = vsel %vm27_vm0, %v154_v34, 0.0 }
 0x189   :  { %159 = vadd.xlane.f32.xlu1 %v158_v35 }
 0x212   :  { %v157_v36 = vpop.xlane.xlu1 %156 }
 0x213   :  { %v161_v37 = vmul.f32 0.03125, %v157_v36 }
 0x215   :  { %v163_v38 = vadd.f32 1e-05, %v161_v37 }
 0x216   :  { %v160_v39 = vpop.xlane.xlu1 %159 }
 0x217   :  { %224 = vrsqrt.f32 %v163_v38  ;;  %v162_v40 = vmul.f32 0.03125, %v160_v39 }
 0x219   :  { %v164_v41 = vadd.f32 1e-05, %v162_v40 }
 0x21b   :  { %226 = vrsqrt.f32 %v164_v41 }
 0x221   :  { %v225_v42 = vpop.eup %224 }
 0x222   :  { %v167_v44 = vmul.f32 %v225_v42, %v151_v28 }
 0x224   :  { %v176_v46 = vmul.f32 %v196_v43, %v167_v44 }
 0x225   :  { %v227_v47 = vpop.eup %226 }
 0x226   :  { %v185_v48 = vadd.f32 %v197_v45, %v176_v46  ;;  %v168_v49 = vmul.f32 %v227_v47, %v152_v32 }
 0x228   :  { %187 = vst.msk [vmem:[%s321_s6] sm:$0xff] %vm27_vm0, %v185_v48  ;;  %v177_v50 = vmul.f32 %v196_v43, %v168_v49 }
 0x22a   :  { %v186_v51 = vadd.f32 %v197_v45, %v177_v50 }
 0x22c   :  { %188 = vst.msk [vmem:[%s321_s6 + $0x8] sm:$0xff] %vm27_vm0, %v186_v51 }

// kernel: encoder_forward.29
= control target key start
LH: loop header
LB: loop body
LE: loop exit
PB: predicated region body
PF: predicated region fallthrough
CT: control target
= control target key end

     0   :  { %vm27_vm0 = vcmask 261120   ;;  %vm42_vm1 = vcmask 523264   ;;  %v253_v3 = vmov 0.0   ;;  %s352_s1 = inlined_call_operand.vmem [shape: f32[64,32], index: 1, kind: input, shape index: {}]   ;;  %s353_s0 = inlined_call_operand.vmem [shape: f32[16,64], index: 0, kind: input, shape index: {}]   ;;  %s354_s2 = inlined_call_operand.vmem [shape: f32[1,32], index: 2, kind: input, shape index: {}]   ;;  %s355_s3 = inlined_call_operand.vmem [shape: f32[16,32], index: 3, kind: input, shape index: {}]   ;;  %s356_s4 = inlined_call_operand.vmem [shape: f32[1,32], index: 4, kind: input, shape index: {}]   ;;  %s357_s5 = inlined_call_operand.vmem [shape: f32[1,32], index: 5, kind: input, shape index: {}]   ;;  %s358_s6 = inlined_call_operand.vmem [shape: f32[16,32], index: 6, kind: output, shape index: {}]  }
   0x1   :  { %v34_v0 = vld [vmem:[%s352_s1] sm:$0xff]  ;;  %v35_v1 = vld [vmem:[%s352_s1 + $0x8] sm:$0xff]  ;;  %v36_v2 = vld [vmem:[%s352_s1 + $0x10] sm:$0xff]  ;;  %29 = vst.msk [vmem:[#allocation2 + $0x8] sm:$0xff] %vm27_vm0, %v253_v3 }
   0x2   :  { %28 = vst.msk [vmem:[#allocation2] sm:$0xff] %vm27_vm0, %v253_v3  ;;  %v232_v4 = vpack.c.bf16 %v35_v1, %v34_v0  ;;  %v37_v5 = vld [vmem:[%s352_s1 + $0x18] sm:$0xff]  ;;  %v38_v7 = vld [vmem:[%s352_s1 + $0x20] sm:$0xff]  ;;  %v39_v8 = vld [vmem:[%s352_s1 + $0x28] sm:$0xff] }
   0x3   :  { %v236_v6 = vpack.c.bf16 %v37_v5, %v36_v2  ;;  %v32_v9 = vld [vmem:[%s353_s0] sm:$0xff]  ;;  %v240_v10 = vpack.c.bf16 %v39_v8, %v38_v7  ;;  %v40_v11 = vld [vmem:[%s352_s1 + $0x30] sm:$0xff]  ;;  %v41_v12 = vld [vmem:[%s352_s1 + $0x38] sm:$0xff] }
   0x4   :  { %233 = vmatprep.subr.bf16.mxu0 %v232_v4  ;;  %229 = vmatprep.mubr.msk.f32.mxu0 %vm42_vm1, %v32_v9  ;;  %v244_v13 = vpack.c.bf16 %v41_v12, %v40_v11  ;;  %v33_v14 = vld [vmem:[%s353_s0 + $0x8] sm:$0xff]  ;;  %v200_v21 = vld [vmem:[%s354_s2] ss:$0 sm:$0xff] }
   0x5   :  { %235 = vmatpush3.bf16.msra.mxu0 %v232_v4  ;;  %v143_v24 = vld [vmem:[%s355_s3] sm:$0xff]  ;;  %v144_v27 = vld [vmem:[%s355_s3 + $0x8] sm:$0xff] }
   0x6   :  { %237 = vmatprep.subr.bf16.mxu0 %v236_v6  ;;  %v201_v49 = vld [vmem:[%s356_s4] ss:$0 sm:$0xff] }
   0x7   :  { %v202_v51 = vld [vmem:[%s357_s5] ss:$0 sm:$0xff] }
   0x8   :  { %v31_v15 = vld [vmem:[#allocation2 + $0x8] sm:$0xff] }
   0x9   :  { %239 = vmatpush3.bf16.msra.mxu0 %v236_v6  ;;  %v30_v16 = vld [vmem:[#allocation2] sm:$0xff] }
   0xa   :  { %241 = vmatprep.subr.bf16.mxu0 %v240_v10 }
   0xd   :  { %243 = vmatpush3.bf16.msra.mxu0 %v240_v10 }
   0xe   :  { %245 = vmatprep.subr.bf16.mxu0 %v244_v13 }
  0x11   :  { %247 = vmatpush3.bf16.msra.mxu0 %v244_v13 }
  0x14   :  { %230 = vmatmul.mubr.msk.f32.vlgmr.msra.gmra.mrb[0].mxu0 %vm42_vm1, %v33_v14 }
  0xe7   :  { %v231_v17 = vpop.f32.mrb[0].mxu0 }
  0xe8   :  { %v125_v18 = vadd.f32 %v231_v17, %v31_v15  ;;  %v115_v19 = vpop.f32.mrb[1].mxu0 }
  0xe9   :  { %v124_v20 = vadd.f32 %v115_v19, %v30_v16 }
  0xea   :  { %128 = vst.msk [vmem:[#allocation2 + $0x8] sm:$0xff] %vm27_vm0, %v125_v18 }
  0xeb   :  { %127 = vst.msk [vmem:[#allocation2] sm:$0xff] %vm27_vm0, %v124_v20 }
  0xf1   :  { %v133_v22 = vld [vmem:[#allocation2 + $0x8] sm:$0xff] }
  0xf2   :  { %v132_v23 = vld [vmem:[#allocation2] sm:$0xff]  ;;  %v142_v26 = vadd.f32 %v200_v21, %v133_v22 }
  0xf3   :  { %v141_v25 = vadd.f32 %v200_v21, %v132_v23 }
  0xf4   :  { %v146_v30 = vadd.f32 %v144_v27, %v142_v26 }
  0xf5   :  { %v145_v28 = vadd.f32 %v143_v24, %v141_v25 }
  0xf6   :  { %v150_v31 = vsel %vm27_vm0, %v146_v30, 0.0 }
  0xf7   :  { %v147_v29 = vsel %vm27_vm0, %v145_v28, 0.0 }
  0xf8   :  { %148 = vadd.xlane.f32.xlu0 %v147_v29 }
  0xfc   :  { %151 = vadd.xlane.f32.xlu0 %v150_v31 }
 0x185   :  { %v149_v32 = vpop.xlane.xlu0 %148 }
 0x186   :  { %v154_v33 = vmul.f32 0.03125, %v149_v32 }
 0x188   :  { %v156_v34 = vsub.f32 %v145_v28, %v154_v33 }
 0x189   :  { %v152_v35 = vpop.xlane.xlu0 %151 }
 0x18a   :  { %v155_v36 = vmul.f32 0.03125, %v152_v35  ;;  %v158_v37 = vmul.f32 %v156_v34, %v156_v34 }
 0x18c   :  { %v157_v38 = vsub.f32 %v146_v30, %v155_v36  ;;  %v160_v39 = vsel %vm27_vm0, %v158_v37, 0.0 }
 0x18d   :  { %161 = vadd.xlane.f32.xlu1 %v160_v39 }
 0x18e   :  { %v159_v40 = vmul.f32 %v157_v38, %v157_v38 }
 0x190   :  { %v163_v41 = vsel %vm27_vm0, %v159_v40, 0.0 }
 0x191   :  { %164 = vadd.xlane.f32.xlu1 %v163_v41 }
 0x21a   :  { %v162_v42 = vpop.xlane.xlu1 %161 }
 0x21b   :  { %v166_v43 = vmul.f32 0.03125, %v162_v42 }
 0x21d   :  { %v168_v44 = vadd.f32 1e-05, %v166_v43 }
 0x21e   :  { %v165_v45 = vpop.xlane.xlu1 %164 }
 0x21f   :  { %249 = vrsqrt.f32 %v168_v44  ;;  %v167_v46 = vmul.f32 0.03125, %v165_v45 }
 0x221   :  { %v169_v47 = vadd.f32 1e-05, %v167_v46 }
 0x223   :  { %251 = vrsqrt.f32 %v169_v47 }
 0x229   :  { %v250_v48 = vpop.eup %249 }
 0x22a   :  { %v172_v50 = vmul.f32 %v250_v48, %v156_v34 }
 0x22c   :  { %v181_v52 = vmul.f32 %v201_v49, %v172_v50 }
 0x22d   :  { %v252_v53 = vpop.eup %251 }
 0x22e   :  { %v190_v54 = vadd.f32 %v202_v51, %v181_v52  ;;  %v173_v55 = vmul.f32 %v252_v53, %v157_v38 }
 0x230   :  { %192 = vst.msk [vmem:[%s358_s6] sm:$0xff] %vm27_vm0, %v190_v54  ;;  %v182_v56 = vmul.f32 %v201_v49, %v173_v55 }
 0x232   :  { %v191_v57 = vadd.f32 %v202_v51, %v182_v56 }
 0x234   :  { %193 = vst.msk [vmem:[%s358_s6 + $0x8] sm:$0xff] %vm27_vm0, %v191_v57 }

// kernel: encoder_forward.35
= control target key start
LH: loop header
LB: loop body
LE: loop exit
PB: predicated region body
PF: predicated region fallthrough
CT: control target
= control target key end

     0   :  { %vm43_vm0 = vcmask 523264   ;;  %vm28_vm1 = vcmask 261120   ;;  %v293_v5 = vmov 0.0   ;;  %s401_s0 = inlined_call_operand.vmem [shape: f32[16,64], index: 0, kind: input, shape index: {}]   ;;  %s402_s1 = inlined_call_operand.vmem [shape: f32[64,32], index: 1, kind: input, shape index: {}]   ;;  %s403_s2 = inlined_call_operand.vmem [shape: f32[1,32], index: 2, kind: input, shape index: {}]   ;;  %s404_s3 = inlined_call_operand.vmem [shape: f32[16,32], index: 3, kind: input, shape index: {}]   ;;  %s405_s4 = inlined_call_operand.vmem [shape: f32[1,32], index: 4, kind: input, shape index: {}]   ;;  %s406_s5 = inlined_call_operand.vmem [shape: f32[1,32], index: 5, kind: input, shape index: {}]   ;;  %s407_s6 = inlined_call_operand.hbm [shape: f32[16,32], index: 6, kind: output, shape index: {}]  }
   0x1   :  { %v35_v0 = vld [vmem:[%s402_s1] sm:$0xff]  ;;  %v36_v1 = vld [vmem:[%s402_s1 + $0x8] sm:$0xff]  ;;  %v37_v2 = vld [vmem:[%s402_s1 + $0x10] sm:$0xff]  ;;  %30 = vst.msk [vmem:[#allocation2 + $0x8] sm:$0xff] %vm28_vm1, %v293_v5 }
   0x2   :  { %v245_v3 = vpack.c.bf16 %v36_v1, %v35_v0  ;;  %v38_v4 = vld [vmem:[%s402_s1 + $0x18] sm:$0xff]  ;;  %29 = vst.msk [vmem:[#allocation2] sm:$0xff] %vm28_vm1, %v293_v5  ;;  %v39_v7 = vld [vmem:[%s402_s1 + $0x20] sm:$0xff]  ;;  %v40_v8 = vld [vmem:[%s402_s1 + $0x28] sm:$0xff] }
   0x3   :  { %v249_v6 = vpack.c.bf16 %v38_v4, %v37_v2  ;;  %v33_v9 = vld [vmem:[%s401_s0] sm:$0xff] }
   0x4   :  { %246 = vmatprep.subr.bf16.mxu0 %v245_v3  ;;  %242 = vmatprep.mubr.msk.f32.mxu0 %vm43_vm0, %v33_v9 }
   0x5   :  { %11 = vsyncpa [#allocation4], 0  ;;  %248 = vmatpush3.bf16.msra.mxu0 %v245_v3  ;;  %v253_v10 = vpack.c.bf16 %v40_v8, %v39_v7  ;;  %v41_v11 = vld [vmem:[%s402_s1 + $0x30] sm:$0xff]  ;;  %v42_v12 = vld [vmem:[%s402_s1 + $0x38] sm:$0xff]  ;;  %s294_s23 = smov [#allocation3]  }
   0x6   :  { %250 = vmatprep.subr.bf16.mxu0 %v249_v6  ;;  %v257_v13 = vpack.c.bf16 %v42_v12, %v41_v11  ;;  %v34_v14 = vld [vmem:[%s401_s0 + $0x8] sm:$0xff]  ;;  %v213_v21 = vld [vmem:[%s403_s2] ss:$0 sm:$0xff]  ;;  %s200_s24 = sshll.u32 %s294_s23, 4  ;;  %s201_s24 = int_to_ptr.vmem [resolvable:$true] %s200_s24 }
   0x7   :  { %v144_v24 = vld [vmem:[%s404_s3] sm:$0xff]  ;;  %v145_v27 = vld [vmem:[%s404_s3 + $0x8] sm:$0xff]  ;;  %s269_s25 = scalar_lea.vmem %s201_s24, 256  ;;  %p274_p1 = scmp.lt.s32.totalorder %s201_s24, %s201_s24 }
   0x8   :  { %v32_v15 = vld [vmem:[#allocation2 + $0x8] sm:$0xff]  ;;  %v214_v49 = vld [vmem:[%s405_s4] ss:$0 sm:$0xff]  ;;  %p270_p0 = scmp.ne.s32.totalorder %s201_s24, %s269_s25  ;;  %p275_p2 = scmp.lt.s32.totalorder %s269_s25, %s269_s25 }
   0x9   :  { %252 = vmatpush3.bf16.msra.mxu0 %v249_v6  ;;  %v31_v16 = vld [vmem:[#allocation2] sm:$0xff] }
   0xa   :  { %254 = vmatprep.subr.bf16.mxu0 %v253_v10  ;;  %v215_v51 = vld [vmem:[%s406_s5] ss:$0 sm:$0xff]  ;;  %p276_p3 = por %p275_p2, %p274_p1 }
   0xc   :  { %p277_p4 = pnand %p276_p3, %p270_p0 }
   0xd   :  { %256 = vmatpush3.bf16.msra.mxu0 %v253_v10 }
   0xe   :  { %258 = vmatprep.subr.bf16.mxu0 %v257_v13 }
  0x11   :  { %260 = vmatpush3.bf16.msra.mxu0 %v257_v13 }
  0x14   :  { %243 = vmatmul.mubr.msk.f32.vlgmr.msra.gmra.mrb[0].mxu0 %vm43_vm0, %v34_v14 }
  0xe7   :  { %v244_v17 = vpop.f32.mrb[0].mxu0 }
  0xe8   :  { %v126_v18 = vadd.f32 %v244_v17, %v32_v15  ;;  %v116_v19 = vpop.f32.mrb[1].mxu0 }
  0xe9   :  { %v125_v20 = vadd.f32 %v116_v19, %v31_v16 }
  0xea   :  { %129 = vst.msk [vmem:[#allocation2 + $0x8] sm:$0xff] %vm28_vm1, %v126_v18 }
  0xeb   :  { %128 = vst.msk [vmem:[#allocation2] sm:$0xff] %vm28_vm1, %v125_v20 }
  0xf1   :  { %v134_v22 = vld [vmem:[#allocation2 + $0x8] sm:$0xff] }
  0xf2   :  { %v133_v23 = vld [vmem:[#allocation2] sm:$0xff]  ;;  %v143_v26 = vadd.f32 %v213_v21, %v134_v22 }
  0xf3   :  { %v142_v25 = vadd.f32 %v213_v21, %v133_v23 }
  0xf4   :  { %v147_v30 = vadd.f32 %v145_v27, %v143_v26 }
  0xf5   :  { %v146_v28 = vadd.f32 %v144_v24, %v142_v25 }
  0xf6   :  { %v151_v31 = vsel %vm28_vm1, %v147_v30, 0.0 }
  0xf7   :  { %v148_v29 = vsel %vm28_vm1, %v146_v28, 0.0 }
  0xf8   :  { %149 = vadd.xlane.f32.xlu0 %v148_v29 }
  0xfc   :  { %152 = vadd.xlane.f32.xlu0 %v151_v31 }
 0x185   :  { %v150_v32 = vpop.xlane.xlu0 %149 }
 0x186   :  { %v155_v33 = vmul.f32 0.03125, %v150_v32 }
 0x188   :  { %v157_v34 = vsub.f32 %v146_v28, %v155_v33 }
 0x189   :  { %v153_v35 = vpop.xlane.xlu0 %152 }
 0x18a   :  { %v156_v36 = vmul.f32 0.03125, %v153_v35  ;;  %v159_v37 = vmul.f32 %v157_v34, %v157_v34 }
 0x18c   :  { %v158_v38 = vsub.f32 %v147_v30, %v156_v36  ;;  %v161_v39 = vsel %vm28_vm1, %v159_v37, 0.0 }
 0x18d   :  { %162 = vadd.xlane.f32.xlu1 %v161_v39 }
 0x18e   :  { %v160_v40 = vmul.f32 %v158_v38, %v158_v38 }
 0x190   :  { %v164_v41 = vsel %vm28_vm1, %v160_v40, 0.0 }
 0x191   :  { %165 = vadd.xlane.f32.xlu1 %v164_v41 }
 0x21a   :  { %v163_v42 = vpop.xlane.xlu1 %162 }
 0x21b   :  { %v167_v43 = vmul.f32 0.03125, %v163_v42 }
 0x21d   :  { %v169_v44 = vadd.f32 1e-05, %v167_v43 }
 0x21e   :  { %v166_v45 = vpop.xlane.xlu1 %165 }
 0x21f   :  { %265 = vrsqrt.f32 %v169_v44  ;;  %v168_v46 = vmul.f32 0.03125, %v166_v45 }
 0x221   :  { %v170_v47 = vadd.f32 1e-05, %v168_v46 }
 0x223   :  { %267 = vrsqrt.f32 %v170_v47 }
 0x229   :  { %v266_v48 = vpop.eup %265 }
 0x22a   :  { %v173_v50 = vmul.f32 %v266_v48, %v157_v34 }
 0x22c   :  { %v182_v52 = vmul.f32 %v214_v49, %v173_v50 }
 0x22d   :  { %v268_v53 = vpop.eup %267 }
 0x22e   :  { %v174_v54 = vmul.f32 %v268_v53, %v158_v38  ;;  %v191_v55 = vadd.f32 %v215_v51, %v182_v52 }
 0x230   :  { %v183_v56 = vmul.f32 %v214_v49, %v174_v54  ;;  %193 = vst.msk [vmem:[#allocation3] sm:$0xff] %vm28_vm1, %v191_v55 }
 0x232   :  { %v192_v57 = vadd.f32 %v215_v51, %v183_v56 }
 0x234   :  { %194 = vst.msk [vmem:[#allocation3 + $0x8] sm:$0xff] %vm28_vm1, %v192_v57 }
 0x235   :  { %280 = shalt.err (!%p277_p4)
}
 0x236   :  { %s281_s26 = scalar_lea.hbm %s407_s6, 256 }
 0x237   :  { %p282_p5 = scmp.ne.s32.totalorder %s407_s6, %s281_s26  ;;  %p285_p6 = scmp.lt.u32.totalorder %s281_s26, %s407_s6 }
 0x239   :  { %p287_p7 = pnand %p285_p6, %p282_p5 }
 0x23b   :  { %290 = shalt.err (!%p287_p7)
}
 0x23c   :  { %s295_s7 = smov 128   ;;  %s296_s8 = smov 8  }
 0x23d   :  { %206 = dma.vmem_to_hbm [thread:$0]  %s201_s24, 256, %s407_s6, [#allocation4], %s295_s7, %s295_s7, %s296_s8  }
 0x23e   :  { %291 = dma.done.wait [#allocation4], 256  }
 0x23f   :  { %292 = vsyncadd [#allocation4], 4294967040 }
 0x240   :  { %210 = vsyncpa [#allocation4], 1 }

</bundles_post_ra>
